<compile_context>
chip_gen: v6e
topology: v6e:2x2x1
jax: 0.10.0
libtpu: 0.0.40
codegen_flags: <defaults>
</compile_context>

<pallas_src>
import numpy as np
import jax
import jax.numpy as jnp
from jax.experimental import pallas as pl
from jax.experimental.pallas import tpu as pltpu


def _fcn_head_kernel(x_ref, wb_ref, w2b_ref, scale_ref, bias_ref, b2_ref,
                     mtop_ref, mbot_ref, o_ref):
    """One block of B images (stacked along rows) per grid step.

    x_ref    : (M, W*Cin)  bf16   M = B*H image rows; lanes = width*channels (NHWC)
    wb_ref   : (3, W*Cin, W*Cmid) bf16  width-banded 3x3 weights, one per kernel row ky
    w2b_ref  : (W*Cmid, W*Cout)   bf16  block-diagonal 1x1 weights
    scale_ref: (1, W*Cmid) f32    folded BN scale, tiled across W
    bias_ref : (1, W*Cmid) f32    folded BN bias,  tiled across W
    b2_ref   : (1, W*Cout) f32    1x1-conv bias,   tiled across W
    mtop_ref : (M, 1) f32         0.0 on rows that are the first row of an image
    mbot_ref : (M, 1) f32         0.0 on rows that are the last row of an image
    o_ref    : (M, W*Cout) f32    lane-dense output (flattened NHWC)
    """
    x = x_ref[...]                                              # (M, W*Cin) bf16

    # 3x3 conv: width taps (kx) + channel contraction folded into 3 banded matmuls,
    # one per kernel row ky (width zero-padding is folded into the banded weights).
    p_top = jnp.dot(x, wb_ref[0], preferred_element_type=jnp.float32)   # ky = 0
    p_mid = jnp.dot(x, wb_ref[1], preferred_element_type=jnp.float32)   # ky = 1
    p_bot = jnp.dot(x, wb_ref[2], preferred_element_type=jnp.float32)   # ky = 2

    # +/-1 image-row shift of the narrow 128-lane products (height zero-padding is the
    # explicit zero halo row; cross-image leakage from batch stacking is masked out).
    zrow = jnp.zeros((1, p_top.shape[1]), p_top.dtype)
    p_top_sh = jnp.concatenate([zrow, p_top[:-1, :]], axis=0)   # row r <- p_top[r-1]
    p_bot_sh = jnp.concatenate([p_bot[1:, :], zrow], axis=0)    # row r <- p_bot[r+1]
    acc = p_mid + mtop_ref[...] * p_top_sh + mbot_ref[...] * p_bot_sh

    # BatchNorm (eval, folded affine) + ReLU, in f32 on the accumulator.
    y = jnp.maximum(acc * scale_ref[...] + bias_ref[...], 0.0)

    # Dropout(0.1): eval mode -> identity.
    # TODO(synk): training-mode dropout would need pltpu.prng_seed / prng_random_bits.

    # 1x1 conv as a block-diagonal matmul over the W lane groups, plus bias.
    out = jnp.dot(y.astype(jnp.bfloat16), w2b_ref[...],
                  preferred_element_type=jnp.float32) + b2_ref[...]

    # Full-lane, unmasked store.
    o_ref[...] = out.astype(o_ref.dtype)


def pack_fcn_head_params(w1, gamma, beta, run_mean, run_var, w2, b2, *, W, eps=1e-5):
    """Pack module parameters into matmul-ready form.

    Called ONCE (hoisted out of the per-call jitted forward, per review): the packed
    tensors are reused by every fcn_head_forward call.

    w1: (3, 3, Cin, Cmid) HWIO conv3x3 weights (bias=False)
    gamma/beta/run_mean/run_var: (Cmid,) BatchNorm2d affine + running stats
    w2: (Cmid, Cout), b2: (Cout,) conv1x1 weights / bias
    """
    _, _, Cin, Cmid = w1.shape
    Cout = w2.shape[1]

    # Width-banded 3x3 weights: wb[ky][w_in*Cin + c, w_out*Cmid + d] =
    #   w1[ky, w_in - w_out + 1, c, d] if |w_in - w_out| <= 1 else 0.
    wi = jnp.arange(W)[:, None]
    wo = jnp.arange(W)[None, :]
    bands = []
    for ky in range(3):
        wb_ky = jnp.zeros((W * Cin, W * Cmid), jnp.float32)
        for kx in range(3):
            sel = ((wi - wo + 1) == kx).astype(jnp.float32)
            wb_ky = wb_ky + jnp.kron(sel, w1[ky, kx].astype(jnp.float32))
        bands.append(wb_ky)
    wb = jnp.stack(bands, axis=0).astype(jnp.bfloat16)            # (3, W*Cin, W*Cmid)

    # Block-diagonal 1x1-conv weights.
    w2b = jnp.kron(jnp.eye(W, dtype=jnp.float32),
                   w2.astype(jnp.float32)).astype(jnp.bfloat16)   # (W*Cmid, W*Cout)

    # Fold BatchNorm (eval) into a per-channel affine, tiled across the W lane groups.
    inv = gamma / jnp.sqrt(run_var + eps)
    scale = jnp.tile(inv, W).reshape(1, W * Cmid).astype(jnp.float32)
    bias = jnp.tile(beta - run_mean * inv, W).reshape(1, W * Cmid).astype(jnp.float32)
    b2t = jnp.tile(b2, W).reshape(1, W * Cout).astype(jnp.float32)

    return {"wb": wb, "w2b": w2b, "scale": scale, "bias": bias, "b2": b2t}


def _pick_images_per_step(N, H):
    """Largest B dividing N with B*H <= 256 MXU rows, preferring >= 2 grid steps so both
    v7x TensorCores get work under dimension_semantics=('parallel',)."""
    best = 1
    for B in range(1, N + 1):
        if N % B != 0 or (B * H) % 8 != 0:
            continue
        if B * H > 256:
            break
        if N // B < 2 and best * H >= 128:
            continue
        best = B
    return best


@jax.jit
def fcn_head_forward(x_nhwc, packed):
    """NHWC forward of _FCNHead (eval). x_nhwc: (N, H, W, Cin). Returns (N, H, W, Cout) f32."""
    N, H, W, Cin = x_nhwc.shape
    Cmid = packed["scale"].shape[1] // W
    Cout = packed["b2"].shape[1] // W

    # Lane-dense guard (per review: do not silently fall back to masked partial stores).
    assert (W * Cin) % 128 == 0 and (W * Cmid) % 128 == 0 and (W * Cout) % 128 == 0, (
        f"lane widths must be 128-multiples for unmasked loads/stores; got "
        f"W*Cin={W * Cin}, W*Cmid={W * Cmid}, W*Cout={W * Cout}")

    B = _pick_images_per_step(N, H)
    M = B * H
    assert N % B == 0 and M % 8 == 0, (N, H, B)

    # (N, H, W, Cin) -> (N*H, W*Cin): free row-major reshape; the bf16 cast halves the
    # HBM->VMEM DMA bytes (and is a no-op in an end-to-end bf16 NHWC model).
    xs = x_nhwc.astype(jnp.bfloat16).reshape(N * H, W * Cin)

    # Image-boundary masks for the +/-1 row shift (trace-time constants, same pattern
    # for every grid step because B divides N).
    rows = np.arange(M)
    mtop = jnp.asarray((rows % H != 0).astype(np.float32).reshape(M, 1))
    mbot = jnp.asarray((rows % H != H - 1).astype(np.float32).reshape(M, 1))

    out_flat = pl.pallas_call(
        _fcn_head_kernel,
        out_shape=jax.ShapeDtypeStruct((N * H, W * Cout), jnp.float32),
        grid_spec=pltpu.PrefetchScalarGridSpec(
            num_scalar_prefetch=0,
            grid=(N // B,),
            in_specs=[
                pl.BlockSpec((M, W * Cin), lambda n: (n, 0)),
                pl.BlockSpec((3, W * Cin, W * Cmid), lambda n: (0, 0, 0)),
                pl.BlockSpec((W * Cmid, W * Cout), lambda n: (0, 0)),
                pl.BlockSpec((1, W * Cmid), lambda n: (0, 0)),
                pl.BlockSpec((1, W * Cmid), lambda n: (0, 0)),
                pl.BlockSpec((1, W * Cout), lambda n: (0, 0)),
                pl.BlockSpec((M, 1), lambda n: (0, 0)),
                pl.BlockSpec((M, 1), lambda n: (0, 0)),
            ],
            out_specs=pl.BlockSpec((M, W * Cout), lambda n: (n, 0)),
        ),
        compiler_params=pltpu.CompilerParams(
            dimension_semantics=("parallel",)),
    )(xs, packed["wb"], packed["w2b"], packed["scale"], packed["bias"],
      packed["b2"], mtop, mbot)

    # (N*H, W*Cout) row-major IS flattened NHWC -> free reshape, no transpose.
    return out_flat.reshape(N, H, W, Cout)


def _reference_nhwc(x, w1, gamma, beta, run_mean, run_var, w2, b2, eps=1e-5):
    """Pure-JAX f32 reference with the same semantics as the PyTorch module (eval)."""
    y = jax.lax.conv_general_dilated(
        x, w1, window_strides=(1, 1), padding=((1, 1), (1, 1)),
        dimension_numbers=("NHWC", "HWIO", "NHWC"))
    inv = gamma / jnp.sqrt(run_var + eps)
    y = y * inv + (beta - run_mean * inv)
    y = jnp.maximum(y, 0.0)
    return jnp.einsum("nhwc,cd->nhwd", y, w2) + b2


if __name__ == "__main__":
    # _FCNHead(in_channels=32, channels=8): inter_channels = 32 // 4 = 8.
    # W*Cin = 512, W*Cmid = W*Cout = 128 -> every load/store is full-lane.
    N, H, W, Cin = 32, 16, 16, 32
    Cmid, Cout = Cin // 4, 8

    key = jax.random.PRNGKey(0)
    k = jax.random.split(key, 8)

    x = jax.random.normal(k[0], (N, H, W, Cin), dtype=jnp.float32)             # NHWC
    w1 = 0.05 * jax.random.normal(k[1], (3, 3, Cin, Cmid), dtype=jnp.float32)  # HWIO
    gamma = 1.0 + 0.1 * jax.random.normal(k[2], (Cmid,), dtype=jnp.float32)
    beta = 0.1 * jax.random.normal(k[3], (Cmid,), dtype=jnp.float32)
    run_mean = 0.1 * jax.random.normal(k[4], (Cmid,), dtype=jnp.float32)
    run_var = 1.0 + 0.1 * jnp.abs(jax.random.normal(k[5], (Cmid,), dtype=jnp.float32))
    w2 = 0.1 * jax.random.normal(k[6], (Cmid, Cout), dtype=jnp.float32)
    b2 = 0.1 * jax.random.normal(k[7], (Cout,), dtype=jnp.float32)

    # Pack once (hoisted out of the per-call forward).
    packed = pack_fcn_head_params(w1, gamma, beta, run_mean, run_var, w2, b2, W=W)

    out = fcn_head_forward(x, packed)
    out = jax.block_until_ready(out)

    ref = _reference_nhwc(x, w1, gamma, beta, run_mean, run_var, w2, b2)
    assert out.shape == (N, H, W, Cout), out.shape
    max_err = float(jnp.max(jnp.abs(out - ref)))
    # Tolerance reflects bf16 matmul inputs (f32 accumulation) vs. the f32 reference.
    assert jnp.allclose(out, ref, rtol=2e-2, atol=2e-2), max_err

    print("KERNEL_OK")
</pallas_src>

<mosaic_0001>
module attributes {stable_mosaic.version = 11 : i64} {
  func.func @_fcn_head_kernel(%arg0: i32, %arg1: memref<256x512xbf16, #tpu.memory_space<vmem>>, %arg2: memref<3x512x128xbf16, #tpu.memory_space<vmem>>, %arg3: memref<128x128xbf16, #tpu.memory_space<vmem>>, %arg4: memref<1x128xf32, #tpu.memory_space<vmem>>, %arg5: memref<1x128xf32, #tpu.memory_space<vmem>>, %arg6: memref<1x128xf32, #tpu.memory_space<vmem>>, %arg7: memref<256x1xf32, #tpu.memory_space<vmem>>, %arg8: memref<256x1xf32, #tpu.memory_space<vmem>>, %arg9: memref<256x128xf32, #tpu.memory_space<vmem>>) attributes {dimension_semantics = [#tpu.dimension_semantics<parallel>], iteration_bounds = array<i64: 2>, scalar_prefetch = 0 : i64, scratch_operands = 0 : i64, tpu.core_type = #tpu.core_type<tc>, window_params = [{transform_indices = @transform_0, window_bounds = array<i64: 256, 512>}, {pipeline_mode = #tpu.pipeline_mode<synchronous>, transform_indices = @transform_1, window_bounds = array<i64: 3, 512, 128>}, {pipeline_mode = #tpu.pipeline_mode<synchronous>, transform_indices = @transform_2, window_bounds = array<i64: 128, 128>}, {pipeline_mode = #tpu.pipeline_mode<synchronous>, transform_indices = @transform_3, window_bounds = array<i64: 1, 128>}, {pipeline_mode = #tpu.pipeline_mode<synchronous>, transform_indices = @transform_4, window_bounds = array<i64: 1, 128>}, {pipeline_mode = #tpu.pipeline_mode<synchronous>, transform_indices = @transform_5, window_bounds = array<i64: 1, 128>}, {pipeline_mode = #tpu.pipeline_mode<synchronous>, transform_indices = @transform_6, window_bounds = array<i64: 256, 1>}, {pipeline_mode = #tpu.pipeline_mode<synchronous>, transform_indices = @transform_7, window_bounds = array<i64: 256, 1>}, {transform_indices = @transform_8, window_bounds = array<i64: 256, 128>}]} {
    %c0 = arith.constant 0 : index
    %c0_0 = arith.constant 0 : index
    %0 = vector.load %arg1[%c0, %c0_0] : memref<256x512xbf16, #tpu.memory_space<vmem>>, vector<256x512xbf16>
    %c0_1 = arith.constant 0 : index
    %c0_2 = arith.constant 0 : index
    %c0_3 = arith.constant 0 : index
    %1 = vector.load %arg2[%c0_1, %c0_2, %c0_3] : memref<3x512x128xbf16, #tpu.memory_space<vmem>>, vector<1x512x128xbf16>
    %2 = vector.shape_cast %1 : vector<1x512x128xbf16> to vector<512x128xbf16>
    %cst = arith.constant dense<0.000000e+00> : vector<256x128xf32>
    %3 = tpu.matmul %0, %2, %cst {dimension_numbers = #tpu.dot_dimension_numbers<[1], [0], [0], [1], [0, 0, 1, 1], [], []>} : vector<256x512xbf16>, vector<512x128xbf16>, vector<256x128xf32> -> vector<256x128xf32>
    %c1 = arith.constant 1 : index
    %c0_4 = arith.constant 0 : index
    %c0_5 = arith.constant 0 : index
    %4 = vector.load %arg2[%c1, %c0_4, %c0_5] : memref<3x512x128xbf16, #tpu.memory_space<vmem>>, vector<1x512x128xbf16>
    %5 = vector.shape_cast %4 : vector<1x512x128xbf16> to vector<512x128xbf16>
    %cst_6 = arith.constant dense<0.000000e+00> : vector<256x128xf32>
    %6 = tpu.matmul %0, %5, %cst_6 {dimension_numbers = #tpu.dot_dimension_numbers<[1], [0], [0], [1], [0, 0, 1, 1], [], []>} : vector<256x512xbf16>, vector<512x128xbf16>, vector<256x128xf32> -> vector<256x128xf32>
    %c2 = arith.constant 2 : index
    %c0_7 = arith.constant 0 : index
    %c0_8 = arith.constant 0 : index
    %7 = vector.load %arg2[%c2, %c0_7, %c0_8] : memref<3x512x128xbf16, #tpu.memory_space<vmem>>, vector<1x512x128xbf16>
    %8 = vector.shape_cast %7 : vector<1x512x128xbf16> to vector<512x128xbf16>
    %cst_9 = arith.constant dense<0.000000e+00> : vector<256x128xf32>
    %9 = tpu.matmul %0, %8, %cst_9 {dimension_numbers = #tpu.dot_dimension_numbers<[1], [0], [0], [1], [0, 0, 1, 1], [], []>} : vector<256x512xbf16>, vector<512x128xbf16>, vector<256x128xf32> -> vector<256x128xf32>
    %cst_10 = arith.constant 0.000000e+00 : f32
    %10 = vector.broadcast %cst_10 : f32 to vector<1x128xf32>
    %11 = vector.extract_strided_slice %3 {offsets = [0, 0], sizes = [255, 128], strides = [1, 1]} : vector<256x128xf32> to vector<255x128xf32>
    %12 = tpu.concatenate %10, %11 in 0 : vector<1x128xf32>, vector<255x128xf32> -> vector<256x128xf32>
    %13 = vector.extract_strided_slice %9 {offsets = [1, 0], sizes = [255, 128], strides = [1, 1]} : vector<256x128xf32> to vector<255x128xf32>
    %14 = tpu.concatenate %13, %10 in 0 : vector<255x128xf32>, vector<1x128xf32> -> vector<256x128xf32>
    %c0_11 = arith.constant 0 : index
    %c0_12 = arith.constant 0 : index
    %15 = vector.load %arg7[%c0_11, %c0_12] : memref<256x1xf32, #tpu.memory_space<vmem>>, vector<256x1xf32>
    %16 = vector.broadcast %15 : vector<256x1xf32> to vector<256x128xf32>
    %17 = arith.mulf %16, %12 : vector<256x128xf32>
    %18 = arith.addf %6, %17 : vector<256x128xf32>
    %c0_13 = arith.constant 0 : index
    %c0_14 = arith.constant 0 : index
    %19 = vector.load %arg8[%c0_13, %c0_14] : memref<256x1xf32, #tpu.memory_space<vmem>>, vector<256x1xf32>
    %20 = vector.broadcast %19 : vector<256x1xf32> to vector<256x128xf32>
    %21 = arith.mulf %20, %14 : vector<256x128xf32>
    %22 = arith.addf %18, %21 : vector<256x128xf32>
    %c0_15 = arith.constant 0 : index
    %c0_16 = arith.constant 0 : index
    %23 = vector.load %arg4[%c0_15, %c0_16] : memref<1x128xf32, #tpu.memory_space<vmem>>, vector<1x128xf32>
    %24 = vector.broadcast %23 : vector<1x128xf32> to vector<256x128xf32>
    %25 = arith.mulf %22, %24 : vector<256x128xf32>
    %c0_17 = arith.constant 0 : index
    %c0_18 = arith.constant 0 : index
    %26 = vector.load %arg5[%c0_17, %c0_18] : memref<1x128xf32, #tpu.memory_space<vmem>>, vector<1x128xf32>
    %27 = vector.broadcast %26 : vector<1x128xf32> to vector<256x128xf32>
    %28 = arith.addf %25, %27 : vector<256x128xf32>
    %cst_19 = arith.constant 0.000000e+00 : f32
    %29 = vector.broadcast %cst_19 : f32 to vector<256x128xf32>
    %30 = arith.maximumf %28, %29 : vector<256x128xf32>
    %31 = arith.truncf %30 : vector<256x128xf32> to vector<256x128xbf16>
    %c0_20 = arith.constant 0 : index
    %c0_21 = arith.constant 0 : index
    %32 = vector.load %arg3[%c0_20, %c0_21] : memref<128x128xbf16, #tpu.memory_space<vmem>>, vector<128x128xbf16>
    %cst_22 = arith.constant dense<0.000000e+00> : vector<256x128xf32>
    %33 = tpu.matmul %31, %32, %cst_22 {dimension_numbers = #tpu.dot_dimension_numbers<[1], [0], [0], [1], [0, 0, 1, 1], [], []>} : vector<256x128xbf16>, vector<128x128xbf16>, vector<256x128xf32> -> vector<256x128xf32>
    %c0_23 = arith.constant 0 : index
    %c0_24 = arith.constant 0 : index
    %34 = vector.load %arg6[%c0_23, %c0_24] : memref<1x128xf32, #tpu.memory_space<vmem>>, vector<1x128xf32>
    %35 = vector.broadcast %34 : vector<1x128xf32> to vector<256x128xf32>
    %36 = arith.addf %33, %35 : vector<256x128xf32>
    %c0_25 = arith.constant 0 : index
    %c0_26 = arith.constant 0 : index
    %37 = vector.load %arg9[%c0_25, %c0_26] : memref<256x128xf32, #tpu.memory_space<vmem>>, vector<256x128xf32>
    tpu.vector_store %arg9[%c0_25, %c0_26], %36 {strides = array<i32>} : memref<256x128xf32, #tpu.memory_space<vmem>>, vector<256x128xf32>,
    return
  }
  func.func @transform_0(%arg0: i32) -> (i32, i32) {
    %c0_i32 = arith.constant 0 : i32
    %c0_i32_0 = arith.constant 0 : i32
    return %arg0, %c0_i32 : i32, i32
  }
  func.func @transform_1(%arg0: i32) -> (i32, i32, i32) {
    %c0_i32 = arith.constant 0 : i32
    %c0_i32_0 = arith.constant 0 : i32
    %c0_i32_1 = arith.constant 0 : i32
    %c0_i32_2 = arith.constant 0 : i32
    return %c0_i32, %c0_i32_0, %c0_i32_1 : i32, i32, i32
  }
  func.func @transform_2(%arg0: i32) -> (i32, i32) {
    %c0_i32 = arith.constant 0 : i32
    %c0_i32_0 = arith.constant 0 : i32
    %c0_i32_1 = arith.constant 0 : i32
    return %c0_i32, %c0_i32_0 : i32, i32
  }
  func.func @transform_3(%arg0: i32) -> (i32, i32) {
    %c0_i32 = arith.constant 0 : i32
    %c0_i32_0 = arith.constant 0 : i32
    %c0_i32_1 = arith.constant 0 : i32
    return %c0_i32, %c0_i32_0 : i32, i32
  }
  func.func @transform_4(%arg0: i32) -> (i32, i32) {
    %c0_i32 = arith.constant 0 : i32
    %c0_i32_0 = arith.constant 0 : i32
    %c0_i32_1 = arith.constant 0 : i32
    return %c0_i32, %c0_i32_0 : i32, i32
  }
  func.func @transform_5(%arg0: i32) -> (i32, i32) {
    %c0_i32 = arith.constant 0 : i32
    %c0_i32_0 = arith.constant 0 : i32
    %c0_i32_1 = arith.constant 0 : i32
    return %c0_i32, %c0_i32_0 : i32, i32
  }
  func.func @transform_6(%arg0: i32) -> (i32, i32) {
    %c0_i32 = arith.constant 0 : i32
    %c0_i32_0 = arith.constant 0 : i32
    %c0_i32_1 = arith.constant 0 : i32
    return %c0_i32, %c0_i32_0 : i32, i32
  }
  func.func @transform_7(%arg0: i32) -> (i32, i32) {
    %c0_i32 = arith.constant 0 : i32
    %c0_i32_0 = arith.constant 0 : i32
    %c0_i32_1 = arith.constant 0 : i32
    return %c0_i32, %c0_i32_0 : i32, i32
  }
  func.func @transform_8(%arg0: i32) -> (i32, i32) {
    %c0_i32 = arith.constant 0 : i32
    %c0_i32_0 = arith.constant 0 : i32
    return %arg0, %c0_i32 : i32, i32
  }
}

</mosaic_0001>

<bundles_post_ra>
// kernel: fcn_head_forward.1
= control target key start
LH: loop header
LB: loop body
LE: loop exit
PB: predicated region body
PF: predicated region fallthrough
CT: control target
= control target key end

     0   :  { %s5018_s27 = smov 0   ;;  %s6872_s0 = inlined_call_operand.vmem [shape: bf16[512,512], index: 0, kind: input, shape index: {}]   ;;  %s6873_s1 = inlined_call_operand.vmem [shape: bf16[3,512,128], index: 1, kind: input, shape index: {}]   ;;  %s6874_s2 = inlined_call_operand.vmem [shape: bf16[128,128], index: 2, kind: input, shape index: {}]   ;;  %s6875_s3 = inlined_call_operand.vmem [shape: f32[1,128], index: 3, kind: input, shape index: {}]   ;;  %s6876_s4 = inlined_call_operand.vmem [shape: f32[1,128], index: 4, kind: input, shape index: {}]   ;;  %s6877_s5 = inlined_call_operand.vmem [shape: f32[1,128], index: 5, kind: input, shape index: {}]   ;;  %s6878_s6 = inlined_call_operand.vmem [shape: f32[256,1], index: 6, kind: input, shape index: {}]   ;;  %s6879_s7 = inlined_call_operand.vmem [shape: f32[256,1], index: 7, kind: input, shape index: {}]   ;;  %s6880_s8 = inlined_call_operand.vmem [shape: f32[512,128], index: 8, kind: output, shape index: {}]  }
   0x1 LB: > { %s3617_s28 = sadd.s32 4294967295, %s4970_s27   ;;  %p3621_p0 = scmp.ge.s32.totalorder %s4970_s27, 1  ;;  %s4970_s27 = sphi %s5018_s27, %s18_s27  }
   0x2   : > { %p264_p1 = scmp.lt.s32.totalorder %s4970_s27, 3 }
   0x4   : > { %p265_p2 = pnand %p3621_p0, %p264_p1 }
   0x6   : > { %268 = sbr.rel (%p265_p2) target bundleno = 867 (0x363), region = 52 }
   0xb   : > { %v4700_v0 = vld [vmem:[%s6873_s1 + $0x78] sm:$0xff]   ;;  %s3622_s9 = sshll.u32 %s3617_s28, 5  ;;  %v4702_v2 = vld [vmem:[%s6873_s1 + $0x70] sm:$0xff]   ;;  %v4704_v4 = vld [vmem:[%s6873_s1 + $0x68] sm:$0xff]   ;;  %v4972_v9 = vmov 0   ;;  %vm1951_vm0 = vcmask 1040384  }
   0xc   : > { %v4701_v1 = vld [vmem:[%s6873_s1 + $0x38] sm:$0xff]   ;;  %3929 = vmatprep.subr.bf16.mxu0 %v4700_v0  ;;  %4673 = vmatprep.subr.bf16.mxu1 %v4700_v0  ;;  %p300_p3 = scmp.lt.s32.totalorder %s3622_s9, 63  ;;  %v4703_v3 = vld [vmem:[%s6873_s1 + $0x30] sm:$0xff]   ;;  %v4705_v5 = vld [vmem:[%s6873_s1 + $0x28] sm:$0xff]   ;;  %vm2080_vm1 = vcmask 1046528  }
   0xd   : > { %3930 = vmatpush3.bf16.msra.mxu0 %v4701_v1  ;;  %4681 = vmatpush3.bf16.msra.mxu1 %v4701_v1  ;;  %v4706_v6 = vld [vmem:[%s6873_s1 + $0x60] sm:$0xff]   ;;  %v4708_v8 = vld [vmem:[%s6873_s1 + $0x58] sm:$0xff]   ;;  %v4710_v11 = vld [vmem:[%s6873_s1 + $0x50] sm:$0xff]  }
   0xe   : > { %3931 = vmatprep.subr.bf16.mxu0 %v4702_v2  ;;  %4674 = vmatprep.subr.bf16.mxu1 %v4702_v2  ;;  %s7018_s9 = smov (!%p300_p3, %s3622_s9), 63  ;;  %v4707_v7 = vld [vmem:[%s6873_s1 + $0x20] sm:$0xff]   ;;  %v4709_v10 = vld [vmem:[%s6873_s1 + $0x18] sm:$0xff]   ;;  %v4711_v14 = vld [vmem:[%s6873_s1 + $0x10] sm:$0xff]  }
   0xf   : > { %s3928_s22 = sshll.u32 %s7018_s9, 4  ;;  %4698 = vset.pattern.permute.xlu0 %v4972_v9  ;;  %4699 = vset.pattern.permute.xlu1 %v4972_v9  ;;  %v4712_v15 = vld [vmem:[%s6873_s1 + $0x48] sm:$0xff]   ;;  %v4714_v17 = vld [vmem:[%s6873_s1 + $0x40] sm:$0xff]   ;;  %v4722_v19 = vld [vmem:[%s6873_s1 + $0xf8] sm:$0xff]   ;;  %s3626_s28 = sshll.u32 %s7018_s9, 3 }
  0x10   : > { %s5059_s30 = scalar_lea.vmem %s6872_s0, %s3928_s22  ;;  %v4713_v16 = vld [vmem:[%s6873_s1 + $0x8] sm:$0xff]   ;;  %v4715_v18 = vld [vmem:[%s6873_s1] sm:$0xff]   ;;  %v4723_v22 = vld [vmem:[%s6873_s1 + $0xb8] sm:$0xff]   ;;  %s6803_s13 = scalar_lea.vmem %s6880_s8, %s3626_s28 }
  0x11   : > { %3932 = vmatpush3.bf16.msra.mxu0 %v4703_v3  ;;  %4682 = vmatpush3.bf16.msra.mxu1 %v4703_v3  ;;  %v5068_v12 = vld [vmem:[%s5059_s30 + $0x4] ss:$16 sps:$4 sm:$0xff]   ;;  %v5091_v20 = vld [vmem:[%s5059_s30] ss:$16 sps:$4 sm:$0xff]   ;;  %v4732_v28 = vld [vmem:[%s6873_s1 + $0xe8] sm:$0xff]  }
  0x12   : > { %3933 = vmatprep.subr.bf16.mxu0 %v4704_v4  ;;  %4675 = vmatprep.subr.bf16.mxu1 %v4704_v4  ;;  %v4718_v13 = vld [vmem:[%s5059_s30 + $0x184] ss:$16 sps:$4 sm:$0xff]   ;;  %v4721_v21 = vld [vmem:[%s5059_s30 + $0x180] ss:$16 sps:$4 sm:$0xff]   ;;  %v4733_v30 = vld [vmem:[%s6873_s1 + $0xa8] sm:$0xff]  }
  0x13   : > { %985 = vmatprep.mubr.bf16.mxu0 %v5068_v12  ;;  %1081 = vmatprep.mubr.bf16.mxu1 %v4718_v13  ;;  %v4724_v23 = vld [vmem:[%s6873_s1 + $0xf0] sm:$0xff]   ;;  %v4734_v31 = vld [vmem:[%s6873_s1 + $0xe0] sm:$0xff]   ;;  %v4742_v37 = vld [vmem:[%s6873_s1 + $0xd8] sm:$0xff]  }
  0x14   : > { %v5101_v24 = vld [vmem:[%s5059_s30 + $0x24] ss:$16 sps:$4 sm:$0xff]   ;;  %v5110_v27 = vld [vmem:[%s5059_s30 + $0x20] ss:$16 sps:$4 sm:$0xff]   ;;  %v4743_v38 = vld [vmem:[%s6873_s1 + $0x98] sm:$0xff]  }
  0x15   : > { %3934 = vmatpush3.bf16.msra.mxu0 %v4705_v5  ;;  %4683 = vmatpush3.bf16.msra.mxu1 %v4705_v5  ;;  %v4728_v25 = vld [vmem:[%s5059_s30 + $0x1a4] ss:$16 sps:$4 sm:$0xff]   ;;  %v4731_v29 = vld [vmem:[%s5059_s30 + $0x1a0] ss:$16 sps:$4 sm:$0xff]   ;;  %v4752_v44 = vld [vmem:[%s6873_s1 + $0xc8] sm:$0xff]  }
  0x16   : > { %3935 = vmatprep.subr.bf16.mxu0 %v4706_v6  ;;  %4676 = vmatprep.subr.bf16.mxu1 %v4706_v6  ;;  %v4725_v26 = vld [vmem:[%s6873_s1 + $0xb0] sm:$0xff]   ;;  %v4735_v34 = vld [vmem:[%s6873_s1 + $0xa0] sm:$0xff]   ;;  %v4753_v46 = vld [vmem:[%s6873_s1 + $0x88] sm:$0xff]  }
  0x17   : > { %v5123_v32 = vld [vmem:[%s5059_s30 + $0x44] ss:$16 sps:$4 sm:$0xff]   ;;  %v5132_v35 = vld [vmem:[%s5059_s30 + $0x40] ss:$16 sps:$4 sm:$0xff]   ;;  %v5170_v49 = vld [vmem:[%s5059_s30 + $0xc] ss:$16 sps:$4 sm:$0xff]  }
  0x18   : > { %v4738_v33 = vld [vmem:[%s5059_s30 + $0x1c4] ss:$16 sps:$4 sm:$0xff]   ;;  %v4741_v36 = vld [vmem:[%s5059_s30 + $0x1c0] ss:$16 sps:$4 sm:$0xff]   ;;  %v4784_v50 = vld [vmem:[%s6873_s1 + $0x278] sm:$0xff]  }
  0x19   : > { %3936 = vmatpush3.bf16.msra.mxu0 %v4707_v7  ;;  %4684 = vmatpush3.bf16.msra.mxu1 %v4707_v7  ;;  %v4744_v39 = vld [vmem:[%s6873_s1 + $0xd0] sm:$0xff]   ;;  %v4754_v48 = vld [vmem:[%s6873_s1 + $0xc0] sm:$0xff]   ;;  %v5181_v52 = vld [vmem:[%s5059_s30 + $0x8] ss:$16 sps:$4 sm:$0xff]  }
  0x1a   : > { %3937 = vmatprep.subr.bf16.mxu0 %v4708_v8  ;;  %4677 = vmatprep.subr.bf16.mxu1 %v4708_v8  ;;  %v5145_v40 = vld [vmem:[%s5059_s30 + $0x64] ss:$16 sps:$4 sm:$0xff]   ;;  %v5154_v43 = vld [vmem:[%s5059_s30 + $0x60] ss:$16 sps:$4 sm:$0xff]   ;;  %v4762_v53 = vld [vmem:[%s6873_s1 + $0x2f8] sm:$0xff]  }
  0x1b   : > { %v4748_v41 = vld [vmem:[%s5059_s30 + $0x1e4] ss:$16 sps:$4 sm:$0xff]   ;;  %v4751_v45 = vld [vmem:[%s5059_s30 + $0x1e0] ss:$16 sps:$4 sm:$0xff]   ;;  %v4763_v55 = vld [vmem:[%s6873_s1 + $0x2b8] sm:$0xff]  }
  0x1c   : > { %v4745_v42 = vld [vmem:[%s6873_s1 + $0x90] sm:$0xff]   ;;  %v4755_v51 = vld [vmem:[%s6873_s1 + $0x80] sm:$0xff]   ;;  %v4789_v56 = vld [vmem:[%s6873_s1 + $0x238] sm:$0xff]  }
  0x1d   : > { %3938 = vmatpush3.bf16.msra.mxu0 %v4709_v10  ;;  %4685 = vmatpush3.bf16.msra.mxu1 %v4709_v10  ;;  %v5164_v47 = vld [vmem:[%s5059_s30 + $0x84] ss:$16 sps:$4 sm:$0xff]   ;;  %v5188_v54 = vld [vmem:[%s5059_s30 + $0x80] ss:$16 sps:$4 sm:$0xff]   ;;  %v5200_v58 = vld [vmem:[%s5059_s30 + $0x2c] ss:$16 sps:$4 sm:$0xff]  }
  0x1e   : > { %3939 = vmatprep.subr.bf16.mxu0 %v4710_v11  ;;  %4678 = vmatprep.subr.bf16.mxu1 %v4710_v11  ;;  %v5197_v57 = vld [vmem:[%s5059_s30 + $0xa4] ss:$16 sps:$4 sm:$0xff]   ;;  %v5219_v63 = vld [vmem:[%s5059_s30 + $0xa0] ss:$16 sps:$4 sm:$0xff]   ;;  %v5222_v0 = vld [vmem:[%s5059_s30 + $0x28] ss:$16 sps:$4 sm:$0xff]  }
  0x1f   : > { %v4776_v59 = vld [vmem:[%s6873_s1 + $0x2f0] sm:$0xff]   ;;  %v4792_v1 = vld [vmem:[%s6873_s1 + $0x2e8] sm:$0xff]   ;;  %v4804_v7 = vld [vmem:[%s6873_s1 + $0x260] sm:$0xff]  }
  0x20   : > { %v4794_v60 = vld [vmem:[%s6873_s1 + $0x270] sm:$0xff]   ;;  %v4802_v3 = vld [vmem:[%s6873_s1 + $0x268] sm:$0xff]   ;;  %v4805_v8 = vld [vmem:[%s6873_s1 + $0x220] sm:$0xff]  }
  0x21   : > { %3940 = vmatpush3.bf16.msra.mxu0 %v4711_v14  ;;  %4686 = vmatpush3.bf16.msra.mxu1 %v4711_v14  ;;  %v4795_v61 = vld [vmem:[%s6873_s1 + $0x230] sm:$0xff]   ;;  %v5234_v4 = vld [vmem:[%s5059_s30 + $0x4c] ss:$16 sps:$4 sm:$0xff]   ;;  %v5256_v10 = vld [vmem:[%s5059_s30 + $0x48] ss:$16 sps:$4 sm:$0xff]  }
  0x22   : > { %3941 = vmatprep.subr.bf16.mxu0 %v4712_v15  ;;  %4679 = vmatprep.subr.bf16.mxu1 %v4712_v15  ;;  %v4777_v62 = vld [vmem:[%s6873_s1 + $0x2b0] sm:$0xff]   ;;  %v4793_v5 = vld [vmem:[%s6873_s1 + $0x2a8] sm:$0xff]   ;;  %v4812_v11 = vld [vmem:[%s6873_s1 + $0x258] sm:$0xff]  }
  0x23   : > { %v5228_v2 = vld [vmem:[%s5059_s30 + $0xc4] ss:$16 sps:$4 sm:$0xff]   ;;  %v4803_v6 = vld [vmem:[%s6873_s1 + $0x228] sm:$0xff]   ;;  %v5253_v9 = vld [vmem:[%s5059_s30 + $0xc0] ss:$16 sps:$4 sm:$0xff]  }
  0x24   : > { %v5262_v13 = vld [vmem:[%s5059_s30 + $0xe4] ss:$16 sps:$4 sm:$0xff]   ;;  %v5268_v15 = vld [vmem:[%s5059_s30 + $0x6c] ss:$16 sps:$4 sm:$0xff]  }
  0x25   : > { %3942 = vmatpush3.bf16.msra.mxu0 %v4713_v16  ;;  %4687 = vmatpush3.bf16.msra.mxu1 %v4713_v16  ;;  %v4813_v14 = vld [vmem:[%s6873_s1 + $0x2e0] sm:$0xff]  }
  0x26   : > { %3943 = vmatprep.subr.bf16.mxu0 %v4714_v17  ;;  %4680 = vmatprep.subr.bf16.mxu1 %v4714_v17  ;;  %v4815_v16 = vld [vmem:[%s6873_s1 + $0x2a0] sm:$0xff]   ;;  %v4814_v17 = vld [vmem:[%s6873_s1 + $0x218] sm:$0xff]  }
  0x29   : > { %3944 = vmatpush3.bf16.msra.mxu0 %v4715_v18  ;;  %4688 = vmatpush3.bf16.msra.mxu1 %v4715_v18  ;;  %v4816_v18 = vld [vmem:[%s6873_s1 + $0x250] sm:$0xff]  }
  0x2a   : > { %4041 = vmatprep.subr.bf16.mxu1 %v4722_v19  ;;  %4153 = vmatprep.subr.bf16.mxu0 %v4784_v50  ;;  %v5284_v19 = vld [vmem:[%s5059_s30 + $0xe0] ss:$16 sps:$4 sm:$0xff]   ;;  %v5358_v50 = vld [vmem:[%s5059_s30 + $0xa8] ss:$16 sps:$4 sm:$0xff]  }
  0x2c   : > { %986 = vmatmul.mubr.bf16.vlgmr.msra.gmra.mxu0 %v5091_v20  ;;  %1082 = vmatmul.mubr.bf16.vlgmr.msra.gmra.mxu1 %v4721_v21  ;;  %v5287_v21 = vld [vmem:[%s5059_s30 + $0x68] ss:$16 sps:$4 sm:$0xff]  }
  0x2d   : > { %4042 = vmatpush3.bf16.msra.mxu1 %v4723_v22  ;;  %993 = vmatprep.mubr.bf16.mxu0 %v5101_v24  ;;  %v4817_v22 = vld [vmem:[%s6873_s1 + $0x210] sm:$0xff]  }
  0x2e   : > { %4043 = vmatprep.subr.bf16.mxu1 %v4724_v23  ;;  %1089 = vmatprep.mubr.bf16.mxu1 %v4728_v25  ;;  %v4824_v23 = vld [vmem:[%s6873_s1 + $0x248] sm:$0xff]   ;;  %v5296_v25 = vld [vmem:[%s5059_s30 + $0x104] ss:$16 sps:$4 sm:$0xff]  }
  0x2f   : > { %4154 = vmatpush3.bf16.msra.mxu0 %v4789_v56  ;;  %v4847_v56 = vld [vmem:[%s6873_s1 + $0x2c8] sm:$0xff]  }
  0x30   : > { %4155 = vmatprep.subr.bf16.mxu0 %v4794_v60  ;;  %v4848_v60 = vld [vmem:[%s6873_s1 + $0x288] sm:$0xff]  }
  0x31   : > { %4044 = vmatpush3.bf16.msra.mxu1 %v4725_v26  ;;  %v5299_v26 = vld [vmem:[%s5059_s30 + $0x8c] ss:$16 sps:$4 sm:$0xff]  }
  0x32   : > { %4045 = vmatprep.subr.bf16.mxu1 %v4732_v28  ;;  %v4825_v28 = vld [vmem:[%s6873_s1 + $0x208] sm:$0xff]  }
  0x33   : > { %4156 = vmatpush3.bf16.msra.mxu0 %v4795_v61  ;;  %v2917_v61 = vld [vmem:[%s6879_s7 + $0x10] sm:$0xff] }
  0x34   : > { %994 = vmatmul.mubr.bf16.gmra.mxu0 %v5110_v27  ;;  %1090 = vmatmul.mubr.bf16.gmra.mxu1 %v4731_v29  ;;  %v4826_v29 = vld [vmem:[%s6873_s1 + $0x240] sm:$0xff]  }
  0x35   : > { %4046 = vmatpush3.bf16.msra.mxu1 %v4733_v30  ;;  %1001 = vmatprep.mubr.bf16.mxu0 %v5123_v32  ;;  %v4831_v30 = vld [vmem:[%s6873_s1 + $0x2d8] sm:$0xff]  }
  0x36   : > { %4047 = vmatprep.subr.bf16.mxu1 %v4734_v31  ;;  %1097 = vmatprep.mubr.bf16.mxu1 %v4738_v33  ;;  %v4832_v31 = vld [vmem:[%s6873_s1 + $0x298] sm:$0xff]   ;;  %v5318_v33 = vld [vmem:[%s5059_s30 + $0x100] ss:$16 sps:$4 sm:$0xff]  }
  0x37   : > { %4157 = vmatprep.subr.bf16.mxu0 %v4802_v3  ;;  %v5392_v3 = vld [vmem:[%s5059_s30 + $0xc8] ss:$16 sps:$4 sm:$0xff]  }
  0x38   : > { %4158 = vmatpush3.bf16.msra.mxu0 %v4803_v6  ;;  %v2182_v6 = vld [vmem:[%s6878_s6 + $0x28] sm:$0xff] }
  0x39   : > { %4048 = vmatpush3.bf16.msra.mxu1 %v4735_v34  ;;  %4159 = vmatprep.subr.bf16.mxu0 %v4804_v7  ;;  %v5321_v34 = vld [vmem:[%s5059_s30 + $0x88] ss:$16 sps:$4 sm:$0xff]   ;;  %v4855_v7 = vld [vmem:[%s6873_s1 + $0x2c0] sm:$0xff]  }
  0x3a   : > { %4049 = vmatprep.subr.bf16.mxu1 %v4742_v37  ;;  %v2177_v37 = vld [vmem:[%s6878_s6] sm:$0xff] }
  0x3b   : > { %2211 = vperm.xlu0 %4698, %v2177_v37   ;;  %v2922_v37 = vld [vmem:[%s6879_s7 + $0x38] sm:$0xff] }
  0x3c   : > { %1002 = vmatmul.mubr.bf16.gmra.mxu0 %v5132_v35  ;;  %1098 = vmatmul.mubr.bf16.gmra.mxu1 %v4741_v36  ;;  %v4827_v36 = vld [vmem:[%s6873_s1 + $0x200] sm:$0xff]  }
  0x3d   : > { %4050 = vmatpush3.bf16.msra.mxu1 %v4743_v38  ;;  %1009 = vmatprep.mubr.bf16.mxu0 %v5145_v40  ;;  %v5330_v38 = vld [vmem:[%s5059_s30 + $0x124] ss:$16 sps:$4 sm:$0xff]  }
  0x3e   : > { %4051 = vmatprep.subr.bf16.mxu1 %v4744_v39  ;;  %1105 = vmatprep.mubr.bf16.mxu1 %v4748_v41  ;;  %v5333_v39 = vld [vmem:[%s5059_s30 + $0xac] ss:$16 sps:$4 sm:$0xff]   ;;  %v4839_v41 = vld [vmem:[%s6873_s1 + $0x2d0] sm:$0xff]  }
  0x3f   : > { %4160 = vmatpush3.bf16.msra.mxu0 %v4805_v8  ;;  %v4856_v8 = vld [vmem:[%s6873_s1 + $0x280] sm:$0xff]  }
  0x40   : > { %4161 = vmatprep.subr.bf16.mxu0 %v4812_v11  ;;  %v5407_v11 = vld [vmem:[%s5059_s30 + $0x164] ss:$16 sps:$4 sm:$0xff]  }
  0x41   : > { %4052 = vmatpush3.bf16.msra.mxu1 %v4745_v42  ;;  %v4840_v42 = vld [vmem:[%s6873_s1 + $0x290] sm:$0xff]  }
  0x42   : > { %4053 = vmatprep.subr.bf16.mxu1 %v4752_v44  ;;  %v2179_v44 = vld [vmem:[%s6878_s6 + $0x10] sm:$0xff] }
  0x43   : > { %4162 = vmatpush3.bf16.msra.mxu0 %v4814_v17  ;;  %2221 = vperm.xlu1 %4699, %v2179_v44   ;;  %v2184_v17 = vld [vmem:[%s6878_s6 + $0x38] sm:$0xff]  ;;  %v2186_v44 = vld [vmem:[%s6878_s6 + $0x48] sm:$0xff] }
  0x44   : > { %1010 = vmatmul.mubr.bf16.gmra.mxu0 %v5154_v43  ;;  %1106 = vmatmul.mubr.bf16.gmra.mxu1 %v4751_v45  ;;  %v2178_v45 = vld [vmem:[%s6878_s6 + $0x8] sm:$0xff] }
  0x45   : > { %4054 = vmatpush3.bf16.msra.mxu1 %v4753_v46  ;;  %1017 = vmatprep.mubr.bf16.mxu0 %v5164_v47  ;;  %v2180_v46 = vld [vmem:[%s6878_s6 + $0x18] sm:$0xff] }
  0x46   : > { %4055 = vmatprep.subr.bf16.mxu1 %v4754_v48  ;;  %1146 = vmatprep.mubr.bf16.mxu1 %v5170_v49  ;;  %v5355_v48 = vld [vmem:[%s5059_s30 + $0x120] ss:$16 sps:$4 sm:$0xff]  }
  0x47   : > { %4163 = vmatprep.subr.bf16.mxu0 %v4816_v18  ;;  %2216 = vperm.xlu0 %4698, %v2178_v45   ;;  %v4860_v18 = vld [vmem:[%s6873_s1 + $0x178] sm:$0xff]  }
  0x48   : > { %4164 = vmatpush3.bf16.msra.mxu0 %v4817_v22  ;;  %2226 = vperm.xlu1 %4699, %v2180_v46   ;;  %v5426_v22 = vld [vmem:[%s5059_s30 + $0x160] ss:$16 sps:$4 sm:$0xff]   ;;  %v5463_v45 = vld [vmem:[%s5059_s30 + $0x12c] ss:$16 sps:$4 sm:$0xff]  }
  0x49   : > { %4056 = vmatpush3.bf16.msra.mxu1 %v4755_v51  ;;  %4165 = vmatprep.subr.bf16.mxu0 %v4824_v23  ;;  %v5361_v51 = vld [vmem:[%s5059_s30 + $0x144] ss:$16 sps:$4 sm:$0xff]   ;;  %v5429_v23 = vld [vmem:[%s5059_s30 + $0xe8] ss:$16 sps:$4 sm:$0xff]  }
  0x4a   : > { %4265 = vmatprep.subr.bf16.mxu1 %v4762_v53  ;;  %v2915_v53 = vld [vmem:[%s6879_s7] sm:$0xff]  ;;  %v2187_v46 = vld [vmem:[%s6878_s6 + $0x50] sm:$0xff] }
  0x4b   : > { %2949 = vperm.xlu0 %4698, %v2915_v53   ;;  %v4864_v53 = vld [vmem:[%s6873_s1 + $0x170] sm:$0xff]  }
  0x4c   : > { %1018 = vmatmul.mubr.bf16.gmra.mxu0 %v5188_v54  ;;  %1147 = vmatmul.mubr.bf16.vlgmr.msra.gmra.mxu1 %v5181_v52 }
  0x4d   : > { %4266 = vmatpush3.bf16.msra.mxu1 %v4763_v55  ;;  %1025 = vmatprep.mubr.bf16.mxu0 %v5197_v57  ;;  %v2916_v55 = vld [vmem:[%s6879_s7 + $0x8] sm:$0xff] }
  0x4e   : > { %1154 = vmatprep.mubr.bf16.mxu1 %v5200_v58  ;;  %4267 = vmatprep.subr.bf16.mxu1 %v4776_v59  ;;  %v5373_v59 = vld [vmem:[%s5059_s30 + $0xcc] ss:$16 sps:$4 sm:$0xff]  }
  0x4f   : > { %4166 = vmatpush3.bf16.msra.mxu0 %v4825_v28  ;;  %2954 = vperm.xlu1 %4699, %v2916_v55   ;;  %v2919_v28 = vld [vmem:[%s6879_s7 + $0x20] sm:$0xff]  ;;  %v2188_v55 = vld [vmem:[%s6878_s6 + $0x58] sm:$0xff] }
  0x50   : > { %4167 = vmatprep.subr.bf16.mxu0 %v4826_v29  ;;  %2959 = vperm.xlu0 %4698, %v2917_v61   ;;  %v4862_v29 = vld [vmem:[%s6873_s1 + $0x1f8] sm:$0xff]   ;;  %v4868_v61 = vld [vmem:[%s6873_s1 + $0x168] sm:$0xff]  }
  0x51   : > { %4268 = vmatpush3.bf16.msra.mxu1 %v4777_v62  ;;  %v2918_v62 = vld [vmem:[%s6879_s7 + $0x18] sm:$0xff] }
  0x52   : > { %4269 = vmatprep.subr.bf16.mxu1 %v4792_v1  ;;  %v5389_v1 = vld [vmem:[%s5059_s30 + $0x140] ss:$16 sps:$4 sm:$0xff]  }
  0x53   : > { %4168 = vmatpush3.bf16.msra.mxu0 %v4827_v36  ;;  %2964 = vperm.xlu1 %4699, %v2918_v62   ;;  %v2921_v36 = vld [vmem:[%s6879_s7 + $0x30] sm:$0xff]  ;;  %v5497_v62 = vld [vmem:[%s5059_s30 + $0x14c] ss:$16 sps:$4 sm:$0xff]  }
  0x54   : > { %1026 = vmatmul.mubr.bf16.gmra.mxu0 %v5219_v63  ;;  %1155 = vmatmul.mubr.bf16.gmra.mxu1 %v5222_v0 }
  0x55   : > { %1033 = vmatprep.mubr.bf16.mxu0 %v5228_v2  ;;  %1162 = vmatprep.mubr.bf16.mxu1 %v5234_v4 }
  0x56   : > { %4270 = vmatpush3.bf16.msra.mxu1 %v4793_v5  ;;  %v2181_v5 = vld [vmem:[%s6878_s6 + $0x20] sm:$0xff]  ;;  %4377 = vmatprep.subr.bf16.mxu0 %v4860_v18  ;;  %v4874_v18 = vld [vmem:[%s6873_s1 + $0x158] sm:$0xff]  }
  0x57   : > { %4271 = vmatprep.subr.bf16.mxu1 %v4813_v14  ;;  %v5410_v14 = vld [vmem:[%s5059_s30 + $0xec] ss:$16 sps:$4 sm:$0xff]   ;;  %2231 = vperm.xlu0 %4698, %v2181_v5   ;;  %v2925_v5 = vld [vmem:[%s6879_s7 + $0x50] sm:$0xff] }
  0x58   : > { %2236 = vperm.xlu1 %4699, %v2182_v6   ;;  %v4869_v6 = vld [vmem:[%s6873_s1 + $0x128] sm:$0xff]  }
  0x5a   : > { %4272 = vmatpush3.bf16.msra.mxu1 %v4815_v16  ;;  %v2183_v16 = vld [vmem:[%s6878_s6 + $0x30] sm:$0xff] }
  0x5b   : > { %4273 = vmatprep.subr.bf16.mxu1 %v4831_v30  ;;  %2241 = vperm.xlu0 %4698, %v2183_v16   ;;  %v2920_v30 = vld [vmem:[%s6879_s7 + $0x28] sm:$0xff] }
  0x5c   : > { %1034 = vmatmul.mubr.bf16.gmra.mxu0 %v5253_v9  ;;  %1163 = vmatmul.mubr.bf16.gmra.mxu1 %v5256_v10  ;;  %v5516_v16 = vld [vmem:[%s5059_s30 + $0x148] ss:$16 sps:$4 sm:$0xff]  }
  0x5d   : > { %1041 = vmatprep.mubr.bf16.mxu0 %v5262_v13  ;;  %1170 = vmatprep.mubr.bf16.mxu1 %v5268_v15 }
  0x5e   : > { %4274 = vmatpush3.bf16.msra.mxu1 %v4832_v31  ;;  %2246 = vperm.xlu1 %4699, %v2184_v17   ;;  %v5441_v31 = vld [vmem:[%s5059_s30 + $0x10c] ss:$16 sps:$4 sm:$0xff]   ;;  %v4873_v17 = vld [vmem:[%s6873_s1 + $0x120] sm:$0xff]  }
  0x5f   : > { %4275 = vmatprep.subr.bf16.mxu1 %v4839_v41  ;;  %2969 = vperm.xlu0 %4698, %v2919_v28   ;;  %v2185_v41 = vld [vmem:[%s6878_s6 + $0x40] sm:$0xff]  ;;  %v5531_v28 = vld [vmem:[%s5059_s30 + $0x16c] ss:$16 sps:$4 sm:$0xff]  }
  0x62   : > { %4276 = vmatpush3.bf16.msra.mxu1 %v4840_v42  ;;  %2974 = vperm.xlu1 %4699, %v2920_v30   ;;  %v5457_v42 = vld [vmem:[%s5059_s30 + $0x108] ss:$16 sps:$4 sm:$0xff]  }
  0x63   : > { %4277 = vmatprep.subr.bf16.mxu1 %v4847_v56  ;;  %2979 = vperm.xlu0 %4698, %v2921_v36   ;;  %v4865_v56 = vld [vmem:[%s6873_s1 + $0x130] sm:$0xff]   ;;  %v4876_v30 = vld [vmem:[%s6873_s1 + $0x118] sm:$0xff]  }
  0x64   : > { %1042 = vmatmul.mubr.bf16.gmra.mxu0 %v5284_v19  ;;  %1171 = vmatmul.mubr.bf16.gmra.mxu1 %v5287_v21  ;;  %v4878_v36 = vld [vmem:[%s6873_s1 + $0x150] sm:$0xff]  }
  0x65   : > { %1049 = vmatprep.mubr.bf16.mxu0 %v5296_v25  ;;  %1178 = vmatprep.mubr.bf16.mxu1 %v5299_v26 }
  0x66   : > { %4278 = vmatpush3.bf16.msra.mxu1 %v4848_v60  ;;  %2984 = vperm.xlu1 %4699, %v2922_v37   ;;  %v5485_v60 = vld [vmem:[%s5059_s30 + $0x128] ss:$16 sps:$4 sm:$0xff]  }
  0x67   : > { %4279 = vmatprep.subr.bf16.mxu1 %v4855_v7  ;;  %2251 = vperm.xlu0 %4698, %v2185_v41   ;;  %v4872_v7 = vld [vmem:[%s6873_s1 + $0x160] sm:$0xff]   ;;  %v2192_v37 = vld [vmem:[%s6878_s6 + $0x78] sm:$0xff] }
  0x68   : > { %v5550_v41 = vld [vmem:[%s5059_s30 + $0x168] ss:$16 sps:$4 sm:$0xff]  }
  0x6a   : > { %4280 = vmatpush3.bf16.msra.mxu1 %v4856_v8  ;;  %2256 = vperm.xlu1 %4699, %v2186_v44   ;;  %v2926_v8 = vld [vmem:[%s6879_s7 + $0x58] sm:$0xff]  ;;  %v4879_v44 = vld [vmem:[%s6873_s1 + $0x110] sm:$0xff]  }
  0x6b   : > { %4489 = vmatprep.subr.bf16.mxu1 %v4862_v29  ;;  %2261 = vperm.xlu0 %4698, %v2187_v46   ;;  %v2191_v29 = vld [vmem:[%s6878_s6 + $0x70] sm:$0xff]  ;;  %v4880_v46 = vld [vmem:[%s6873_s1 + $0x148] sm:$0xff]  }
  0x6c   : > { %1050 = vmatmul.mubr.bf16.gmra.mxu0 %v5318_v33  ;;  %1179 = vmatmul.mubr.bf16.gmra.mxu1 %v5321_v34 }
  0x6d   : > { %1057 = vmatprep.mubr.bf16.mxu0 %v5330_v38  ;;  %1186 = vmatprep.mubr.bf16.mxu1 %v5333_v39 }
  0x6e   : > { %2266 = vperm.xlu1 %4699, %v2188_v55   ;;  %v2930_v55 = vld [vmem:[%s6879_s7 + $0x78] sm:$0xff] }
  0x74   : > { %1058 = vmatmul.mubr.bf16.gmra.mxu0 %v5355_v48  ;;  %1187 = vmatmul.mubr.bf16.gmra.mxu1 %v5358_v50 }
  0x75   : > { %1065 = vmatprep.mubr.bf16.mxu0 %v5361_v51  ;;  %1194 = vmatprep.mubr.bf16.mxu1 %v5373_v59 }
  0x7c   : > { %1066 = vmatmul.mubr.bf16.gmra.mxu0 %v5389_v1  ;;  %1195 = vmatmul.mubr.bf16.gmra.mxu1 %v5392_v3 }
  0x7d   : > { %1073 = vmatprep.mubr.bf16.mxu0 %v5407_v11  ;;  %1202 = vmatprep.mubr.bf16.mxu1 %v5410_v14 }
  0x84   : > { %1074 = vmatmul.mubr.bf16.gmra.mxu0 %v5426_v22  ;;  %1203 = vmatmul.mubr.bf16.gmra.mxu1 %v5429_v23 }
  0x85   : > { %1210 = vmatprep.mubr.bf16.mxu1 %v5441_v31  ;;  %1629 = vmatprep.mubr.bf16.mxu0 %v5068_v12  ;;  %v4861_v12 = vld [vmem:[%s6873_s1 + $0x138] sm:$0xff]  }
  0x8c   : > { %1211 = vmatmul.mubr.bf16.gmra.mxu1 %v5457_v42  ;;  %1630 = vmatmul.mubr.bf16.vlgmr.msra.gmra.mxu0 %v5091_v20  ;;  %v2923_v20 = vld [vmem:[%s6879_s7 + $0x40] sm:$0xff] }
  0x8d   : > { %1218 = vmatprep.mubr.bf16.mxu1 %v5463_v45  ;;  %1637 = vmatprep.mubr.bf16.mxu0 %v5101_v24  ;;  %v2924_v24 = vld [vmem:[%s6879_s7 + $0x48] sm:$0xff] }
  0x8e   : > { %4378 = vmatpush3.bf16.msra.mxu0 %v4861_v12  ;;  %2989 = vperm.xlu0 %4698, %v2923_v20   ;;  %v5565_v12 = vld [vmem:[%s5059_s30 + $0x18c] ss:$16 sps:$4 sm:$0xff]   ;;  %v4882_v20 = vld [vmem:[%s6873_s1 + $0x140] sm:$0xff]  }
  0x8f   : > { %4379 = vmatprep.subr.bf16.mxu0 %v4864_v53  ;;  %2994 = vperm.xlu1 %4699, %v2924_v24   ;;  %v2929_v53 = vld [vmem:[%s6879_s7 + $0x70] sm:$0xff]  ;;  %v2193_v24 = vld [vmem:[%s6878_s6 + $0x80] sm:$0xff] }
  0x92   : > { %4380 = vmatpush3.bf16.msra.mxu0 %v4865_v56  ;;  %2999 = vperm.xlu0 %4698, %v2925_v5   ;;  %v4881_v56 = vld [vmem:[%s6873_s1 + $0x108] sm:$0xff]  }
  0x93   : > { %4381 = vmatprep.subr.bf16.mxu0 %v4868_v61  ;;  %3004 = vperm.xlu1 %4699, %v2926_v8   ;;  %v4883_v61 = vld [vmem:[%s6873_s1 + $0x100] sm:$0xff]   ;;  %v5590_v5 = vld [vmem:[%s5059_s30 + $0x188] ss:$16 sps:$4 sm:$0xff]  }
  0x94   : > { %1219 = vmatmul.mubr.bf16.gmra.mxu1 %v5485_v60  ;;  %1638 = vmatmul.mubr.bf16.gmra.mxu0 %v5110_v27  ;;  %v2189_v27 = vld [vmem:[%s6878_s6 + $0x60] sm:$0xff] }
  0x95   : > { %1226 = vmatprep.mubr.bf16.mxu1 %v5497_v62  ;;  %1645 = vmatprep.mubr.bf16.mxu0 %v5123_v32  ;;  %v2190_v32 = vld [vmem:[%s6878_s6 + $0x68] sm:$0xff]  ;;  %v2931_v8 = vld [vmem:[%s6879_s7 + $0x80] sm:$0xff] }
  0x96   : > { %4382 = vmatpush3.bf16.msra.mxu0 %v4869_v6  ;;  %2271 = vperm.xlu0 %4698, %v2189_v27   ;;  %v2194_v6 = vld [vmem:[%s6878_s6 + $0x88] sm:$0xff] }
  0x97   : > { %4383 = vmatprep.subr.bf16.mxu0 %v4872_v7  ;;  %2276 = vperm.xlu1 %4699, %v2190_v32   ;;  %v2196_v7 = vld [vmem:[%s6878_s6 + $0x98] sm:$0xff]  ;;  %v2197_v32 = vld [vmem:[%s6878_s6 + $0xa0] sm:$0xff] }
  0x98   : > { %v5618_v27 = vld [vmem:[%s5059_s30 + $0x1cc] ss:$16 sps:$4 sm:$0xff]  }
  0x9a   : > { %4384 = vmatpush3.bf16.msra.mxu0 %v4873_v17  ;;  %2281 = vperm.xlu0 %4698, %v2191_v29   ;;  %v5612_v17 = vld [vmem:[%s5059_s30 + $0x1a8] ss:$16 sps:$4 sm:$0xff]  }
  0x9b   : > { %4385 = vmatprep.subr.bf16.mxu0 %v4874_v18  ;;  %2286 = vperm.xlu1 %4699, %v2192_v37   ;;  %v2934_v18 = vld [vmem:[%s6879_s7 + $0x98] sm:$0xff]  ;;  %v2935_v37 = vld [vmem:[%s6879_s7 + $0xa0] sm:$0xff] }
  0x9c   : > { %1227 = vmatmul.mubr.bf16.gmra.mxu1 %v5516_v16  ;;  %1646 = vmatmul.mubr.bf16.gmra.mxu0 %v5132_v35  ;;  %v2927_v35 = vld [vmem:[%s6879_s7 + $0x60] sm:$0xff]  ;;  %v5634_v29 = vld [vmem:[%s5059_s30 + $0x1c8] ss:$16 sps:$4 sm:$0xff]  }
  0x9d   : > { %1234 = vmatprep.mubr.bf16.mxu1 %v5531_v28  ;;  %1653 = vmatprep.mubr.bf16.mxu0 %v5145_v40  ;;  %v2928_v40 = vld [vmem:[%s6879_s7 + $0x68] sm:$0xff] }
  0x9e   : > { %4386 = vmatpush3.bf16.msra.mxu0 %v4876_v30  ;;  %3009 = vperm.xlu0 %4698, %v2927_v35   ;;  %v5640_v30 = vld [vmem:[%s5059_s30 + $0x1ec] ss:$16 sps:$4 sm:$0xff]   ;;  %v2937_v35 = vld [vmem:[%s6879_s7 + $0xb0] sm:$0xff] }
  0x9f   : > { %4387 = vmatprep.subr.bf16.mxu0 %v4878_v36  ;;  %3014 = vperm.xlu1 %4699, %v2928_v40   ;;  %v2200_v36 = vld [vmem:[%s6878_s6 + $0xb8] sm:$0xff]  ;;  %v2202_v40 = vld [vmem:[%s6878_s6 + $0xc8] sm:$0xff] }
  0xa2   : > { %4388 = vmatpush3.bf16.msra.mxu0 %v4879_v44  ;;  %3019 = vperm.xlu0 %4698, %v2929_v53   ;;  %v5656_v44 = vld [vmem:[%s5059_s30 + $0x1e8] ss:$16 sps:$4 sm:$0xff]  }
  0xa3   : > { %4389 = vmatprep.subr.bf16.mxu0 %v4880_v46  ;;  %3024 = vperm.xlu1 %4699, %v2930_v55   ;;  %v2201_v46 = vld [vmem:[%s6878_s6 + $0xc0] sm:$0xff]  ;;  %v2204_v53 = vld [vmem:[%s6878_s6 + $0xd8] sm:$0xff]  ;;  %v4867_v55 = vld [vmem:[%s6873_s1 + $0x1b0] sm:$0xff]  }
  0xa4   : > { %1235 = vmatmul.mubr.bf16.gmra.mxu1 %v5550_v41  ;;  %1654 = vmatmul.mubr.bf16.gmra.mxu0 %v5154_v43  ;;  %v5596_v43 = vld [vmem:[%s5059_s30 + $0x1ac] ss:$16 sps:$4 sm:$0xff]  }
  0xa5   : > { %1242 = vmatprep.mubr.bf16.mxu1 %v5565_v12  ;;  %1661 = vmatprep.mubr.bf16.mxu0 %v5164_v47  ;;  %v2195_v47 = vld [vmem:[%s6878_s6 + $0x90] sm:$0xff] }
  0xa6   : > { %4390 = vmatpush3.bf16.msra.mxu0 %v4881_v56  ;;  %2291 = vperm.xlu0 %4698, %v2193_v24   ;;  %v4875_v56 = vld [vmem:[%s6873_s1 + $0x1e0] sm:$0xff]  }
  0xa7   : > { %4391 = vmatprep.subr.bf16.mxu0 %v4882_v20  ;;  %2296 = vperm.xlu1 %4699, %v2194_v6   ;;  %v2941_v20 = vld [vmem:[%s6879_s7 + $0xd0] sm:$0xff]  ;;  %v4877_v24 = vld [vmem:[%s6873_s1 + $0x1a0] sm:$0xff]  }
  0xa8   : > { %v4886_v6 = vld [vmem:[%s6873_s1 + $0x1d0] sm:$0xff]  }
  0xaa   : > { %4392 = vmatpush3.bf16.msra.mxu0 %v4883_v61  ;;  %2301 = vperm.xlu0 %4698, %v2195_v47   ;;  %v2942_v61 = vld [vmem:[%s6879_s7 + $0xd8] sm:$0xff]  ;;  %v2207_v47 = vld [vmem:[%s6878_s6 + $0xf0] sm:$0xff] }
  0xab   : > { %2306 = vperm.xlu1 %4699, %v2196_v7   ;;  %v4887_v7 = vld [vmem:[%s6873_s1 + $0x190] sm:$0xff]  }
  0xac   : > { %1243 = vmatmul.mubr.bf16.gmra.mxu1 %v5590_v5  ;;  %1662 = vmatmul.mubr.bf16.gmra.mxu0 %v5188_v54  ;;  %v2932_v54 = vld [vmem:[%s6879_s7 + $0x88] sm:$0xff] }
  0xad   : > { %1250 = vmatprep.mubr.bf16.mxu1 %v5596_v43  ;;  %1669 = vmatprep.mubr.bf16.mxu0 %v5197_v57  ;;  %v2933_v57 = vld [vmem:[%s6879_s7 + $0x90] sm:$0xff] }
  0xae   : > { %3029 = vperm.xlu0 %4698, %v2931_v8   ;;  %v5764_v8 = vld [vmem:[%s5059_s30 + $0x184] ss:$16 sps:$4 sm:$0xff]  }
  0xaf   : > { %3034 = vperm.xlu1 %4699, %v2932_v54   ;;  %v4891_v54 = vld [vmem:[%s6873_s1 + $0x180] sm:$0xff]  }
  0xb2   : > { %3039 = vperm.xlu0 %4698, %v2933_v57  }
  0xb3   : > { %3044 = vperm.xlu1 %4699, %v2934_v18  }
  0xb4   : > { %1251 = vmatmul.mubr.bf16.gmra.mxu1 %v5612_v17  ;;  %1670 = vmatmul.mubr.bf16.gmra.mxu0 %v5219_v63  ;;  %v2198_v63 = vld [vmem:[%s6878_s6 + $0xa8] sm:$0xff] }
  0xb5   : > { %1258 = vmatprep.mubr.bf16.mxu1 %v5618_v27  ;;  %1677 = vmatprep.mubr.bf16.mxu0 %v5228_v2  ;;  %v2199_v2 = vld [vmem:[%s6878_s6 + $0xb0] sm:$0xff] }
  0xb6   : > { %2311 = vperm.xlu0 %4698, %v2197_v32   ;;  %v5772_v32 = vld [vmem:[%s5059_s30 + $0x180] ss:$16 sps:$4 sm:$0xff]  }
  0xb7   : > { %2316 = vperm.xlu1 %4699, %v2198_v63  }
  0xba   : > { %2321 = vperm.xlu0 %4698, %v2199_v2  }
  0xbb   : > { %2326 = vperm.xlu1 %4699, %v2200_v36  }
  0xbc   : > { %1259 = vmatmul.mubr.bf16.gmra.mxu1 %v5634_v29  ;;  %1678 = vmatmul.mubr.bf16.gmra.mxu0 %v5253_v9  ;;  %v2936_v9 = vld [vmem:[%s6879_s7 + $0xa8] sm:$0xff] }
  0xbd   : > { %1266 = vmatprep.mubr.bf16.mxu1 %v5640_v30  ;;  %1685 = vmatprep.mubr.bf16.mxu0 %v5262_v13  ;;  %v2938_v13 = vld [vmem:[%s6879_s7 + $0xb8] sm:$0xff] }
  0xbe   : > { %3049 = vperm.xlu0 %4698, %v2935_v37  }
  0xbf   : > { %3054 = vperm.xlu1 %4699, %v2936_v9  }
  0xc2   : > { %3059 = vperm.xlu0 %4698, %v2937_v35  }
  0xc3   : > { %3064 = vperm.xlu1 %4699, %v2938_v13  }
  0xc4   : > { %1267 = vmatmul.mubr.bf16.gmra.mxu1 %v5656_v44  ;;  %1686 = vmatmul.mubr.bf16.gmra.mxu0 %v5284_v19  ;;  %v4863_v19 = vld [vmem:[%s6873_s1 + $0x1b8] sm:$0xff]  }
  0xc5   : > { %1693 = vmatprep.mubr.bf16.mxu0 %v5296_v25  ;;  %1790 = vmatprep.mubr.bf16.mxu1 %v5170_v49  ;;  %v4866_v25 = vld [vmem:[%s6873_s1 + $0x1f0] sm:$0xff]  }
  0xc6   : > { %2331 = vperm.xlu0 %4698, %v2201_v46   ;;  %v2203_v49 = vld [vmem:[%s6878_s6 + $0xd0] sm:$0xff] }
  0xc7   : > { %2336 = vperm.xlu1 %4699, %v2202_v40  }
  0xca   : > { %2341 = vperm.xlu0 %4698, %v2203_v49  }
  0xcb   : > { %2346 = vperm.xlu1 %4699, %v2204_v53  }
  0xcc   : > { %1694 = vmatmul.mubr.bf16.gmra.mxu0 %v5318_v33  ;;  %1791 = vmatmul.mubr.bf16.vlgmr.msra.gmra.mxu1 %v5181_v52  ;;  %v4870_v52 = vld [vmem:[%s6873_s1 + $0x1e8] sm:$0xff]   ;;  %v2939_v33 = vld [vmem:[%s6879_s7 + $0xc0] sm:$0xff] }
  0xcd   : > { %4490 = vmatpush3.bf16.msra.mxu1 %v4863_v19  ;;  %1701 = vmatprep.mubr.bf16.mxu0 %v5330_v38  ;;  %v2940_v38 = vld [vmem:[%s6879_s7 + $0xc8] sm:$0xff]  ;;  %v5790_v19 = vld [vmem:[%s5059_s30 + $0x1a0] ss:$16 sps:$4 sm:$0xff]  }
  0xce   : > { %1798 = vmatprep.mubr.bf16.mxu1 %v5200_v58  ;;  %4491 = vmatprep.subr.bf16.mxu1 %v4866_v25  ;;  %v4871_v58 = vld [vmem:[%s6873_s1 + $0x1a8] sm:$0xff]  }
  0xcf   : > { %3069 = vperm.xlu0 %4698, %v2939_v33   ;;  %3074 = vperm.xlu1 %4699, %v2940_v38  }
  0xd1   : > { %4492 = vmatpush3.bf16.msra.mxu1 %v4867_v55 }
  0xd2   : > { %4493 = vmatprep.subr.bf16.mxu1 %v4870_v52 }
  0xd3   : > { %3079 = vperm.xlu0 %4698, %v2941_v20   ;;  %3084 = vperm.xlu1 %4699, %v2942_v61  }
  0xd4   : > { %1702 = vmatmul.mubr.bf16.gmra.mxu0 %v5355_v48  ;;  %1799 = vmatmul.mubr.bf16.gmra.mxu1 %v5222_v0  ;;  %v4884_v0 = vld [vmem:[%s6873_s1 + $0x1d8] sm:$0xff]  }
  0xd5   : > { %1709 = vmatprep.mubr.bf16.mxu0 %v5361_v51  ;;  %1806 = vmatprep.mubr.bf16.mxu1 %v5234_v4  ;;  %v2205_v4 = vld [vmem:[%s6878_s6 + $0xe0] sm:$0xff]  ;;  %v4885_v48 = vld [vmem:[%s6873_s1 + $0x198] sm:$0xff]   ;;  %v2206_v51 = vld [vmem:[%s6878_s6 + $0xe8] sm:$0xff] }
  0xd6   : > { %4494 = vmatpush3.bf16.msra.mxu1 %v4871_v58 }
  0xd7   : > { %4495 = vmatprep.subr.bf16.mxu1 %v4875_v56  ;;  %2351 = vperm.xlu0 %4698, %v2205_v4  }
  0xd8   : > { %2356 = vperm.xlu1 %4699, %v2206_v51  }
  0xda   : > { %4496 = vmatpush3.bf16.msra.mxu1 %v4877_v24  ;;  %v5808_v24 = vld [vmem:[%s5059_s30 + $0x1c0] ss:$16 sps:$4 sm:$0xff]  }
  0xdb   : > { %4497 = vmatprep.subr.bf16.mxu1 %v4884_v0  ;;  %2361 = vperm.xlu0 %4698, %v2207_v47  }
  0xdc   : > { %1710 = vmatmul.mubr.bf16.gmra.mxu0 %v5389_v1  ;;  %1807 = vmatmul.mubr.bf16.gmra.mxu1 %v5256_v10  ;;  %v2208_v10 = vld [vmem:[%s6878_s6 + $0xf8] sm:$0xff]  ;;  %v4888_v1 = vld [vmem:[%s6873_s1 + $0x1c8] sm:$0xff]  }
  0xdd   : > { %1717 = vmatprep.mubr.bf16.mxu0 %v5407_v11  ;;  %1814 = vmatprep.mubr.bf16.mxu1 %v5268_v15  ;;  %v4889_v15 = vld [vmem:[%s6873_s1 + $0x188] sm:$0xff]   ;;  %v4890_v11 = vld [vmem:[%s6873_s1 + $0x1c0] sm:$0xff]  }
  0xde   : > { %4498 = vmatpush3.bf16.msra.mxu1 %v4885_v48  ;;  %2366 = vperm.xlu1 %4699, %v2208_v10  }
  0xdf   : > { %4499 = vmatprep.subr.bf16.mxu1 %v4886_v6 }
  0xe2   : > { %4500 = vmatpush3.bf16.msra.mxu1 %v4887_v7 }
  0xe3   : > { %4501 = vmatprep.subr.bf16.mxu1 %v4888_v1 }
  0xe4   : > { %1718 = vmatmul.mubr.bf16.gmra.mxu0 %v5426_v22  ;;  %1815 = vmatmul.mubr.bf16.gmra.mxu1 %v5287_v21  ;;  %v5777_v21 = vld [vmem:[%s5059_s30 + $0x1a4] ss:$16 sps:$4 sm:$0xff]  }
  0xe5   : > { %1725 = vmatprep.mubr.bf16.mxu0 %v5764_v8  ;;  %1822 = vmatprep.mubr.bf16.mxu1 %v5299_v26 }
  0xe6   : > { %4502 = vmatpush3.bf16.msra.mxu1 %v4889_v15 }
  0xe7   : > { %4503 = vmatprep.subr.bf16.mxu1 %v4890_v11 }
  0xea   : > { %4504 = vmatpush3.bf16.msra.mxu1 %v4891_v54  ;;  %v5826_v54 = vld [vmem:[%s5059_s30 + $0x1e0] ss:$16 sps:$4 sm:$0xff]  }
  0xec   : > { %v3945_v57 = vpop.f32.mrf.mxu0  ;;  %v4017_v18 = vpop.f32.mrf.mxu1  ;;  %1726 = vmatmul.mubr.bf16.gmra.mxu0 %v5772_v32  ;;  %1823 = vmatmul.mubr.bf16.gmra.mxu1 %v5321_v34 }
  0xed   : > { %1733 = vmatprep.mubr.bf16.mxu0 %v5777_v21  ;;  %1830 = vmatprep.mubr.bf16.mxu1 %v5333_v39  ;;  %v5795_v39 = vld [vmem:[%s5059_s30 + $0x1c4] ss:$16 sps:$4 sm:$0xff]  }
  0xee   : > { %v3946_v26 = vpop.f32.mrf.mxu0  ;;  %v4018_v22 = vpop.f32.mrf.mxu1 }
  0xef   : > { %v5781_v63 = vadd.f32 %v3946_v26, %v3945_v57  ;;  %v5783_v2 = vadd.f32 %v4018_v22, %v4017_v18 }
  0xf0   : > { %v3948_v36 = vpop.f32.mrf.mxu0  ;;  %v4020_v37 = vpop.f32.mrf.mxu1 }
  0xf2   : > { %v3949_v9 = vpop.f32.mrf.mxu0  ;;  %v4021_v35 = vpop.f32.mrf.mxu1 }
  0xf3   : > { %v5785_v13 = vadd.f32 %v3949_v9, %v3948_v36  ;;  %v5787_v34 = vadd.f32 %v4021_v35, %v4020_v37 }
  0xf4   : > { %v3951_v46 = vpop.f32.mrf.mxu0  ;;  %v4023_v40 = vpop.f32.mrf.mxu1  ;;  %1734 = vmatmul.mubr.bf16.gmra.mxu0 %v5790_v19  ;;  %1831 = vmatmul.mubr.bf16.gmra.mxu1 %v5358_v50 }
  0xf5   : > { %1741 = vmatprep.mubr.bf16.mxu0 %v5795_v39  ;;  %1838 = vmatprep.mubr.bf16.mxu1 %v5373_v59  ;;  %v5813_v59 = vld [vmem:[%s5059_s30 + $0x1e4] ss:$16 sps:$4 sm:$0xff]  }
  0xf6   : > { %v3952_v25 = vpop.f32.mrf.mxu0  ;;  %v4024_v49 = vpop.f32.mrf.mxu1 }
  0xf7   : > { %v5799_v53 = vadd.f32 %v3952_v25, %v3951_v46  ;;  %v5801_v55 = vadd.f32 %v4024_v49, %v4023_v40  ;;  %v4909_v25 = vld [vmem:[%s5059_s30] ss:$16 sps:$4 sm:$0xff]   ;;  %v4910_v49 = vld [vmem:[%s5059_s30 + $0x24] ss:$16 sps:$4 sm:$0xff]  }
  0xf8   : > { %v3954_v52 = vpop.f32.mrf.mxu0  ;;  %v4026_v33 = vpop.f32.mrf.mxu1 }
  0xfa   : > { %v3955_v38 = vpop.f32.mrf.mxu0  ;;  %v4027_v58 = vpop.f32.mrf.mxu1 }
  0xfb   : > { %v5803_v56 = vadd.f32 %v3955_v38, %v3954_v52  ;;  %v5805_v50 = vadd.f32 %v4027_v58, %v4026_v33  ;;  %v2943_v52 = vld [vmem:[%s6879_s7 + $0xe0] sm:$0xff] }
  0xfc   : > { %v3957_v20 = vpop.f32.mrf.mxu0  ;;  %v4029_v61 = vpop.f32.mrf.mxu1  ;;  %1742 = vmatmul.mubr.bf16.gmra.mxu0 %v5808_v24  ;;  %1839 = vmatmul.mubr.bf16.gmra.mxu1 %v5392_v3 }
  0xfd   : > { %1749 = vmatprep.mubr.bf16.mxu0 %v5813_v59  ;;  %1846 = vmatprep.mubr.bf16.mxu1 %v5410_v14  ;;  %v4908_v14 = vld [vmem:[%s5059_s30 + $0x4] ss:$16 sps:$4 sm:$0xff]  }
  0xfe   : > { %v3958_v0 = vpop.f32.mrf.mxu0  ;;  %v4030_v4 = vpop.f32.mrf.mxu1  ;;  %3089 = vperm.xlu0 %4698, %v2943_v52  }
  0xff   : > { %v5817_v48 = vadd.f32 %v3958_v0, %v3957_v20  ;;  %v5819_v51 = vadd.f32 %v4030_v4, %v4029_v61 }
 0x100   : > { %v3960_v6 = vpop.f32.mrf.mxu0  ;;  %v4032_v47 = vpop.f32.mrf.mxu1 }
 0x102   : > { %v3961_v7 = vpop.f32.mrf.mxu0  ;;  %v4033_v10 = vpop.f32.mrf.mxu1 }
 0x103   : > { %v5821_v1 = vadd.f32 %v3961_v7, %v3960_v6  ;;  %v5823_v3 = vadd.f32 %v4033_v10, %v4032_v47 }
 0x104   : > { %v3963_v15 = vpop.f32.mrf.mxu0  ;;  %v4035_v11 = vpop.f32.mrf.mxu1  ;;  %1750 = vmatmul.mubr.bf16.gmra.mxu0 %v5826_v54  ;;  %1847 = vmatmul.mubr.bf16.gmra.mxu1 %v5429_v23 }
 0x105   : > { %1854 = vmatprep.mubr.bf16.mxu1 %v5441_v31  ;;  %2625 = vmatprep.mubr.bf16.mxu0 %v4908_v14  ;;  %v2946_v14 = vld [vmem:[%s6879_s7 + $0xf8] sm:$0xff] }
 0x106   : > { %v3964_v57 = vpop.f32.mrf.mxu0  ;;  %v4036_v18 = vpop.f32.mrf.mxu1 }
 0x107   : > { %v5832_v26 = vadd.f32 %v3964_v57, %v3963_v15  ;;  %v5834_v22 = vadd.f32 %v4036_v18, %v4035_v11  ;;  %v4911_v11 = vld [vmem:[%s5059_s30 + $0x20] ss:$16 sps:$4 sm:$0xff]   ;;  %v4912_v18 = vld [vmem:[%s5059_s30 + $0x44] ss:$16 sps:$4 sm:$0xff]  }
 0x108   : > { %v3966_v36 = vpop.f32.mrf.mxu0  ;;  %v4038_v37 = vpop.f32.mrf.mxu1 }
 0x10a   : > { %v3967_v9 = vpop.f32.mrf.mxu0  ;;  %v4039_v35 = vpop.f32.mrf.mxu1 }
 0x10b   : > { %v5836_v46 = vadd.f32 %v3967_v9, %v3966_v36  ;;  %v5838_v40 = vadd.f32 %v4039_v35, %v4038_v37 }
 0x10c   : > { %v3969_v23 = vpop.f32.mrf.mxu0  ;;  %v4057_v31 = vpop.f32.mrf.mxu1  ;;  %1855 = vmatmul.mubr.bf16.gmra.mxu1 %v5457_v42  ;;  %2626 = vmatmul.mubr.bf16.vlgmr.msra.gmra.mxu0 %v4909_v25  ;;  %v2944_v42 = vld [vmem:[%s6879_s7 + $0xe8] sm:$0xff] }
 0x10d   : > { %1862 = vmatprep.mubr.bf16.mxu1 %v5463_v45  ;;  %2633 = vmatprep.mubr.bf16.mxu0 %v4910_v49 }
 0x10e   : > { %v3970_v33 = vpop.f32.mrf.mxu0  ;;  %v4058_v38 = vpop.f32.mrf.mxu1  ;;  %3094 = vperm.xlu1 %4699, %v2944_v42   ;;  %v4913_v42 = vld [vmem:[%s5059_s30 + $0x40] ss:$16 sps:$4 sm:$0xff]  }
 0x10f   : > { %v5847_v58 = vadd.f32 %v3970_v33, %v3969_v23  ;;  %v4059_v20 = vadd.f32 %v4058_v38, %v4057_v31 }
 0x110   : > { %v3972_v61 = vpop.f32.mrf.mxu0  ;;  %v4060_v0 = vpop.f32.mrf.mxu1 }
 0x111   : > { %v5853_v45 = vadd.f32 %v4059_v20, %v5781_v63  ;;  %v2945_v63 = vld [vmem:[%s6879_s7 + $0xf0] sm:$0xff] }
 0x112   : > { %v3973_v4 = vpop.f32.mrf.mxu0  ;;  %v4061_v6 = vpop.f32.mrf.mxu1  ;;  %3104 = vperm.xlu1 %4699, %v2946_v14   ;;  %3099 = vperm.xlu0 %4698, %v2945_v63  }
 0x113   : > { %v5855_v47 = vadd.f32 %v3973_v4, %v3972_v61  ;;  %v4062_v7 = vadd.f32 %v4061_v6, %v4060_v0  ;;  %v4914_v6 = vld [vmem:[%s5059_s30 + $0x64] ss:$16 sps:$4 sm:$0xff]  }
 0x114   : > { %v3975_v10 = vpop.f32.mrf.mxu0  ;;  %v4063_v15 = vpop.f32.mrf.mxu1  ;;  %1863 = vmatmul.mubr.bf16.gmra.mxu1 %v5485_v60  ;;  %2634 = vmatmul.mubr.bf16.gmra.mxu0 %v4911_v11  ;;  %v6881_v60 = vrot.slane %v5853_v45, 7 }
 0x115   : > { %v1152_v57 = vadd.f32 %v4062_v7, %v5785_v13  ;;  %1870 = vmatprep.mubr.bf16.mxu1 %v5497_v62  ;;  %2641 = vmatprep.mubr.bf16.mxu0 %v4912_v18 }
 0x116   : > { %v3976_v36 = vpop.f32.mrf.mxu0  ;;  %v4064_v37 = vpop.f32.mrf.mxu1 }
 0x117   : > { %v1953_v9 = vrot.slane %v1152_v57, 7  ;;  %v5869_v35 = vadd.f32 %v3976_v36, %v3975_v10  ;;  %v4065_v23 = vadd.f32 %v4064_v37, %v4063_v15 }
 0x118   : > { %v3978_v31 = vpop.f32.mrf.mxu0  ;;  %v4066_v25 = vpop.f32.mrf.mxu1 }
 0x119   : > { %v1157_v13 = vadd.f32 %v4065_v23, %v5799_v53  ;;  %v5875_v62 = vsel %vm1951_vm0, %v6881_v60, %v1953_v9 }
 0x11a   : > { %v3979_v49 = vpop.f32.mrf.mxu0  ;;  %v4067_v52 = vpop.f32.mrf.mxu1 }
 0x11b   : > { %v1955_v33 = vrot.slane %v1157_v13, 7  ;;  %v5877_v38 = vadd.f32 %v3979_v49, %v3978_v31  ;;  %v4068_v20 = vadd.f32 %v4067_v52, %v4066_v25  ;;  %v4915_v25 = vld [vmem:[%s5059_s30 + $0x60] ss:$16 sps:$4 sm:$0xff]  }
 0x11c   : > { %v3981_v61 = vpop.f32.mrf.mxu0  ;;  %v4069_v0 = vpop.f32.mrf.mxu1  ;;  %1871 = vmatmul.mubr.bf16.gmra.mxu1 %v5516_v16  ;;  %2642 = vmatmul.mubr.bf16.gmra.mxu0 %v4913_v42 }
 0x11d   : > { %v5882_v4 = vsel %vm1951_vm0, %v1953_v9, %v1955_v33  ;;  %v1160_v53 = vadd.f32 %v4068_v20, %v5803_v56  ;;  %1878 = vmatprep.mubr.bf16.mxu1 %v5531_v28  ;;  %2649 = vmatprep.mubr.bf16.mxu0 %v4914_v6 }
 0x11e   : > { %v3982_v7 = vpop.f32.mrf.mxu0  ;;  %v4070_v10 = vpop.f32.mrf.mxu1 }
 0x11f   : > { %v1957_v15 = vrot.slane %v1160_v53, 7  ;;  %v5887_v11 = vadd.f32 %v3982_v7, %v3981_v61  ;;  %v4071_v14 = vadd.f32 %v4070_v10, %v4069_v0 }
 0x120   : > { %v3984_v63 = vpop.f32.mrf.mxu0  ;;  %v4072_v16 = vpop.f32.mrf.mxu1 }
 0x121   : > { %v5890_v57 = vsel %vm1951_vm0, %v1955_v33, %v1957_v15  ;;  %v1165_v18 = vadd.f32 %v4071_v14, %v5817_v48  ;;  %v4916_v48 = vld [vmem:[%s5059_s30 + $0x84] ss:$16 sps:$4 sm:$0xff]  }
 0x122   : > { %v3985_v56 = vpop.f32.mrf.mxu0  ;;  %v4073_v36 = vpop.f32.mrf.mxu1 }
 0x123   : > { %v1959_v28 = vrot.slane %v1165_v18, 7  ;;  %v5893_v37 = vadd.f32 %v3985_v56, %v3984_v63  ;;  %v4074_v9 = vadd.f32 %v4073_v36, %v4072_v16  ;;  %v4917_v16 = vld [vmem:[%s5059_s30 + $0x80] ss:$16 sps:$4 sm:$0xff]   ;;  %v4918_v56 = vld [vmem:[%s5059_s30 + $0xa4] ss:$16 sps:$4 sm:$0xff]  }
 0x124   : > { %v3987_v23 = vpop.f32.mrf.mxu0  ;;  %v4075_v31 = vpop.f32.mrf.mxu1  ;;  %1879 = vmatmul.mubr.bf16.gmra.mxu1 %v5550_v41  ;;  %2650 = vmatmul.mubr.bf16.gmra.mxu0 %v4915_v25 }
 0x125   : > { %v1168_v13 = vadd.f32 %v4074_v9, %v5821_v1  ;;  %v5899_v49 = vsel %vm1951_vm0, %v1957_v15, %v1959_v28  ;;  %1886 = vmatprep.mubr.bf16.mxu1 %v5565_v12  ;;  %2657 = vmatprep.mubr.bf16.mxu0 %v4916_v48 }
 0x126   : > { %v3988_v52 = vpop.f32.mrf.mxu0  ;;  %v4076_v33 = vpop.f32.mrf.mxu1 }
 0x127   : > { %v1961_v20 = vrot.slane %v1168_v13, 7  ;;  %v5903_v61 = vadd.f32 %v3988_v52, %v3987_v23  ;;  %v4077_v0 = vadd.f32 %v4076_v33, %v4075_v31 }
 0x128   : > { %v3990_v42 = vpop.f32.mrf.mxu0  ;;  %v4078_v41 = vpop.f32.mrf.mxu1 }
 0x129   : > { %v1173_v53 = vadd.f32 %v4077_v0, %v5832_v26  ;;  %v5907_v1 = vsel %vm1951_vm0, %v1959_v28, %v1961_v20 }
 0x12a   : > { %v3991_v6 = vpop.f32.mrf.mxu0  ;;  %v4079_v7 = vpop.f32.mrf.mxu1 }
 0x12b   : > { %v1963_v12 = vrot.slane %v1173_v53, 7  ;;  %v5909_v10 = vadd.f32 %v3991_v6, %v3990_v42  ;;  %v4080_v15 = vadd.f32 %v4079_v7, %v4078_v41  ;;  %v4919_v41 = vld [vmem:[%s5059_s30 + $0xa0] ss:$16 sps:$4 sm:$0xff]  }
 0x12c   : > { %v3993_v14 = vpop.f32.mrf.mxu0  ;;  %v4081_v63 = vpop.f32.mrf.mxu1  ;;  %1887 = vmatmul.mubr.bf16.gmra.mxu1 %v5590_v5  ;;  %2658 = vmatmul.mubr.bf16.gmra.mxu0 %v4917_v16 }
 0x12d   : > { %v5914_v18 = vsel %vm1951_vm0, %v1961_v20, %v1963_v12  ;;  %v1176_v26 = vadd.f32 %v4080_v15, %v5836_v46  ;;  %1894 = vmatprep.mubr.bf16.mxu1 %v5596_v43  ;;  %2665 = vmatprep.mubr.bf16.mxu0 %v4918_v56 }
 0x12e   : > { %v3994_v36 = vpop.f32.mrf.mxu0  ;;  %v4082_v28 = vpop.f32.mrf.mxu1 }
 0x12f   : > { %v1965_v9 = vrot.slane %v1176_v26, 7  ;;  %v5919_v23 = vadd.f32 %v3994_v36, %v3993_v14  ;;  %v4083_v31 = vadd.f32 %v4082_v28, %v4081_v63 }
 0x130   : > { %v3996_v25 = vpop.f32.mrf.mxu0  ;;  %v4084_v5 = vpop.f32.mrf.mxu1 }
 0x131   : > { %v5922_v13 = vsel %vm1951_vm0, %v1963_v12, %v1965_v9  ;;  %v1181_v48 = vadd.f32 %v4083_v31, %v5847_v58  ;;  %v4920_v58 = vld [vmem:[%s5059_s30 + $0xc4] ss:$16 sps:$4 sm:$0xff]  }
 0x132   : > { %6882 = vst [vmem:[#allocation2_spill] sm:$0xff] %v5922_v13  ;;  %v3997_v46 = vpop.f32.mrf.mxu0  ;;  %v4085_v52 = vpop.f32.mrf.mxu1 }
 0x133   : > { %v1967_v43 = vrot.slane %v1181_v48, 7  ;;  %v5925_v33 = vadd.f32 %v3997_v46, %v3996_v25  ;;  %v4086_v20 = vadd.f32 %v4085_v52, %v4084_v5  ;;  %v4921_v5 = vld [vmem:[%s5059_s30 + $0xc0] ss:$16 sps:$4 sm:$0xff]   ;;  %v4922_v46 = vld [vmem:[%s5059_s30 + $0xe4] ss:$16 sps:$4 sm:$0xff]  }
 0x134   : > { %v3999_v0 = vpop.f32.mrf.mxu0  ;;  %v4087_v42 = vpop.f32.mrf.mxu1  ;;  %1895 = vmatmul.mubr.bf16.gmra.mxu1 %v5612_v17  ;;  %2666 = vmatmul.mubr.bf16.gmra.mxu0 %v4919_v41 }
 0x135   : > { %v1184_v53 = vadd.f32 %v4086_v20, %v5855_v47  ;;  %v5931_v6 = vsel %vm1951_vm0, %v1965_v9, %v1967_v43  ;;  %1902 = vmatprep.mubr.bf16.mxu1 %v5618_v27  ;;  %2673 = vmatprep.mubr.bf16.mxu0 %v4920_v58 }
 0x136   : > { %6883 = vst [vmem:[#allocation3_spill] sm:$0xff] %v5931_v6  ;;  %v4000_v7 = vpop.f32.mrf.mxu0  ;;  %v4088_v12 = vpop.f32.mrf.mxu1 }
 0x137   : > { %v1969_v15 = vrot.slane %v1184_v53, 7  ;;  %v5935_v14 = vadd.f32 %v4000_v7, %v3999_v0  ;;  %v4089_v63 = vadd.f32 %v4088_v12, %v4087_v42 }
 0x138   : > { %v4002_v16 = vpop.f32.mrf.mxu0  ;;  %v4090_v17 = vpop.f32.mrf.mxu1 }
 0x139   : > { %v1189_v26 = vadd.f32 %v4089_v63, %v5869_v35  ;;  %v5939_v47 = vsel %vm1951_vm0, %v1967_v43, %v1969_v15 }
 0x13a   : > { %6884 = vst [vmem:[#allocation4_spill] sm:$0xff] %v5939_v47  ;;  %v4003_v56 = vpop.f32.mrf.mxu0  ;;  %v4091_v36 = vpop.f32.mrf.mxu1 }
 0x13b   : > { %v1971_v27 = vrot.slane %v1189_v26, 7  ;;  %v5941_v28 = vadd.f32 %v4003_v56, %v4002_v16  ;;  %v4092_v9 = vadd.f32 %v4091_v36, %v4090_v17  ;;  %v4923_v17 = vld [vmem:[%s5059_s30 + $0xe0] ss:$16 sps:$4 sm:$0xff]   ;;  %v4924_v36 = vld [vmem:[%s5059_s30 + $0x104] ss:$16 sps:$4 sm:$0xff]  }
 0x13c   : > { %v4005_v31 = vpop.f32.mrf.mxu0  ;;  %v4093_v25 = vpop.f32.mrf.mxu1  ;;  %1903 = vmatmul.mubr.bf16.gmra.mxu1 %v5634_v29  ;;  %2674 = vmatmul.mubr.bf16.gmra.mxu0 %v4921_v5 }
 0x13d   : > { %v5946_v48 = vsel %vm1951_vm0, %v1969_v15, %v1971_v27  ;;  %v1192_v35 = vadd.f32 %v4092_v9, %v5877_v38  ;;  %1910 = vmatprep.mubr.bf16.mxu1 %v5640_v30  ;;  %2681 = vmatprep.mubr.bf16.mxu0 %v4922_v46 }
 0x13e   : > { %6885 = vst [vmem:[#allocation5_spill] sm:$0xff] %v5946_v48  ;;  %v4006_v52 = vpop.f32.mrf.mxu0  ;;  %v4094_v43 = vpop.f32.mrf.mxu1 }
 0x13f   : > { %v1973_v20 = vrot.slane %v1192_v35, 7  ;;  %v5951_v0 = vadd.f32 %v4006_v52, %v4005_v31  ;;  %v4095_v42 = vadd.f32 %v4094_v43, %v4093_v25 }
 0x140   : > { %v4008_v41 = vpop.f32.mrf.mxu0  ;;  %v4096_v29 = vpop.f32.mrf.mxu1 }
 0x141   : > { %v5954_v53 = vsel %vm1951_vm0, %v1971_v27, %v1973_v20  ;;  %v1197_v38 = vadd.f32 %v4095_v42, %v5887_v11  ;;  %v4925_v11 = vld [vmem:[%s5059_s30 + $0xc] ss:$16 sps:$4 sm:$0xff]  }
 0x142   : > { %6886 = vst [vmem:[#allocation6_spill] sm:$0xff] %v5954_v53  ;;  %v4009_v58 = vpop.f32.mrf.mxu0  ;;  %v4097_v30 = vpop.f32.mrf.mxu1 }
 0x143   : > { %v1975_v7 = vrot.slane %v1197_v38, 7  ;;  %v5957_v12 = vadd.f32 %v4009_v58, %v4008_v41  ;;  %v4098_v15 = vadd.f32 %v4097_v30, %v4096_v29  ;;  %v4926_v58 = vld [vmem:[%s5059_s30 + $0x100] ss:$16 sps:$4 sm:$0xff]   ;;  %v4927_v30 = vld [vmem:[%s5059_s30 + $0x8] ss:$16 sps:$4 sm:$0xff]  }
 0x144   : > { %v4011_v63 = vpop.f32.mrf.mxu0  ;;  %v4099_v16 = vpop.f32.mrf.mxu1  ;;  %1911 = vmatmul.mubr.bf16.gmra.mxu1 %v5656_v44  ;;  %2682 = vmatmul.mubr.bf16.gmra.mxu0 %v4923_v17 }
 0x145   : > { %v1200_v26 = vadd.f32 %v4098_v15, %v5893_v37  ;;  %v5963_v56 = vsel %vm1951_vm0, %v1973_v20, %v1975_v7  ;;  %2689 = vmatprep.mubr.bf16.mxu0 %v4924_v36  ;;  %2786 = vmatprep.mubr.bf16.mxu1 %v4925_v11 }
 0x146   : > { %6887 = vst [vmem:[#allocation7_spill] sm:$0xff] %v5963_v56  ;;  %v4012_v27 = vpop.f32.mrf.mxu0  ;;  %v4100_v9 = vpop.f32.mrf.mxu1 }
 0x147   : > { %v1977_v31 = vrot.slane %v1200_v26, 7  ;;  %v5967_v25 = vadd.f32 %v4012_v27, %v4011_v63  ;;  %v4101_v5 = vadd.f32 %v4100_v9, %v4099_v16  ;;  %v4929_v63 = vld [vmem:[%s5059_s30 + $0x2c] ss:$16 sps:$4 sm:$0xff]  }
 0x148   : > { %v4014_v44 = vpop.f32.mrf.mxu0  ;;  %v4102_v35 = vpop.f32.mrf.mxu1 }
 0x149   : > { %v1205_v37 = vadd.f32 %v4101_v5, %v5903_v61  ;;  %v5971_v46 = vsel %vm1951_vm0, %v1975_v7, %v1977_v31  ;;  %v4928_v7 = vld [vmem:[%s5059_s30 + $0x124] ss:$16 sps:$4 sm:$0xff]  }
 0x14a   : > { %6888 = vst [vmem:[#allocation8_spill] sm:$0xff] %v5971_v46  ;;  %v4015_v52 = vpop.f32.mrf.mxu0  ;;  %v4103_v43 = vpop.f32.mrf.mxu1 }
 0x14b   : > { %v1979_v20 = vrot.slane %v1205_v37, 7  ;;  %v5973_v42 = vadd.f32 %v4015_v52, %v4014_v44  ;;  %v4104_v41 = vadd.f32 %v4103_v43, %v4102_v35 }
 0x14c   : > { %v4105_v29 = vpop.f32.mrf.mxu1  ;;  %v4169_v38 = vpop.f32.mrf.mxu0  ;;  %2690 = vmatmul.mubr.bf16.gmra.mxu0 %v4926_v58  ;;  %2787 = vmatmul.mubr.bf16.vlgmr.msra.gmra.mxu1 %v4927_v30  ;;  %v4932_v30 = vld [vmem:[%s5059_s30 + $0x144] ss:$16 sps:$4 sm:$0xff]  }
 0x14d   : > { %v5978_v15 = vsel %vm1951_vm0, %v1977_v31, %v1979_v20  ;;  %v1208_v61 = vadd.f32 %v4104_v41, %v5909_v10  ;;  %2697 = vmatprep.mubr.bf16.mxu0 %v4928_v7  ;;  %2794 = vmatprep.mubr.bf16.mxu1 %v4929_v63 }
 0x14e   : > { %6889 = vst [vmem:[#allocation9_spill] sm:$0xff] %v5978_v15  ;;  %v4106_v16 = vpop.f32.mrf.mxu1  ;;  %v4170_v17 = vpop.f32.mrf.mxu0 }
 0x14f   : > { %v1981_v26 = vrot.slane %v1208_v61, 7  ;;  %v4107_v36 = vadd.f32 %v4106_v16, %v4105_v29  ;;  %v5983_v11 = vadd.f32 %v4170_v17, %v4169_v38  ;;  %v4930_v29 = vld [vmem:[%s5059_s30 + $0x120] ss:$16 sps:$4 sm:$0xff]   ;;  %v4931_v38 = vld [vmem:[%s5059_s30 + $0x28] ss:$16 sps:$4 sm:$0xff]  }
 0x150   : > { %v4108_v27 = vpop.f32.mrf.mxu1  ;;  %v4172_v9 = vpop.f32.mrf.mxu0 }
 0x151   : > { %v5986_v31 = vsel %vm1951_vm0, %v1979_v20, %v1981_v26  ;;  %v1213_v10 = vadd.f32 %v4107_v36, %v5919_v23  ;;  %v4933_v23 = vld [vmem:[%s5059_s30 + $0x4c] ss:$16 sps:$4 sm:$0xff]  }
 0x152   : > { %6890 = vst [vmem:[#allocation10_spill] sm:$0xff] %v5986_v31  ;;  %v4109_v5 = vpop.f32.mrf.mxu1  ;;  %v4173_v44 = vpop.f32.mrf.mxu0  ;;  %v4960_v31 = vld [vmem:[%s5059_s30 + $0x1cc] ss:$16 sps:$4 sm:$0xff]  }
 0x153   : > { %v1983_v35 = vrot.slane %v1213_v10, 7  ;;  %v4110_v37 = vadd.f32 %v4109_v5, %v4108_v27  ;;  %v5989_v52 = vadd.f32 %v4173_v44, %v4172_v9 }
 0x154   : > { %v4111_v43 = vpop.f32.mrf.mxu1  ;;  %v4175_v41 = vpop.f32.mrf.mxu0  ;;  %2698 = vmatmul.mubr.bf16.gmra.mxu0 %v4930_v29  ;;  %2795 = vmatmul.mubr.bf16.gmra.mxu1 %v4931_v38 }
 0x155   : > { %v1216_v58 = vadd.f32 %v4110_v37, %v5925_v33  ;;  %v5995_v20 = vsel %vm1951_vm0, %v1981_v26, %v1983_v35  ;;  %2705 = vmatprep.mubr.bf16.mxu0 %v4932_v30  ;;  %2802 = vmatprep.mubr.bf16.mxu1 %v4933_v23  ;;  %v4937_v30 = vld [vmem:[%s5059_s30 + $0x6c] ss:$16 sps:$4 sm:$0xff]  }
 0x156   : > { %6891 = vst [vmem:[#allocation11_spill] sm:$0xff] %v5995_v20  ;;  %v4112_v61 = vpop.f32.mrf.mxu1  ;;  %v4176_v7 = vpop.f32.mrf.mxu0 }
 0x157   : > { %v1985_v63 = vrot.slane %v1216_v58, 7  ;;  %v4113_v16 = vadd.f32 %v4112_v61, %v4111_v43  ;;  %v5999_v17 = vadd.f32 %v4176_v7, %v4175_v41  ;;  %v4934_v43 = vld [vmem:[%s5059_s30 + $0x140] ss:$16 sps:$4 sm:$0xff]   ;;  %v4935_v41 = vld [vmem:[%s5059_s30 + $0x48] ss:$16 sps:$4 sm:$0xff]  }
 0x158   : > { %v4114_v36 = vpop.f32.mrf.mxu1  ;;  %v4178_v27 = vpop.f32.mrf.mxu0 }
 0x159   : > { %v1221_v33 = vadd.f32 %v4113_v16, %v5935_v14  ;;  %v6003_v26 = vsel %vm1951_vm0, %v1983_v35, %v1985_v63  ;;  %v4936_v35 = vld [vmem:[%s5059_s30 + $0x164] ss:$16 sps:$4 sm:$0xff]  }
 0x15a   : > { %6892 = vst [vmem:[#allocation12_spill] sm:$0xff] %v6003_v26  ;;  %v4115_v9 = vpop.f32.mrf.mxu1  ;;  %v4179_v10 = vpop.f32.mrf.mxu0 }
 0x15b   : > { %v1987_v5 = vrot.slane %v1221_v33, 7  ;;  %v4116_v44 = vadd.f32 %v4115_v9, %v4114_v36  ;;  %v6005_v37 = vadd.f32 %v4179_v10, %v4178_v27 }
 0x15c   : > { %v4117_v29 = vpop.f32.mrf.mxu1  ;;  %v4181_v38 = vpop.f32.mrf.mxu0  ;;  %2706 = vmatmul.mubr.bf16.gmra.mxu0 %v4934_v43  ;;  %2803 = vmatmul.mubr.bf16.gmra.mxu1 %v4935_v41 }
 0x15d   : > { %v6010_v58 = vsel %vm1951_vm0, %v1985_v63, %v1987_v5  ;;  %v1224_v14 = vadd.f32 %v4116_v44, %v5941_v28  ;;  %2713 = vmatprep.mubr.bf16.mxu0 %v4936_v35  ;;  %2810 = vmatprep.mubr.bf16.mxu1 %v4937_v30  ;;  %v4938_v35 = vld [vmem:[%s5059_s30 + $0x160] ss:$16 sps:$4 sm:$0xff]   ;;  %v4939_v30 = vld [vmem:[%s5059_s30 + $0x68] ss:$16 sps:$4 sm:$0xff]  }
 0x15e   : > { %6893 = vst [vmem:[#allocation13_spill] sm:$0xff] %v6010_v58  ;;  %v4118_v23 = vpop.f32.mrf.mxu1  ;;  %v4182_v61 = vpop.f32.mrf.mxu0 }
 0x15f   : > { %v1989_v7 = vrot.slane %v1224_v14, 7  ;;  %v4119_v16 = vadd.f32 %v4118_v23, %v4117_v29  ;;  %v6015_v36 = vadd.f32 %v4182_v61, %v4181_v38  ;;  %v4892_v29 = vld [vmem:[%s6874_s2 + $0x38] sm:$0xff]  }
 0x160   : > { %v4120_v27 = vpop.f32.mrf.mxu1  ;;  %v4184_v33 = vpop.f32.mrf.mxu0  ;;  %v4940_v23 = vld [vmem:[%s5059_s30 + $0x8c] ss:$16 sps:$4 sm:$0xff]   ;;  %4625 = vmatprep.subr.bf16.mxu0 %v4892_v29 }
 0x161   : > { %v6018_v9 = vsel %vm1951_vm0, %v1987_v5, %v1989_v7  ;;  %v1229_v63 = vadd.f32 %v4119_v16, %v5951_v0  ;;  %4626 = vmatpush3.bf16.msra.mxu0 %v4892_v29 }
 0x162   : > { %6894 = vst [vmem:[#allocation14_spill] sm:$0xff] %v6018_v9  ;;  %v4121_v28 = vpop.f32.mrf.mxu1  ;;  %v4185_v10 = vpop.f32.mrf.mxu0 }
 0x163   : > { %v1991_v44 = vrot.slane %v1229_v63, 7  ;;  %v4122_v43 = vadd.f32 %v4121_v28, %v4120_v27  ;;  %v6021_v41 = vadd.f32 %v4185_v10, %v4184_v33 }
 0x164   : > { %v4123_v38 = vpop.f32.mrf.mxu1  ;;  %v4187_v14 = vpop.f32.mrf.mxu0  ;;  %2714 = vmatmul.mubr.bf16.gmra.mxu0 %v4938_v35  ;;  %2811 = vmatmul.mubr.bf16.gmra.mxu1 %v4939_v30 }
 0x165   : > { %v1232_v5 = vadd.f32 %v4122_v43, %v5957_v12  ;;  %v6030_v0 = vsel %vm1951_vm0, %v1989_v7, %v1991_v44  ;;  %2721 = vmatprep.mubr.bf16.mxu0 %v5764_v8  ;;  %2818 = vmatprep.mubr.bf16.mxu1 %v4940_v23 }
 0x166   : > { %6895 = vst [vmem:[#allocation15_spill] sm:$0xff] %v6030_v0  ;;  %v4124_v61 = vpop.f32.mrf.mxu1  ;;  %v4188_v16 = vpop.f32.mrf.mxu0 }
 0x167   : > { %v1993_v27 = vrot.slane %v1232_v5, 7  ;;  %v4125_v33 = vadd.f32 %v4124_v61, %v4123_v38  ;;  %v6034_v63 = vadd.f32 %v4188_v16, %v4187_v14  ;;  %v4941_v38 = vld [vmem:[%s5059_s30 + $0x88] ss:$16 sps:$4 sm:$0xff]  }
 0x168   : > { %v4126_v28 = vpop.f32.mrf.mxu1  ;;  %v4190_v10 = vpop.f32.mrf.mxu0 }
 0x169   : > { %v1237_v12 = vadd.f32 %v4125_v33, %v5967_v25  ;;  %v6038_v7 = vsel %vm1951_vm0, %v1991_v44, %v1993_v27  ;;  %v4942_v44 = vld [vmem:[%s5059_s30 + $0xac] ss:$16 sps:$4 sm:$0xff]  }
 0x16a   : > { %6896 = vst [vmem:[#allocation16_spill] sm:$0xff] %v6038_v7  ;;  %v4127_v8 = vpop.f32.mrf.mxu1  ;;  %v4191_v43 = vpop.f32.mrf.mxu0 }
 0x16b   : > { %v1995_v35 = vrot.slane %v1237_v12, 7  ;;  %v4128_v30 = vadd.f32 %v4127_v8, %v4126_v28  ;;  %v6040_v23 = vadd.f32 %v4191_v43, %v4190_v10 }
 0x16c   : > { %v4129_v5 = vpop.f32.mrf.mxu1  ;;  %v4193_v60 = vpop.f32.mrf.mxu0  ;;  %2722 = vmatmul.mubr.bf16.gmra.mxu0 %v5772_v32  ;;  %2819 = vmatmul.mubr.bf16.gmra.mxu1 %v4941_v38  ;;  %v4943_v38 = vld [vmem:[%s5059_s30 + $0xa8] ss:$16 sps:$4 sm:$0xff]  }
 0x16d   : > { %v6045_v29 = vsel %vm1951_vm0, %v1993_v27, %v1995_v35  ;;  %v1240_v25 = vadd.f32 %v4128_v30, %v5973_v42  ;;  %2729 = vmatprep.mubr.bf16.mxu0 %v5777_v21  ;;  %2826 = vmatprep.mubr.bf16.mxu1 %v4942_v44  ;;  %v4893_v30 = vld [vmem:[%s6874_s2 + $0x30] sm:$0xff]  }
 0x16e   : > { %6897 = vst [vmem:[#allocation17_spill] sm:$0xff] %v6045_v29  ;;  %v4130_v14 = vpop.f32.mrf.mxu1  ;;  %v4194_v61 = vpop.f32.mrf.mxu0  ;;  %4627 = vmatprep.subr.bf16.mxu0 %v4893_v30 }
 0x16f   : > { %v1997_v16 = vrot.slane %v1240_v25, 7  ;;  %v4131_v33 = vadd.f32 %v4130_v14, %v4129_v5  ;;  %v6050_v28 = vadd.f32 %v4194_v61, %v4193_v60  ;;  %4628 = vmatpush3.bf16.msra.mxu0 %v4893_v30 }
 0x170   : > { %v4132_v10 = vpop.f32.mrf.mxu1  ;;  %v6052_v32 = vpop.f32.mrf.mxu0 }
 0x171   : > { %v6055_v27 = vsel %vm1951_vm0, %v1995_v35, %v1997_v16  ;;  %v1245_v42 = vadd.f32 %v4131_v33, %v5783_v2  ;;  %v4944_v2 = vld [vmem:[%s5059_s30 + $0xcc] ss:$16 sps:$4 sm:$0xff]  }
 0x172   : > { %6898 = vst [vmem:[#allocation18_spill] sm:$0xff] %v6055_v27  ;;  %v4133_v12 = vpop.f32.mrf.mxu1  ;;  %v6058_v21 = vpop.f32.mrf.mxu0  ;;  %v4899_v27 = vld [vmem:[%s6874_s2] sm:$0xff]  }
 0x173   : > { %v1999_v8 = vrot.slane %v1245_v42, 7  ;;  %v4134_v43 = vadd.f32 %v4133_v12, %v4132_v10 }
 0x174   : > { %v4135_v60 = vpop.f32.mrf.mxu1  ;;  %v4199_v5 = vpop.f32.mrf.mxu0  ;;  %2730 = vmatmul.mubr.bf16.gmra.mxu0 %v5790_v19  ;;  %2827 = vmatmul.mubr.bf16.gmra.mxu1 %v4943_v38 }
 0x175   : > { %v1248_v35 = vadd.f32 %v4134_v43, %v5787_v34  ;;  %v6067_v25 = vsel %vm1951_vm0, %v1997_v16, %v1999_v8  ;;  %2737 = vmatprep.mubr.bf16.mxu0 %v5795_v39  ;;  %2834 = vmatprep.mubr.bf16.mxu1 %v4944_v2 }
 0x176   : > { %6899 = vst [vmem:[#allocation19_spill] sm:$0xff] %v6067_v25  ;;  %v4136_v44 = vpop.f32.mrf.mxu1  ;;  %v4200_v14 = vpop.f32.mrf.mxu0 }
 0x177   : > { %v2001_v61 = vrot.slane %v1248_v35, 7  ;;  %v4137_v33 = vadd.f32 %v4136_v44, %v4135_v60  ;;  %v6071_v10 = vadd.f32 %v4200_v14, %v4199_v5  ;;  %v4945_v60 = vld [vmem:[%s5059_s30 + $0xc8] ss:$16 sps:$4 sm:$0xff]  }
 0x178   : > { %v4138_v19 = vpop.f32.mrf.mxu1  ;;  %v6073_v42 = vpop.f32.mrf.mxu0 }
 0x179   : > { %v1253_v34 = vadd.f32 %v4137_v33, %v5801_v55  ;;  %v6077_v16 = vsel %vm1951_vm0, %v1999_v8, %v2001_v61  ;;  %v4946_v55 = vld [vmem:[%s5059_s30 + $0xec] ss:$16 sps:$4 sm:$0xff]  }
 0x17a   : > { %6900 = vst [vmem:[#allocation20_spill] sm:$0xff] %v6077_v16  ;;  %v4139_v39 = vpop.f32.mrf.mxu1  ;;  %v6079_v12 = vpop.f32.mrf.mxu0 }
 0x17b   : > { %v2003_v43 = vrot.slane %v1253_v34, 7  ;;  %v4140_v38 = vadd.f32 %v4139_v39, %v4138_v19 }
 0x17c   : > { %v4141_v2 = vpop.f32.mrf.mxu1  ;;  %v4205_v35 = vpop.f32.mrf.mxu0  ;;  %2738 = vmatmul.mubr.bf16.gmra.mxu0 %v5808_v24  ;;  %2835 = vmatmul.mubr.bf16.gmra.mxu1 %v4945_v60 }
 0x17d   : > { %v6084_v30 = vsel %vm1951_vm0, %v2001_v61, %v2003_v43  ;;  %v1256_v5 = vadd.f32 %v4140_v38, %v5805_v50  ;;  %2745 = vmatprep.mubr.bf16.mxu0 %v5813_v59  ;;  %2842 = vmatprep.mubr.bf16.mxu1 %v4946_v55  ;;  %v4947_v55 = vld [vmem:[%s5059_s30 + $0xe8] ss:$16 sps:$4 sm:$0xff]  }
 0x17e   : > { %6901 = vst [vmem:[#allocation21_spill] sm:$0xff] %v6084_v30  ;;  %v4142_v8 = vpop.f32.mrf.mxu1  ;;  %v4206_v44 = vpop.f32.mrf.mxu0 }
 0x17f   : > { %v2005_v14 = vrot.slane %v1256_v5, 7  ;;  %v4143_v33 = vadd.f32 %v4142_v8, %v4141_v2  ;;  %v6089_v19 = vadd.f32 %v4206_v44, %v4205_v35  ;;  %v4894_v2 = vld [vmem:[%s6874_s2 + $0x28] sm:$0xff]  }
 0x180   : > { %v4144_v34 = vpop.f32.mrf.mxu1  ;;  %v6091_v24 = vpop.f32.mrf.mxu0  ;;  %4629 = vmatprep.subr.bf16.mxu0 %v4894_v2 }
 0x181   : > { %v6094_v61 = vsel %vm1951_vm0, %v2003_v43, %v2005_v14  ;;  %v1261_v50 = vadd.f32 %v4143_v33, %v5819_v51  ;;  %v4948_v51 = vld [vmem:[%s5059_s30 + $0x10c] ss:$16 sps:$4 sm:$0xff]   ;;  %4630 = vmatpush3.bf16.msra.mxu0 %v4894_v2 }
 0x182   : > { %6902 = vst [vmem:[#allocation22_spill] sm:$0xff] %v6094_v61  ;;  %v4145_v39 = vpop.f32.mrf.mxu1  ;;  %v6097_v59 = vpop.f32.mrf.mxu0 }
 0x183   : > { %v2007_v38 = vrot.slane %v1261_v50, 7  ;;  %v4146_v60 = vadd.f32 %v4145_v39, %v4144_v34 }
 0x184   : > { %v4147_v35 = vpop.f32.mrf.mxu1  ;;  %v4211_v5 = vpop.f32.mrf.mxu0  ;;  %2746 = vmatmul.mubr.bf16.gmra.mxu0 %v5826_v54  ;;  %2843 = vmatmul.mubr.bf16.gmra.mxu1 %v4947_v55 }
 0x185   : > { %v1264_v43 = vadd.f32 %v4146_v60, %v5823_v3  ;;  %v6106_v8 = vsel %vm1951_vm0, %v2005_v14, %v2007_v38  ;;  %2850 = vmatprep.mubr.bf16.mxu1 %v4948_v51 }
 0x186   : > { %6903 = vst [vmem:[#allocation23_spill] sm:$0xff] %v6106_v8  ;;  %v4148_v44 = vpop.f32.mrf.mxu1  ;;  %v4212_v33 = vpop.f32.mrf.mxu0 }
 0x187   : > { %v2009_v34 = vrot.slane %v1264_v43, 7  ;;  %v4149_v50 = vadd.f32 %v4148_v44, %v4147_v35  ;;  %v6109_v39 = vadd.f32 %v4212_v33, %v4211_v5  ;;  %v4949_v43 = vld [vmem:[%s5059_s30 + $0x108] ss:$16 sps:$4 sm:$0xff]   ;;  %v4950_v44 = vld [vmem:[%s5059_s30 + $0x12c] ss:$16 sps:$4 sm:$0xff]  }
 0x188   : > { %v4150_v54 = vpop.f32.mrf.mxu1  ;;  %v6111_v61 = vpop.f32.mrf.mxu0 }
 0x189   : > { %v1269_v3 = vadd.f32 %v4149_v50, %v5834_v22  ;;  %v6115_v14 = vsel %vm1951_vm0, %v2007_v38, %v2009_v34 }
 0x18a   : > { %6904 = vst [vmem:[#allocation24_spill] sm:$0xff] %v6115_v14  ;;  %v4151_v60 = vpop.f32.mrf.mxu1  ;;  %v6117_v55 = vpop.f32.mrf.mxu0  ;;  %v4953_v14 = vld [vmem:[%s5059_s30 + $0x148] ss:$16 sps:$4 sm:$0xff]  }
 0x18b   : > { %v2011_v51 = vrot.slane %v1269_v3, 7  ;;  %v4152_v8 = vadd.f32 %v4151_v60, %v4150_v54 }
 0x18c   : > { %v4217_v30 = vpop.f32.mrf.mxu0  ;;  %v4281_v2 = vpop.f32.mrf.mxu1  ;;  %2851 = vmatmul.mubr.bf16.gmra.mxu1 %v4949_v43 }
 0x18d   : > { %v1272_v35 = vadd.f32 %v4152_v8, %v5838_v40  ;;  %v6122_v5 = vsel %vm1951_vm0, %v2009_v34, %v2011_v51  ;;  %2858 = vmatprep.mubr.bf16.mxu1 %v4950_v44 }
 0x18e   : > { %6905 = vst [vmem:[#allocation25_spill] sm:$0xff] %v6122_v5  ;;  %v4218_v22 = vpop.f32.mrf.mxu0  ;;  %v4282_v38 = vpop.f32.mrf.mxu1 }
 0x18f   : > { %v2013_v33 = vrot.slane %v1272_v35, 7  ;;  %v6125_v50 = vadd.f32 %v4218_v22, %v4217_v30  ;;  %v4283_v3 = vadd.f32 %v4282_v38, %v4281_v2  ;;  %v4895_v35 = vld [vmem:[%s6874_s2 + $0x20] sm:$0xff]   ;;  %v4951_v22 = vld [vmem:[%s5059_s30 + $0x128] ss:$16 sps:$4 sm:$0xff]   ;;  %v4952_v38 = vld [vmem:[%s5059_s30 + $0x14c] ss:$16 sps:$4 sm:$0xff]  }
 0x190   : > { %v6127_v54 = vpop.f32.mrf.mxu0  ;;  %v4284_v60 = vpop.f32.mrf.mxu1  ;;  %4631 = vmatprep.subr.bf16.mxu0 %v4895_v35 }
 0x191   : > { %v1793_v43 = vadd.f32 %v4283_v3, %v5983_v11  ;;  %v6131_v40 = vsel %vm1951_vm0, %v2011_v51, %v2013_v33  ;;  %4632 = vmatpush3.bf16.msra.mxu0 %v4895_v35 }
 0x192   : > { %6906 = vst [vmem:[#allocation26_spill] sm:$0xff] %v6131_v40  ;;  %v6133_v8 = vpop.f32.mrf.mxu0  ;;  %v4285_v34 = vpop.f32.mrf.mxu1  ;;  %v4896_v40 = vld [vmem:[%s6874_s2 + $0x18] sm:$0xff]  }
 0x193   : > { %v4286_v44 = vadd.f32 %v4285_v34, %v4284_v60  ;;  %v2081_v33 = vrot.slane %v1793_v43, 1  ;;  %4633 = vmatprep.subr.bf16.mxu0 %v4896_v40 }
 0x194   : > { %v4223_v5 = vpop.f32.mrf.mxu0  ;;  %v4287_v30 = vpop.f32.mrf.mxu1  ;;  %2859 = vmatmul.mubr.bf16.gmra.mxu1 %v4951_v22 }
 0x195   : > { %v1796_v2 = vadd.f32 %v4286_v44, %v5989_v52  ;;  %2866 = vmatprep.mubr.bf16.mxu1 %v4952_v38  ;;  %4634 = vmatpush3.bf16.msra.mxu0 %v4896_v40 }
 0x196   : > { %v4224_v11 = vpop.f32.mrf.mxu0  ;;  %v4288_v51 = vpop.f32.mrf.mxu1 }
 0x197   : > { %v2082_v3 = vrot.slane %v1796_v2, 1  ;;  %v6141_v60 = vadd.f32 %v4224_v11, %v4223_v5  ;;  %v4289_v34 = vadd.f32 %v4288_v51, %v4287_v30  ;;  %v4897_v2 = vld [vmem:[%s6874_s2 + $0x10] sm:$0xff]  }
 0x198   : > { %v6146_v22 = vpop.f32.mrf.mxu0  ;;  %v4290_v52 = vpop.f32.mrf.mxu1  ;;  %4635 = vmatprep.subr.bf16.mxu0 %v4897_v2 }
 0x199   : > { %v1801_v44 = vadd.f32 %v4289_v34, %v5999_v17  ;;  %v6150_v38 = vsel %vm2080_vm1, %v2081_v33, %v2082_v3  ;;  %v4954_v34 = vld [vmem:[%s5059_s30 + $0x16c] ss:$16 sps:$4 sm:$0xff]   ;;  %4636 = vmatpush3.bf16.msra.mxu0 %v4897_v2 }
 0x19a   : > { %v6152_v43 = vpop.f32.mrf.mxu0  ;;  %v4291_v5 = vpop.f32.mrf.mxu1 }
 0x19b   : > { %v2084_v35 = vrot.slane %v1801_v44, 1  ;;  %v4292_v30 = vadd.f32 %v4291_v5, %v4290_v52 }
 0x19c   : > { %v4229_v11 = vpop.f32.mrf.mxu0  ;;  %v4293_v51 = vpop.f32.mrf.mxu1  ;;  %2867 = vmatmul.mubr.bf16.gmra.mxu1 %v4953_v14  ;;  %v4898_v14 = vld [vmem:[%s6874_s2 + $0x8] sm:$0xff]  }
 0x19d   : > { %v1804_v17 = vadd.f32 %v4292_v30, %v6005_v37  ;;  %2874 = vmatprep.mubr.bf16.mxu1 %v4954_v34  ;;  %v6161_v33 = vsel %vm2080_vm1, %v2082_v3, %v2084_v35  ;;  %4637 = vmatprep.subr.bf16.mxu0 %v4898_v14 }
 0x19e   : > { %v4230_v16 = vpop.f32.mrf.mxu0  ;;  %v4294_v40 = vpop.f32.mrf.mxu1  ;;  %4638 = vmatpush3.bf16.msra.mxu0 %v4898_v14 }
 0x19f   : > { %v2086_v52 = vrot.slane %v1804_v17, 1  ;;  %v6163_v44 = vadd.f32 %v4230_v16, %v4229_v11  ;;  %v4295_v5 = vadd.f32 %v4294_v40, %v4293_v51  ;;  %v4955_v40 = vld [vmem:[%s5059_s30 + $0x168] ss:$16 sps:$4 sm:$0xff]   ;;  %4639 = vmatprep.subr.bf16.mxu0 %v4899_v27 }
 0x1a0   : > { %v6168_v25 = vpop.f32.mrf.mxu0  ;;  %v4296_v37 = vpop.f32.mrf.mxu1 }
 0x1a1   : > { %v1809_v3 = vadd.f32 %v4295_v5, %v6015_v36  ;;  %v6172_v30 = vsel %vm2080_vm1, %v2084_v35, %v2086_v52  ;;  %v4956_v5 = vld [vmem:[%s5059_s30 + $0x18c] ss:$16 sps:$4 sm:$0xff]  }
 0x1a2   : > { %v6174_v2 = vpop.f32.mrf.mxu0  ;;  %v4297_v17 = vpop.f32.mrf.mxu1  ;;  %4640 = vmatpush3.bf16.msra.mxu0 %v4899_v27  ;;  %v4958_v27 = vld [vmem:[%s5059_s30 + $0x1ac] ss:$16 sps:$4 sm:$0xff]  }
 0x1a3   : > { %v2088_v16 = vrot.slane %v1809_v3, 1  ;;  %v4298_v11 = vadd.f32 %v4297_v17, %v4296_v37 }
 0x1a4   : > { %v4235_v51 = vpop.f32.mrf.mxu0  ;;  %v4299_v34 = vpop.f32.mrf.mxu1  ;;  %2875 = vmatmul.mubr.bf16.gmra.mxu1 %v4955_v40 }
 0x1a5   : > { %v1812_v36 = vadd.f32 %v4298_v11, %v6021_v41  ;;  %2882 = vmatprep.mubr.bf16.mxu1 %v4956_v5  ;;  %v6183_v35 = vsel %vm2080_vm1, %v2086_v52, %v2088_v16 }
 0x1a6   : > { %v4236_v29 = vpop.f32.mrf.mxu0  ;;  %v4300_v7 = vpop.f32.mrf.mxu1 }
 0x1a7   : > { %v2090_v14 = vrot.slane %v1812_v36, 1  ;;  %v6185_v37 = vadd.f32 %v4236_v29, %v4235_v51  ;;  %v4301_v3 = vadd.f32 %v4300_v7, %v4299_v34  ;;  %v4957_v29 = vld [vmem:[%s5059_s30 + $0x188] ss:$16 sps:$4 sm:$0xff]  }
 0x1a8   : > { %v6187_v17 = vpop.f32.mrf.mxu0  ;;  %v4302_v40 = vpop.f32.mrf.mxu1 }
 0x1a9   : > { %v1817_v41 = vadd.f32 %v4301_v3, %v6034_v63  ;;  %v6191_v11 = vsel %vm2080_vm1, %v2088_v16, %v2090_v14 }
 0x1aa   : > { %v6193_v52 = vpop.f32.mrf.mxu0  ;;  %v4303_v5 = vpop.f32.mrf.mxu1 }
 0x1ab   : > { %v2092_v0 = vrot.slane %v1817_v41, 1  ;;  %v4304_v9 = vadd.f32 %v4303_v5, %v4302_v40 }
 0x1ac   : > { %v4241_v58 = vpop.f32.mrf.mxu0  ;;  %v4305_v36 = vpop.f32.mrf.mxu1  ;;  %2883 = vmatmul.mubr.bf16.gmra.mxu1 %v4957_v29 }
 0x1ad   : > { %v1820_v7 = vadd.f32 %v4304_v9, %v6040_v23  ;;  %2890 = vmatprep.mubr.bf16.mxu1 %v4958_v27  ;;  %v6199_v51 = vsel %vm2080_vm1, %v2090_v14, %v2092_v0  ;;  %v4198_v14 = vadd.f32 %v6058_v21, %v6052_v32 }
 0x1ae   : > { %6907 = vst [vmem:[#allocation27_spill] sm:$0xff] %v6199_v51  ;;  %v4242_v63 = vpop.f32.mrf.mxu0  ;;  %v4306_v34 = vpop.f32.mrf.mxu1 }
 0x1af   : > { %v2094_v16 = vrot.slane %v1820_v7, 1  ;;  %v6201_v3 = vadd.f32 %v4242_v63, %v4241_v58  ;;  %v4307_v26 = vadd.f32 %v4306_v34, %v4305_v36  ;;  %v4959_v36 = vld [vmem:[%s5059_s30 + $0x1a8] ss:$16 sps:$4 sm:$0xff]  }
 0x1b0   : > { %v4244_v40 = vpop.f32.mrf.mxu0  ;;  %v4308_v41 = vpop.f32.mrf.mxu1 }
 0x1b1   : > { %v1825_v5 = vadd.f32 %v4307_v26, %v6050_v28  ;;  %v6205_v29 = vsel %vm2080_vm1, %v2092_v0, %v2094_v16 }
 0x1b2   : > { %6908 = vst [vmem:[#allocation28_spill] sm:$0xff] %v6205_v29  ;;  %v4245_v9 = vpop.f32.mrf.mxu0  ;;  %v4309_v23 = vpop.f32.mrf.mxu1 }
 0x1b3   : > { %v2096_v27 = vrot.slane %v1825_v5, 1  ;;  %v6209_v20 = vadd.f32 %v4245_v9, %v4244_v40  ;;  %v4310_v7 = vadd.f32 %v4309_v23, %v4308_v41 }
 0x1b4   : > { %v4247_v58 = vpop.f32.mrf.mxu0  ;;  %v4311_v63 = vpop.f32.mrf.mxu1  ;;  %2891 = vmatmul.mubr.bf16.gmra.mxu1 %v4959_v36 }
 0x1b5   : > { %v1828_v34 = vadd.f32 %v4310_v7, %v4198_v14  ;;  %2898 = vmatprep.mubr.bf16.mxu1 %v4960_v31  ;;  %v6214_v26 = vsel %vm2080_vm1, %v2094_v16, %v2096_v27  ;;  %v4204_v16 = vadd.f32 %v6079_v12, %v6073_v42 }
 0x1b6   : > { %6909 = vst [vmem:[#allocation29_spill] sm:$0xff] %v6214_v26  ;;  %v4248_v0 = vpop.f32.mrf.mxu0  ;;  %v4312_v28 = vpop.f32.mrf.mxu1 }
 0x1b7   : > { %v2098_v15 = vrot.slane %v1828_v34, 1  ;;  %v6216_v46 = vadd.f32 %v4248_v0, %v4247_v58  ;;  %v4313_v32 = vadd.f32 %v4312_v28, %v4311_v63  ;;  %v4961_v63 = vld [vmem:[%s5059_s30 + $0x1c8] ss:$16 sps:$4 sm:$0xff]   ;;  %v4962_v0 = vld [vmem:[%s5059_s30 + $0x1ec] ss:$16 sps:$4 sm:$0xff]  }
 0x1b8   : > { %v4250_v21 = vpop.f32.mrf.mxu0  ;;  %v4314_v40 = vpop.f32.mrf.mxu1 }
 0x1b9   : > { %v1833_v41 = vadd.f32 %v4313_v32, %v6071_v10  ;;  %v6220_v5 = vsel %vm2080_vm1, %v2096_v27, %v2098_v15 }
 0x1ba   : > { %6910 = vst [vmem:[#allocation30_spill] sm:$0xff] %v6220_v5  ;;  %v4251_v9 = vpop.f32.mrf.mxu0  ;;  %v4315_v31 = vpop.f32.mrf.mxu1 }
 0x1bb   : > { %v2100_v23 = vrot.slane %v1833_v41, 1  ;;  %v6224_v14 = vadd.f32 %v4251_v9, %v4250_v21  ;;  %v4316_v7 = vadd.f32 %v4315_v31, %v4314_v40 }
 0x1bc   : > { %v4253_v58 = vpop.f32.mrf.mxu0  ;;  %v4317_v36 = vpop.f32.mrf.mxu1  ;;  %2899 = vmatmul.mubr.bf16.gmra.mxu1 %v4961_v63 }
 0x1bd   : > { %v1836_v34 = vadd.f32 %v4316_v7, %v4204_v16  ;;  %2906 = vmatprep.mubr.bf16.mxu1 %v4962_v0  ;;  %v6229_v10 = vsel %vm2080_vm1, %v2098_v15, %v2100_v23  ;;  %v4210_v15 = vadd.f32 %v6097_v59, %v6091_v24  ;;  %v4963_v0 = vld [vmem:[%s5059_s30 + $0x1e8] ss:$16 sps:$4 sm:$0xff]  }
 0x1be   : > { %6911 = vst [vmem:[#allocation31_spill] sm:$0xff] %v6229_v10  ;;  %v4254_v27 = vpop.f32.mrf.mxu0  ;;  %v4318_v28 = vpop.f32.mrf.mxu1 }
 0x1bf   : > { %v2102_v32 = vrot.slane %v1836_v34, 1  ;;  %v6231_v56 = vadd.f32 %v4254_v27, %v4253_v58  ;;  %v4319_v42 = vadd.f32 %v4318_v28, %v4317_v36 }
 0x1c0   : > { %v4256_v12 = vpop.f32.mrf.mxu0  ;;  %v4320_v21 = vpop.f32.mrf.mxu1 }
 0x1c1   : > { %v1841_v40 = vadd.f32 %v4319_v42, %v6089_v19  ;;  %v6235_v41 = vsel %vm2080_vm1, %v2100_v23, %v2102_v32 }
 0x1c2   : > { %6912 = vst [vmem:[#allocation32_spill] sm:$0xff] %v6235_v41  ;;  %v4257_v9 = vpop.f32.mrf.mxu0  ;;  %v4321_v31 = vpop.f32.mrf.mxu1 }
 0x1c3   : > { %v2104_v16 = vrot.slane %v1841_v40, 1  ;;  %v6239_v7 = vadd.f32 %v4257_v9, %v4256_v12  ;;  %v4322_v63 = vadd.f32 %v4321_v31, %v4320_v21  ;;  %v4216_v9 = vadd.f32 %v6117_v55, %v6111_v61 }
 0x1c4   : > { %v4259_v34 = vpop.f32.mrf.mxu0  ;;  %v4323_v58 = vpop.f32.mrf.mxu1  ;;  %2907 = vmatmul.mubr.bf16.gmra.mxu1 %v4963_v0 }
 0x1c5   : > { %v1844_v36 = vadd.f32 %v4322_v63, %v4210_v15  ;;  %v6243_v27 = vsel %vm2080_vm1, %v2102_v32, %v2104_v16 }
 0x1c6   : > { %6913 = vst [vmem:[#allocation33_spill] sm:$0xff] %v6243_v27  ;;  %v4260_v19 = vpop.f32.mrf.mxu0  ;;  %v4324_v23 = vpop.f32.mrf.mxu1 }
 0x1c7   : > { %v2106_v28 = vrot.slane %v1844_v36, 1  ;;  %v6245_v42 = vadd.f32 %v4260_v19, %v4259_v34  ;;  %v4325_v41 = vadd.f32 %v4324_v23, %v4323_v58  ;;  %v6257_v58 = vpop.permute.xlu0 %2211 }
 0x1c8   : > { %v4262_v53 = vpop.f32.mrf.mxu0  ;;  %v4326_v24 = vpop.f32.mrf.mxu1 }
 0x1c9   : > { %v1849_v59 = vadd.f32 %v4325_v41, %v6109_v39  ;;  %v6249_v12 = vsel %vm2080_vm1, %v2104_v16, %v2106_v28 }
 0x1ca   : > { %6914 = vst [vmem:[#allocation34_spill] sm:$0xff] %v6249_v12  ;;  %v4263_v21 = vpop.f32.mrf.mxu0  ;;  %v4327_v40 = vpop.f32.mrf.mxu1 }
 0x1cb   : > { %v2108_v32 = vrot.slane %v1849_v59, 1  ;;  %v6253_v31 = vadd.f32 %v4263_v21, %v4262_v53  ;;  %v4328_v15 = vadd.f32 %v4327_v40, %v4326_v24  ;;  %v6266_v53 = vpop.permute.xlu1 %2221  ;;  %v4222_v40 = vadd.f32 %v6133_v8, %v6127_v54 }
 0x1cc   : > { %v4329_v63 = vpop.f32.mrf.mxu1  ;;  %v6255_v34 = vpop.f32.mrf.mxu0 }
 0x1cd   : > { %v1852_v0 = vadd.f32 %v4328_v15, %v4216_v9  ;;  %v6260_v39 = vsel %vm2080_vm1, %v2106_v28, %v2108_v32  ;;  %v6274_v28 = vpop.permute.xlu0 %2216 }
 0x1ce   : > { %6915 = vst [vmem:[#allocation35_spill] sm:$0xff] %v6260_v39  ;;  %v4330_v41 = vpop.f32.mrf.mxu1  ;;  %v6262_v16 = vpop.f32.mrf.mxu0 }
 0x1cf   : > { %v2110_v36 = vrot.slane %v1852_v0, 1  ;;  %v4331_v19 = vadd.f32 %v4330_v41, %v4329_v63 }
 0x1d0   : > { %v4332_v23 = vpop.f32.mrf.mxu1  ;;  %v6264_v61 = vpop.f32.mrf.mxu0 }
 0x1d1   : > { %v1857_v55 = vadd.f32 %v4331_v19, %v6125_v50  ;;  %v6270_v24 = vsel %vm2080_vm1, %v2108_v32, %v2110_v36  ;;  %v6285_v19 = vpop.permute.xlu1 %2226  ;;  %v6289_v54 = vpop.permute.xlu0 %2949 }
 0x1d2   : > { %6916 = vst [vmem:[#allocation36_spill] sm:$0xff] %v6270_v24  ;;  %v4333_v59 = vpop.f32.mrf.mxu1  ;;  %v6272_v21 = vpop.f32.mrf.mxu0 }
 0x1d3   : > { %v2112_v9 = vrot.slane %v1857_v55, 1  ;;  %v4334_v15 = vadd.f32 %v4333_v59, %v4332_v23  ;;  %v4228_v59 = vadd.f32 %v6152_v43, %v6146_v22 }
 0x1d4   : > { %v4335_v63 = vpop.f32.mrf.mxu1  ;;  %v6278_v0 = vpop.f32.mrf.mxu0 }
 0x1d5   : > { %v1860_v41 = vadd.f32 %v4334_v15, %v4222_v40  ;;  %v6281_v39 = vsel %vm2080_vm1, %v2110_v36, %v2112_v9 }
 0x1d6   : > { %6917 = vst [vmem:[#allocation37_spill] sm:$0xff] %v6281_v39  ;;  %v4336_v50 = vpop.f32.mrf.mxu1  ;;  %v6283_v32 = vpop.f32.mrf.mxu0 }
 0x1d7   : > { %v2114_v24 = vrot.slane %v1860_v41, 1  ;;  %v4337_v12 = vadd.f32 %v4336_v50, %v4335_v63  ;;  %v6301_v50 = vpop.permute.xlu1 %2954 }
 0x1d8   : > { %v4338_v27 = vpop.f32.mrf.mxu1  ;;  %v6287_v10 = vpop.f32.mrf.mxu0 }
 0x1d9   : > { %v1865_v8 = vadd.f32 %v4337_v12, %v6141_v60  ;;  %v6293_v23 = vsel %vm2080_vm1, %v2112_v9, %v2114_v24  ;;  %v6308_v9 = vpop.permute.xlu0 %2959 }
 0x1da   : > { %6918 = vst [vmem:[#allocation38_spill] sm:$0xff] %v6293_v23  ;;  %v4339_v55 = vpop.f32.mrf.mxu1  ;;  %v6295_v36 = vpop.f32.mrf.mxu0 }
 0x1db   : > { %v2116_v40 = vrot.slane %v1865_v8, 1  ;;  %v4340_v15 = vadd.f32 %v4339_v55, %v4338_v27 }
 0x1dc   : > { %v4341_v41 = vpop.f32.mrf.mxu1  ;;  %v6299_v63 = vpop.f32.mrf.mxu0 }
 0x1dd   : > { %v1868_v39 = vadd.f32 %v4340_v15, %v4228_v59  ;;  %v6304_v48 = vsel %vm2080_vm1, %v2114_v24, %v2116_v40  ;;  %v6318_v24 = vpop.permute.xlu1 %2964  ;;  %v4234_v59 = vadd.f32 %v6174_v2, %v6168_v25 }
 0x1de   : > { %6919 = vst [vmem:[#allocation39_spill] sm:$0xff] %v6304_v48  ;;  %v4342_v60 = vpop.f32.mrf.mxu1  ;;  %v6306_v12 = vpop.f32.mrf.mxu0 }
 0x1df   : > { %v2118_v23 = vrot.slane %v1868_v39, 1  ;;  %v4343_v5 = vadd.f32 %v4342_v60, %v4341_v41  ;;  %v6324_v60 = vpop.permute.xlu0 %2231 }
 0x1e0   : > { %v4344_v47 = vpop.f32.mrf.mxu1  ;;  %v6310_v22 = vpop.f32.mrf.mxu0 }
 0x1e1   : > { %v1873_v43 = vadd.f32 %v4343_v5, %v6163_v44  ;;  %v6314_v27 = vsel %vm2080_vm1, %v2116_v40, %v2118_v23  ;;  %v6333_v25 = vpop.permute.xlu1 %2236 }
 0x1e2   : > { %6920 = vst [vmem:[#allocation40_spill] sm:$0xff] %v6314_v27  ;;  %v4345_v8 = vpop.f32.mrf.mxu1  ;;  %v6316_v55 = vpop.f32.mrf.mxu0 }
 0x1e3   : > { %v2120_v15 = vrot.slane %v1873_v43, 1  ;;  %v4346_v48 = vadd.f32 %v4345_v8, %v4344_v47  ;;  %v4240_v8 = vadd.f32 %v6193_v52, %v6187_v17 }
 0x1e4   : > { %v4347_v39 = vpop.f32.mrf.mxu1  ;;  %v6322_v41 = vpop.f32.mrf.mxu0 }
 0x1e5   : > { %v1876_v26 = vadd.f32 %v4346_v48, %v4234_v59  ;;  %v6327_v44 = vsel %vm2080_vm1, %v2118_v23, %v2120_v15  ;;  %v6341_v23 = vpop.permute.xlu0 %2241 }
 0x1e6   : > { %6921 = vst [vmem:[#allocation41_spill] sm:$0xff] %v6327_v44  ;;  %v4348_v5 = vpop.f32.mrf.mxu1  ;;  %v6329_v40 = vpop.f32.mrf.mxu0  ;;  %6925 = vst [vmem:[#allocation45_spill] sm:$0xff] %v6341_v23 }
 0x1e7   : > { %v2122_v27 = vrot.slane %v1876_v26, 1  ;;  %v4349_v6 = vadd.f32 %v4348_v5, %v4347_v39 }
 0x1e8   : > { %v4350_v29 = vpop.f32.mrf.mxu1  ;;  %v6331_v13 = vpop.f32.mrf.mxu0 }
 0x1e9   : > { %6922 = vst [vmem:[#allocation42_spill] sm:$0xff] %v6331_v13  ;;  %v1881_v47 = vadd.f32 %v4349_v6, %v6185_v37  ;;  %v6337_v2 = vsel %vm2080_vm1, %v2120_v15, %v2122_v27  ;;  %v6352_v15 = vpop.permute.xlu1 %2246  ;;  %v6356_v17 = vpop.permute.xlu0 %2969 }
 0x1ea   : > { %6923 = vst [vmem:[#allocation43_spill] sm:$0xff] %v6337_v2  ;;  %v4351_v43 = vpop.f32.mrf.mxu1  ;;  %v6339_v48 = vpop.f32.mrf.mxu0 }
 0x1eb   : > { %6924 = vst [vmem:[#allocation44_spill] sm:$0xff] %v6339_v48  ;;  %v2124_v26 = vrot.slane %v1881_v47, 1  ;;  %v4352_v59 = vadd.f32 %v4351_v43, %v4350_v29 }
 0x1ec   : > { %v4353_v39 = vpop.f32.mrf.mxu1  ;;  %v6345_v5 = vpop.f32.mrf.mxu0 }
 0x1ed   : > { %v1884_v44 = vadd.f32 %v4352_v59, %v4240_v8  ;;  %v6348_v13 = vsel %vm2080_vm1, %v2122_v27, %v2124_v26 }
 0x1ee   : > { %6926 = vst [vmem:[#allocation46_spill] sm:$0xff] %v6348_v13  ;;  %v4354_v6 = vpop.f32.mrf.mxu1  ;;  %v6350_v37 = vpop.f32.mrf.mxu0 }
 0x1ef   : > { %6927 = vst [vmem:[#allocation47_spill] sm:$0xff] %v6350_v37  ;;  %v2126_v2 = vrot.slane %v1884_v44, 1  ;;  %v4355_v48 = vadd.f32 %v4354_v6, %v4353_v39  ;;  %v6366_v44 = vpop.permute.xlu1 %2974 }
 0x1f0   : > { %v4356_v51 = vpop.f32.mrf.mxu1  ;;  %v6354_v23 = vpop.f32.mrf.mxu0 }
 0x1f1   : > { %6928 = vst [vmem:[#allocation48_spill] sm:$0xff] %v6354_v23  ;;  %v1889_v52 = vadd.f32 %v4355_v48, %v6201_v3  ;;  %v6360_v29 = vsel %vm2080_vm1, %v2124_v26, %v2126_v2  ;;  %v6374_v48 = vpop.permute.xlu0 %2979 }
 0x1f2   : > { %6929 = vst [vmem:[#allocation49_spill] sm:$0xff] %v6360_v29  ;;  %v4357_v47 = vpop.f32.mrf.mxu1  ;;  %v6362_v27 = vpop.f32.mrf.mxu0 }
 0x1f3   : > { %6930 = vst [vmem:[#allocation50_spill] sm:$0xff] %v6362_v27  ;;  %v2128_v43 = vrot.slane %v1889_v52, 1  ;;  %v4358_v8 = vadd.f32 %v4357_v47, %v4356_v51 }
 0x1f4   : > { %v4359_v59 = vpop.f32.mrf.mxu1  ;;  %v6364_v13 = vpop.f32.mrf.mxu0 }
 0x1f5   : > { %6931 = vst [vmem:[#allocation51_spill] sm:$0xff] %v6364_v13  ;;  %v1892_v39 = vadd.f32 %v4358_v8, %v6209_v20  ;;  %v6370_v6 = vsel %vm2080_vm1, %v2126_v2, %v2128_v43  ;;  %v6384_v2 = vpop.permute.xlu1 %2984 }
 0x1f6   : > { %6932 = vst [vmem:[#allocation52_spill] sm:$0xff] %v6370_v6  ;;  %v4360_v23 = vpop.f32.mrf.mxu1  ;;  %v6372_v3 = vpop.f32.mrf.mxu0 }
 0x1f7   : > { %6933 = vst [vmem:[#allocation53_spill] sm:$0xff] %v6372_v3  ;;  %v2130_v26 = vrot.slane %v1892_v39, 1  ;;  %v4361_v29 = vadd.f32 %v4360_v23, %v4359_v59  ;;  %v6388_v39 = vpop.permute.xlu0 %2251 }
 0x1f8   : > { %v4362_v27 = vpop.f32.mrf.mxu1  ;;  %v6376_v52 = vpop.f32.mrf.mxu0 }
 0x1f9   : > { %6934 = vst [vmem:[#allocation54_spill] sm:$0xff] %v6376_v52  ;;  %v1897_v51 = vadd.f32 %v4361_v29, %v6216_v46  ;;  %v6380_v47 = vsel %vm2080_vm1, %v2128_v43, %v2130_v26 }
 0x1fa   : > { %6935 = vst [vmem:[#allocation55_spill] sm:$0xff] %v6380_v47  ;;  %v4363_v13 = vpop.f32.mrf.mxu1  ;;  %v6382_v20 = vpop.f32.mrf.mxu0 }
 0x1fb   : > { %6936 = vst [vmem:[#allocation56_spill] sm:$0xff] %v6382_v20  ;;  %v2132_v8 = vrot.slane %v1897_v51, 1  ;;  %v4364_v6 = vadd.f32 %v4363_v13, %v4362_v27  ;;  %v6398_v51 = vpop.permute.xlu1 %2256 }
 0x1fc   : > { %v4365_v3 = vpop.f32.mrf.mxu1  ;;  %v6386_v37 = vpop.f32.mrf.mxu0  ;;  %6941 = vst [vmem:[#allocation61_spill] sm:$0xff] %v6398_v51 }
 0x1fd   : > { %6937 = vst [vmem:[#allocation57_spill] sm:$0xff] %v6386_v37  ;;  %v1900_v23 = vadd.f32 %v4364_v6, %v6224_v14  ;;  %v6392_v59 = vsel %vm2080_vm1, %v2130_v26, %v2132_v8  ;;  %v6406_v6 = vpop.permute.xlu0 %2261 }
 0x1fe   : > { %6938 = vst [vmem:[#allocation58_spill] sm:$0xff] %v6392_v59  ;;  %v4366_v46 = vpop.f32.mrf.mxu1  ;;  %v6394_v29 = vpop.f32.mrf.mxu0 }
 0x1ff   : > { %6939 = vst [vmem:[#allocation59_spill] sm:$0xff] %v6394_v29  ;;  %v2134_v43 = vrot.slane %v1900_v23, 1  ;;  %v4367_v47 = vadd.f32 %v4366_v46, %v4365_v3 }
 0x200   : > { %v4368_v20 = vpop.f32.mrf.mxu1  ;;  %v6396_v52 = vpop.f32.mrf.mxu0 }
 0x201   : > { %6940 = vst [vmem:[#allocation60_spill] sm:$0xff] %v6396_v52  ;;  %v1905_v13 = vadd.f32 %v4367_v47, %v6231_v56  ;;  %v6402_v27 = vsel %vm2080_vm1, %v2132_v8, %v2134_v43  ;;  %v6416_v47 = vpop.permute.xlu1 %2266 }
 0x202   : > { %6942 = vst [vmem:[#allocation62_spill] sm:$0xff] %v6402_v27  ;;  %v4369_v37 = vpop.f32.mrf.mxu1  ;;  %v6404_v14 = vpop.f32.mrf.mxu0 }
 0x203   : > { %6943 = vst [vmem:[#allocation63_spill] sm:$0xff] %v6404_v14  ;;  %v2136_v26 = vrot.slane %v1905_v13, 1  ;;  %v4370_v59 = vadd.f32 %v4369_v37, %v4368_v20  ;;  %v6420_v13 = vpop.permute.xlu0 %2989 }
 0x204   : > { %v4371_v29 = vpop.f32.mrf.mxu1  ;;  %v6408_v23 = vpop.f32.mrf.mxu0 }
 0x205   : > { %v1908_v3 = vadd.f32 %v4370_v59, %v6239_v7  ;;  %v6412_v46 = vsel %vm2080_vm1, %v2134_v43, %v2136_v26  ;;  %v6948_v7 = vrot.slane %v5853_v45, 7 }
 0x206   : > { %6944 = vst [vmem:[#allocation64_spill] sm:$0xff] %v6412_v46  ;;  %v4372_v52 = vpop.f32.mrf.mxu1  ;;  %v6414_v56 = vpop.f32.mrf.mxu0 }
 0x207   : > { %6945 = vst [vmem:[#allocation65_spill] sm:$0xff] %v6414_v56  ;;  %v2138_v8 = vrot.slane %v1908_v3, 1  ;;  %v4373_v27 = vadd.f32 %v4372_v52, %v4371_v29  ;;  %v2047_v59 = vsel %vm1951_vm0, 0.0, %v6948_v7  ;;  %v4395_v52 = vadd.f32 %v6262_v16, %v6255_v34 }
 0x208   : > { %v4374_v14 = vpop.f32.mrf.mxu1  ;;  %v6418_v51 = vpop.f32.mrf.mxu0  ;;  %v4398_v16 = vadd.f32 %v6272_v21, %v6264_v61 }
 0x209   : > { %6946 = vst [vmem:[#allocation66_spill] sm:$0xff] %v6418_v51  ;;  %v1913_v37 = vadd.f32 %v4373_v27, %v6245_v42  ;;  %v6424_v20 = vsel %vm2080_vm1, %v2136_v26, %v2138_v8  ;;  %v2369_v42 = vmul.f32 %v6257_v58, %v2047_v59  ;;  %v6436_v27 = vpop.permute.xlu1 %2994 }
 0x20a   : > { %6947 = vst [vmem:[#allocation67_spill] sm:$0xff] %v6424_v20  ;;  %v4375_v43 = vpop.f32.mrf.mxu1  ;;  %v6429_v46 = vpop.f32.mrf.mxu0 }
 0x20b   : > { %6949 = vst [vmem:[#allocation68_spill] sm:$0xff] %v6429_v46  ;;  %v2140_v29 = vrot.slane %v1913_v37, 1  ;;  %v4376_v3 = vadd.f32 %v4375_v43, %v4374_v14  ;;  %v6446_v46 = vpop.permute.xlu0 %2999  ;;  %v2628_v34 = vadd.f32 %v4395_v52, %v2369_v42  ;;  %v3107_v43 = vmul.f32 %v6289_v54, %v6150_v38 }
 0x20c   : > { %v6433_v51 = vpop.f32.mrf.mxu0  ;;  %v4505_v56 = vpop.f32.mrf.mxu1 }
 0x20d   : > { %v6439_v26 = vadd.f32 %v4376_v3, %v6253_v31  ;;  %v6442_v45 = vsel %vm2080_vm1, %v2138_v8, %v2140_v29  ;;  %v2370_v31 = vmul.f32 %v6274_v28, %v5875_v62  ;;  %v6462_v61 = vpop.permute.xlu1 %3004  ;;  %v6469_v62 = vld [vmem:[%s6875_s3] ss:$0 sm:$0xff] }
 0x20e   : > { %v6444_v7 = vpop.f32.mrf.mxu0  ;;  %v4506_v20 = vpop.f32.mrf.mxu1 }
 0x20f   : > { %v2142_v14 = vrot.slane %v6439_v26, 1  ;;  %v4507_v58 = vadd.f32 %v4506_v20, %v4505_v56  ;;  %v2631_v21 = vadd.f32 %v4398_v16, %v2370_v31  ;;  %v4401_v56 = vadd.f32 %v6283_v32, %v6278_v0  ;;  %v6475_v42 = vpop.permute.xlu0 %2271 }
 0x210   : > { %v6451_v37 = vpop.f32.mrf.mxu0  ;;  %v4508_v59 = vpop.f32.mrf.mxu1  ;;  %v3108_v16 = vmul.f32 %v6301_v50, %v6161_v33  ;;  %v4404_v0 = vadd.f32 %v6295_v36, %v6287_v10 }
 0x211   : > { %v2789_v8 = vadd.f32 %v4507_v58, %v2628_v34  ;;  %v6460_v52 = vsel %vm2080_vm1, %v2140_v29, %v2142_v14  ;;  %v2371_v29 = vmul.f32 %v6266_v53, %v5882_v4  ;;  %v2372_v4 = vmul.f32 %v6285_v19, %v5890_v57  ;;  %v6491_v50 = vpop.permute.xlu1 %2276 }
 0x212   : > { %v4509_v3 = vpop.f32.mrf.mxu1  ;;  %v6471_v38 = vpop.f32.mrf.mxu0  ;;  %v4407_v57 = vadd.f32 %v6306_v12, %v6299_v63  ;;  %v4410_v63 = vadd.f32 %v6316_v55, %v6310_v22 }
 0x213   : > { %v3139_v20 = vadd.f32 %v3107_v43, %v2789_v8  ;;  %v4510_v28 = vadd.f32 %v4509_v3, %v4508_v59  ;;  %v2636_v31 = vadd.f32 %v4401_v56, %v2371_v29  ;;  %v6485_v43 = vld [vmem:[%s6876_s4] ss:$0 sm:$0xff]  ;;  %v3109_v3 = vmul.f32 %v6308_v9, %v6172_v30 }
 0x214   : > { %v4511_v54 = vpop.f32.mrf.mxu1  ;;  %v6489_v53 = vpop.f32.mrf.mxu0 }
 0x215   : > { %v2792_v34 = vadd.f32 %v4510_v28, %v2631_v21  ;;  %v3178_v32 = vmul.f32 %v6469_v62, %v3139_v20  ;;  %v2639_v21 = vadd.f32 %v4404_v0, %v2372_v4  ;;  %v6497_v28 = vpop.permute.xlu0 %2281  ;;  %v3110_v0 = vmul.f32 %v6318_v24, %v6183_v35 }
 0x216   : > { %v4512_v58 = vpop.f32.mrf.mxu1  ;;  %v3111_v24 = vmul.f32 %v6356_v17, %v6191_v11 }
 0x217   : > { %v3140_v59 = vadd.f32 %v3108_v16, %v2792_v34  ;;  %v4513_v8 = vadd.f32 %v4512_v58, %v4511_v54  ;;  %v3217_v20 = vadd.f32 %v6485_v43, %v3178_v32  ;;  %v2373_v34 = vmul.f32 %v6324_v60, %v5899_v49  ;;  %v6504_v16 = vpop.f32.mrf.mxu0 }
 0x218   : > { %v4514_v33 = vpop.f32.mrf.mxu1  ;;  %v2374_v60 = vmul.f32 %v6333_v25, %v5907_v1  ;;  %v4413_v1 = vadd.f32 %v6329_v40, %v6322_v41  ;;  %v6953_v41 = vld [vmem:[#allocation44_spill] sm:$0xff] }
 0x219   : > { %v3179_v10 = vmul.f32 %v6469_v62, %v3140_v59  ;;  %v2797_v36 = vadd.f32 %v4513_v8, %v2636_v31  ;;  %v3249_v31 = vmax.f32 %v3217_v20, 0.0  ;;  %v6511_v59 = vpop.permute.xlu1 %2286  ;;  %v2644_v8 = vadd.f32 %v4407_v57, %v2373_v34 }
 0x21a   : > { %v4515_v56 = vpop.f32.mrf.mxu1 }
 0x21b   : > { %v3141_v19 = vadd.f32 %v3109_v3, %v2797_v36  ;;  %v4516_v54 = vadd.f32 %v4515_v56, %v4514_v33  ;;  %v3218_v29 = vadd.f32 %v6485_v43, %v3179_v10  ;;  %v6515_v33 = vpop.f32.mrf.mxu0  ;;  %v6517_v3 = vpop.permute.xlu0 %3009 }
 0x21c   : > { %v4517_v58 = vpop.f32.mrf.mxu1 }
 0x21d   : > { %v3180_v30 = vmul.f32 %v6469_v62, %v3141_v19  ;;  %v2800_v9 = vadd.f32 %v4516_v54, %v2639_v21  ;;  %v3250_v32 = vmax.f32 %v3218_v29, 0.0  ;;  %v2647_v21 = vadd.f32 %v4410_v63, %v2374_v60  ;;  %v6950_v19 = vld [vmem:[#allocation45_spill] sm:$0xff]  ;;  %v6528_v29 = vpop.f32.mrf.mxu0  ;;  %v6954_v60 = vld [vmem:[#allocation2_spill] sm:$0xff] }
 0x21e   : > { %v4518_v12 = vpop.f32.mrf.mxu1  ;;  %v2375_v54 = vmul.f32 %v6950_v19, %v5914_v18 }
 0x21f   : > { %v3142_v4 = vadd.f32 %v3110_v0, %v2800_v9  ;;  %v4519_v49 = vadd.f32 %v4518_v12, %v4517_v58  ;;  %v3281_v36 = vpack.c.bf16 %v3250_v32, %v3249_v31  ;;  %v3219_v35 = vadd.f32 %v6485_v43, %v3180_v30  ;;  %v6530_v58 = vpop.permute.xlu1 %3014  ;;  %v6951_v9 = vld [vmem:[#allocation27_spill] sm:$0xff]  ;;  %v6952_v32 = vld [vmem:[#allocation42_spill] sm:$0xff]  ;;  %v6537_v31 = vpop.permute.xlu0 %3019 }
 0x220   : > { %v4520_v10 = vpop.f32.mrf.mxu1  ;;  %v3112_v0 = vmul.f32 %v6366_v44, %v6951_v9  ;;  %v4416_v40 = vadd.f32 %v6953_v41, %v6952_v32  ;;  %v2652_v18 = vadd.f32 %v4413_v1, %v2375_v54  ;;  %v6958_v32 = vld [vmem:[#allocation29_spill] sm:$0xff] }
 0x221   : > { %v3181_v22 = vmul.f32 %v6469_v62, %v3142_v4  ;;  %v2805_v55 = vadd.f32 %v4519_v49, %v2644_v8  ;;  %4641 = vmatprep.mubr.bf16.mxu0 %v3281_v36  ;;  %v3251_v30 = vmax.f32 %v3219_v35, 0.0  ;;  %v6541_v36 = vpop.f32.mrf.mxu0  ;;  %v3114_v41 = vmul.f32 %v6384_v2, %v6958_v32 }
 0x222   : > { %v4521_v56 = vpop.f32.mrf.mxu1 }
 0x223   : > { %v3220_v25 = vadd.f32 %v6485_v43, %v3181_v22  ;;  %v3143_v20 = vadd.f32 %v3111_v24, %v2805_v55  ;;  %v4522_v57 = vadd.f32 %v4521_v56, %v4520_v10  ;;  %v2376_v10 = vmul.f32 %v6352_v15, %v6954_v60  ;;  %v6955_v55 = vld [vmem:[#allocation28_spill] sm:$0xff] }
 0x224   : > { %v4523_v34 = vpop.f32.mrf.mxu1  ;;  %v3113_v24 = vmul.f32 %v6374_v48, %v6955_v55  ;;  %v6961_v60 = vld [vmem:[#allocation4_spill] sm:$0xff] }
 0x225   : > { %v3252_v11 = vmax.f32 %v3220_v25, 0.0  ;;  %v2808_v17 = vadd.f32 %v4522_v57, %v2647_v21  ;;  %v3182_v63 = vmul.f32 %v6469_v62, %v3143_v20  ;;  %v2655_v21 = vadd.f32 %v4416_v40, %v2376_v10  ;;  %v6547_v25 = vpop.permute.xlu1 %3024  ;;  %v6956_v20 = vld [vmem:[#allocation47_spill] sm:$0xff]  ;;  %v6962_v10 = vld [vmem:[#allocation61_spill] sm:$0xff] }
 0x226   : > { %v4524_v12 = vpop.f32.mrf.mxu1  ;;  %v4419_v57 = vadd.f32 %v6956_v20, %v6345_v5  ;;  %v6959_v5 = vld [vmem:[#allocation48_spill] sm:$0xff]  ;;  %v6963_v20 = vld [vmem:[#allocation30_spill] sm:$0xff] }
 0x227   : > { %v3282_v8 = vpack.c.bf16 %v3252_v11, %v3251_v30  ;;  %v3144_v4 = vadd.f32 %v3112_v0, %v2808_v17  ;;  %v4525_v49 = vadd.f32 %v4524_v12, %v4523_v34  ;;  %v3221_v1 = vadd.f32 %v6485_v43, %v3182_v63  ;;  %v6957_v34 = vld [vmem:[#allocation3_spill] sm:$0xff]  ;;  %v6554_v11 = vpop.f32.mrf.mxu0  ;;  %v6556_v17 = vpop.permute.xlu0 %2291  ;;  %v6960_v63 = vld [vmem:[#allocation50_spill] sm:$0xff] }
 0x228   : > { %v4526_v35 = vpop.f32.mrf.mxu1  ;;  %v2377_v30 = vmul.f32 %v6388_v39, %v6957_v34  ;;  %v4422_v12 = vadd.f32 %v6960_v63, %v6959_v5  ;;  %v6965_v34 = vld [vmem:[#allocation53_spill] sm:$0xff] }
 0x229   : > { %v3183_v44 = vmul.f32 %v6469_v62, %v3144_v4  ;;  %v2813_v22 = vadd.f32 %v4525_v49, %v2652_v18  ;;  %4642 = vmatmul.mubr.bf16.vlgmr.msra.gmra.mxu0 %v3282_v8  ;;  %v3253_v8 = vmax.f32 %v3221_v1, 0.0  ;;  %v3115_v1 = vmul.f32 %v6420_v13, %v6963_v20 }
 0x22a   : > { %v4527_v56 = vpop.f32.mrf.mxu1  ;;  %v2660_v4 = vadd.f32 %v4419_v57, %v2377_v30 }
 0x22b   : > { %v3145_v15 = vadd.f32 %v3113_v24, %v2813_v22  ;;  %v4528_v19 = vadd.f32 %v4527_v56, %v4526_v35  ;;  %v3222_v54 = vadd.f32 %v6485_v43, %v3183_v44  ;;  %v2378_v35 = vmul.f32 %v6962_v10, %v6961_v60  ;;  %v6565_v44 = vpop.f32.mrf.mxu0  ;;  %v6567_v24 = vpop.permute.xlu1 %2296 }
 0x22c   : > { %v4529_v48 = vpop.f32.mrf.mxu1 }
 0x22d   : > { %v3184_v9 = vmul.f32 %v6469_v62, %v3145_v15  ;;  %v2816_v0 = vadd.f32 %v4528_v19, %v2655_v21  ;;  %v3254_v40 = vmax.f32 %v3222_v54, 0.0  ;;  %v2663_v57 = vadd.f32 %v4422_v12, %v2378_v35  ;;  %v6573_v19 = vpop.permute.xlu0 %2301  ;;  %v6964_v54 = vld [vmem:[#allocation51_spill] sm:$0xff] }
 0x22e   : > { %v4530_v18 = vpop.f32.mrf.mxu1  ;;  %v4425_v30 = vadd.f32 %v6965_v34, %v6964_v54  ;;  %v6971_v54 = vld [vmem:[#allocation32_spill] sm:$0xff] }
 0x22f   : > { %v3146_v49 = vadd.f32 %v3114_v41, %v2816_v0  ;;  %v4531_v39 = vadd.f32 %v4530_v18, %v4529_v48  ;;  %v3283_v55 = vpack.c.bf16 %v3254_v40, %v3253_v8  ;;  %v3223_v2 = vadd.f32 %v6485_v43, %v3184_v9  ;;  %v6966_v41 = vld [vmem:[#allocation5_spill] sm:$0xff]  ;;  %v6580_v40 = vpop.f32.mrf.mxu0  ;;  %v6967_v18 = vld [vmem:[#allocation31_spill] sm:$0xff]  ;;  %v6587_v35 = vpop.permute.xlu1 %2306 }
 0x230   : > { %v4532_v22 = vpop.f32.mrf.mxu1  ;;  %v2379_v9 = vmul.f32 %v6406_v6, %v6966_v41  ;;  %v3116_v8 = vmul.f32 %v6436_v27, %v6967_v18  ;;  %v3117_v34 = vmul.f32 %v6446_v46, %v6971_v54  ;;  %v6973_v41 = vld [vmem:[#allocation59_spill] sm:$0xff] }
 0x231   : > { %v3185_v21 = vmul.f32 %v6469_v62, %v3146_v49  ;;  %v2821_v56 = vadd.f32 %v4531_v39, %v2660_v4  ;;  %4645 = vmatprep.mubr.bf16.mxu0 %v3283_v55  ;;  %v3255_v63 = vmax.f32 %v3223_v2, 0.0  ;;  %v6968_v4 = vld [vmem:[#allocation54_spill] sm:$0xff]  ;;  %v6969_v49 = vld [vmem:[#allocation56_spill] sm:$0xff]  ;;  %v6591_v20 = vpop.f32.mrf.mxu0 }
 0x232   : > { %v4533_v15 = vpop.f32.mrf.mxu1  ;;  %v4428_v39 = vadd.f32 %v6969_v49, %v6968_v4 }
 0x233   : > { %v3224_v48 = vadd.f32 %v6485_v43, %v3185_v21  ;;  %v3147_v0 = vadd.f32 %v3115_v1, %v2821_v56  ;;  %v4534_v32 = vadd.f32 %v4533_v15, %v4532_v22  ;;  %v2668_v22 = vadd.f32 %v4425_v30, %v2379_v9  ;;  %v6970_v56 = vld [vmem:[#allocation6_spill] sm:$0xff]  ;;  %v6604_v18 = vpop.f32.mrf.mxu0  ;;  %v6606_v4 = vpop.permute.xlu1 %3034 }
 0x234   : > { %v4535_v5 = vpop.f32.mrf.mxu1  ;;  %v2380_v2 = vmul.f32 %v6416_v47, %v6970_v56  ;;  %v6976_v56 = vld [vmem:[#allocation60_spill] sm:$0xff] }
 0x235   : > { %v3256_v13 = vmax.f32 %v3224_v48, 0.0  ;;  %v2824_v12 = vadd.f32 %v4534_v32, %v2663_v57  ;;  %v3186_v60 = vmul.f32 %v6469_v62, %v3147_v0  ;;  %v6593_v57 = vpop.permute.xlu0 %3029  ;;  %v6972_v32 = vld [vmem:[#allocation57_spill] sm:$0xff] }
 0x236   : > { %v4536_v10 = vpop.f32.mrf.mxu1  ;;  %v2671_v48 = vadd.f32 %v4428_v39, %v2380_v2  ;;  %v4431_v9 = vadd.f32 %v6973_v41, %v6972_v32  ;;  %v6975_v39 = vld [vmem:[#allocation33_spill] sm:$0xff]  ;;  %v6977_v2 = vld [vmem:[#allocation63_spill] sm:$0xff]  ;;  %v6979_v41 = vld [vmem:[#allocation34_spill] sm:$0xff] }
 0x237   : > { %v3148_v55 = vadd.f32 %v3116_v8, %v2824_v12  ;;  %v4537_v6 = vadd.f32 %v4536_v10, %v4535_v5  ;;  %v3284_v21 = vpack.c.bf16 %v3256_v13, %v3255_v63  ;;  %v3225_v0 = vadd.f32 %v6485_v43, %v3186_v60  ;;  %v6974_v13 = vld [vmem:[#allocation7_spill] sm:$0xff] }
 0x238   : > { %v4538_v1 = vpop.f32.mrf.mxu1  ;;  %v2381_v12 = vmul.f32 %v6475_v42, %v6974_v13  ;;  %v3118_v60 = vmul.f32 %v6462_v61, %v6975_v39  ;;  %v4434_v42 = vadd.f32 %v6977_v2, %v6976_v56  ;;  %v6625_v13 = vpop.permute.xlu1 %3044  ;;  %v6981_v39 = vld [vmem:[#allocation9_spill] sm:$0xff] }
 0x239   : > { %v3187_v27 = vmul.f32 %v6469_v62, %v3148_v55  ;;  %v2829_v15 = vadd.f32 %v4537_v6, %v2668_v22  ;;  %4646 = vmatmul.mubr.bf16.gmra.mxu0 %v3284_v21  ;;  %v3257_v55 = vmax.f32 %v3225_v0, 0.0  ;;  %v6611_v6 = vpop.permute.xlu0 %3039 }
 0x23a   : > { %v4539_v30 = vpop.f32.mrf.mxu1  ;;  %v2676_v21 = vadd.f32 %v4431_v9, %v2381_v12  ;;  %v3119_v9 = vmul.f32 %v6517_v3, %v6979_v41 }
 0x23b   : > { %v3149_v47 = vadd.f32 %v3117_v34, %v2829_v15  ;;  %v4540_v5 = vadd.f32 %v4539_v30, %v4538_v1  ;;  %v3226_v63 = vadd.f32 %v6485_v43, %v3187_v27  ;;  %v6978_v15 = vld [vmem:[#allocation8_spill] sm:$0xff]  ;;  %v6617_v34 = vpop.f32.mrf.mxu0 }
 0x23c   : > { %v4541_v8 = vpop.f32.mrf.mxu1  ;;  %v2382_v54 = vmul.f32 %v6491_v50, %v6978_v15  ;;  %v6984_v15 = vld [vmem:[#allocation68_spill] sm:$0xff] }
 0x23d   : > { %v3188_v46 = vmul.f32 %v6469_v62, %v3149_v47  ;;  %v2832_v49 = vadd.f32 %v4540_v5, %v2671_v48  ;;  %v3258_v10 = vmax.f32 %v3226_v63, 0.0  ;;  %v6980_v47 = vld [vmem:[#allocation65_spill] sm:$0xff] }
 0x23e   : > { %v4542_v22 = vpop.f32.mrf.mxu1  ;;  %v4437_v5 = vadd.f32 %v6980_v47, %v6408_v23  ;;  %v2679_v50 = vadd.f32 %v4434_v42, %v2382_v54 }
 0x23f   : > { %v3150_v1 = vadd.f32 %v3118_v60, %v2832_v49  ;;  %v4543_v27 = vadd.f32 %v4542_v22, %v4541_v8  ;;  %v3285_v30 = vpack.c.bf16 %v3258_v10, %v3257_v55  ;;  %v3227_v61 = vadd.f32 %v6485_v43, %v3188_v46  ;;  %v6630_v60 = vpop.f32.mrf.mxu0  ;;  %v6982_v10 = vld [vmem:[#allocation35_spill] sm:$0xff]  ;;  %v6634_v55 = vpop.permute.xlu0 %2311 }
 0x240   : > { %v4544_v48 = vpop.f32.mrf.mxu1  ;;  %v2383_v46 = vmul.f32 %v6497_v28, %v6981_v39  ;;  %v3120_v3 = vmul.f32 %v6530_v58, %v6982_v10 }
 0x241   : > { %v3189_v32 = vmul.f32 %v6469_v62, %v3150_v1  ;;  %v2837_v0 = vadd.f32 %v4543_v27, %v2676_v21  ;;  %4649 = vmatprep.mubr.bf16.mxu0 %v3285_v30  ;;  %v3259_v23 = vmax.f32 %v3227_v61, 0.0  ;;  %v6983_v27 = vld [vmem:[#allocation66_spill] sm:$0xff]  ;;  %v6641_v58 = vpop.f32.mrf.mxu0 }
 0x242   : > { %v4545_v63 = vpop.f32.mrf.mxu1  ;;  %v2684_v42 = vadd.f32 %v4437_v5, %v2383_v46  ;;  %v4440_v54 = vadd.f32 %v6984_v15, %v6983_v27 }
 0x243   : > { %v3228_v12 = vadd.f32 %v6485_v43, %v3189_v32  ;;  %v3151_v8 = vadd.f32 %v3119_v9, %v2837_v0  ;;  %v4546_v49 = vadd.f32 %v4545_v63, %v4544_v48  ;;  %v6985_v32 = vld [vmem:[#allocation10_spill] sm:$0xff]  ;;  %v6643_v9 = vpop.permute.xlu1 %2316  ;;  %v6986_v63 = vld [vmem:[#allocation36_spill] sm:$0xff] }
 0x244   : > { %v4547_v22 = vpop.f32.mrf.mxu1  ;;  %v2384_v0 = vmul.f32 %v6511_v59, %v6985_v32  ;;  %v3121_v5 = vmul.f32 %v6537_v31, %v6986_v63  ;;  %v6988_v31 = vld [vmem:[#allocation37_spill] sm:$0xff] }
 0x245   : > { %v3260_v21 = vmax.f32 %v3228_v12, 0.0  ;;  %v3190_v56 = vmul.f32 %v6469_v62, %v3151_v8  ;;  %v2840_v2 = vadd.f32 %v4546_v49, %v2679_v50  ;;  %v4443_v12 = vadd.f32 %v6444_v7, %v6433_v51  ;;  %v6651_v49 = vpop.permute.xlu0 %2321 }
 0x246   : > { %v4548_v1 = vpop.f32.mrf.mxu1  ;;  %v2687_v59 = vadd.f32 %v4440_v54, %v2384_v0  ;;  %v4446_v54 = vadd.f32 %v6471_v38, %v6451_v37  ;;  %v4449_v37 = vadd.f32 %v6504_v16, %v6489_v53 }
 0x247   : > { %v3152_v48 = vadd.f32 %v3120_v3, %v2840_v2  ;;  %v4549_v28 = vadd.f32 %v4548_v1, %v4547_v22  ;;  %v3286_v30 = vpack.c.bf16 %v3260_v21, %v3259_v23  ;;  %v3229_v50 = vadd.f32 %v6485_v43, %v3190_v56  ;;  %v6987_v3 = vld [vmem:[#allocation11_spill] sm:$0xff]  ;;  %v6656_v23 = vpop.f32.mrf.mxu0  ;;  %v6661_v15 = vpop.permute.xlu1 %2326 }
 0x248   : > { %v4550_v41 = vpop.f32.mrf.mxu1  ;;  %v2385_v22 = vmul.f32 %v6556_v17, %v6987_v3  ;;  %v3122_v21 = vmul.f32 %v6547_v25, %v6988_v31  ;;  %v6992_v3 = vld [vmem:[#allocation39_spill] sm:$0xff] }
 0x249   : > { %v3191_v61 = vmul.f32 %v6469_v62, %v3152_v48  ;;  %v2845_v47 = vadd.f32 %v4549_v28, %v2684_v42  ;;  %4650 = vmatmul.mubr.bf16.gmra.mxu0 %v3286_v30  ;;  %v3261_v7 = vmax.f32 %v3229_v50, 0.0  ;;  %v6989_v30 = vld [vmem:[#allocation12_spill] sm:$0xff]  ;;  %v6667_v25 = vpop.f32.mrf.mxu0 }
 0x24a   : > { %v4551_v8 = vpop.f32.mrf.mxu1  ;;  %v2692_v1 = vadd.f32 %v4443_v12, %v2385_v22  ;;  %v2386_v32 = vmul.f32 %v6567_v24, %v6989_v30  ;;  %v3124_v22 = vmul.f32 %v6606_v4, %v6992_v3 }
 0x24b   : > { %v3153_v39 = vadd.f32 %v3121_v5, %v2845_v47  ;;  %v4552_v46 = vadd.f32 %v4551_v8, %v4550_v41  ;;  %v3230_v10 = vadd.f32 %v6485_v43, %v3191_v61  ;;  %v6669_v41 = vpop.permute.xlu0 %3049  ;;  %v6990_v5 = vld [vmem:[#allocation38_spill] sm:$0xff] }
 0x24c   : > { %v4553_v56 = vpop.f32.mrf.mxu1  ;;  %v3123_v50 = vmul.f32 %v6593_v57, %v6990_v5  ;;  %v2695_v12 = vadd.f32 %v4446_v54, %v2386_v32  ;;  %v3055_v57 = vpop.permute.xlu1 %3054  ;;  %v6993_v54 = vld [vmem:[#allocation14_spill] sm:$0xff]  ;;  %v6994_v32 = vld [vmem:[#allocation40_spill] sm:$0xff] }
 0x24d   : > { %v3192_v2 = vmul.f32 %v6469_v62, %v3153_v39  ;;  %v2848_v51 = vadd.f32 %v4552_v46, %v2687_v59  ;;  %v3262_v42 = vmax.f32 %v3230_v10, 0.0  ;;  %v6991_v39 = vld [vmem:[#allocation13_spill] sm:$0xff]  ;;  %v6680_v10 = vpop.f32.mrf.mxu0  ;;  %v2388_v4 = vmul.f32 %v6587_v35, %v6993_v54 }
 0x24e   : > { %v4554_v27 = vpop.f32.mrf.mxu1  ;;  %v2387_v46 = vmul.f32 %v6573_v19, %v6991_v39 }
 0x24f   : > { %v3154_v48 = vadd.f32 %v3122_v21, %v2848_v51  ;;  %v4555_v17 = vadd.f32 %v4554_v27, %v4553_v56  ;;  %v3287_v28 = vpack.c.bf16 %v3262_v42, %v3261_v7  ;;  %v3231_v61 = vadd.f32 %v6485_v43, %v3192_v2  ;;  %v6685_v7 = vpop.permute.xlu0 %3059 }
 0x250   : > { %v4556_v0 = vpop.f32.mrf.mxu1  ;;  %v2700_v2 = vadd.f32 %v4449_v37, %v2387_v46  ;;  %v4452_v42 = vadd.f32 %v6528_v29, %v6515_v33  ;;  %v4455_v33 = vadd.f32 %v6554_v11, %v6541_v36  ;;  %v6995_v37 = vld [vmem:[#allocation15_spill] sm:$0xff] }
 0x251   : > { %v3193_v47 = vmul.f32 %v6469_v62, %v3154_v48  ;;  %v2853_v63 = vadd.f32 %v4555_v17, %v2692_v1  ;;  %4653 = vmatprep.mubr.bf16.mxu0 %v3287_v28  ;;  %v3263_v21 = vmax.f32 %v3231_v61, 0.0  ;;  %v6691_v48 = vpop.f32.mrf.mxu0 }
 0x252   : > { %v4557_v38 = vpop.f32.mrf.mxu1 }
 0x253   : > { %v3232_v24 = vadd.f32 %v6485_v43, %v3193_v47  ;;  %v3155_v8 = vadd.f32 %v3123_v50, %v2853_v63  ;;  %v4558_v59 = vadd.f32 %v4557_v38, %v4556_v0  ;;  %v3125_v0 = vmul.f32 %v6611_v6, %v6994_v32  ;;  %v6699_v47 = vpop.permute.xlu1 %3064  ;;  %v6996_v6 = vld [vmem:[#allocation41_spill] sm:$0xff] }
 0x254   : > { %v4559_v31 = vpop.f32.mrf.mxu1  ;;  %v2703_v63 = vadd.f32 %v4452_v42, %v2388_v4  ;;  %v2389_v38 = vmul.f32 %v6634_v55, %v6995_v37  ;;  %v6999_v32 = vld [vmem:[#allocation17_spill] sm:$0xff] }
 0x255   : > { %v3264_v56 = vmax.f32 %v3232_v24, 0.0  ;;  %v3194_v53 = vmul.f32 %v6469_v62, %v3155_v8  ;;  %v2856_v16 = vadd.f32 %v4558_v59, %v2695_v12  ;;  %v6704_v12 = vpop.f32.mrf.mxu0  ;;  %v3126_v24 = vmul.f32 %v6625_v13, %v6996_v6  ;;  %v2332_v59 = vpop.permute.xlu0 %2331 }
 0x256   : > { %v4560_v51 = vpop.f32.mrf.mxu1  ;;  %v2708_v3 = vadd.f32 %v4455_v33, %v2389_v38  ;;  %v7000_v33 = vld [vmem:[#allocation46_spill] sm:$0xff]  ;;  %v4464_v38 = vadd.f32 %v6630_v60, %v6617_v34  ;;  %v4467_v34 = vadd.f32 %v6656_v23, %v6641_v58 }
 0x257   : > { %v3156_v19 = vadd.f32 %v3124_v22, %v2856_v16  ;;  %v4561_v1 = vadd.f32 %v4560_v51, %v4559_v31  ;;  %v3288_v27 = vpack.c.bf16 %v3264_v56, %v3263_v21  ;;  %v3233_v61 = vadd.f32 %v6485_v43, %v3194_v53  ;;  %v6997_v53 = vld [vmem:[#allocation16_spill] sm:$0xff]  ;;  %v2337_v51 = vpop.permute.xlu1 %2336 }
 0x258   : > { %v4562_v17 = vpop.f32.mrf.mxu1  ;;  %v4458_v31 = vadd.f32 %v6580_v40, %v6565_v44  ;;  %v2390_v16 = vmul.f32 %v6643_v9, %v6997_v53  ;;  %v4461_v44 = vadd.f32 %v6604_v18, %v6591_v20 }
 0x259   : > { %v3195_v28 = vmul.f32 %v6469_v62, %v3156_v19  ;;  %v2861_v30 = vadd.f32 %v4561_v1, %v2700_v2  ;;  %4654 = vmatmul.mubr.bf16.gmra.mxu0 %v3288_v27  ;;  %v3265_v39 = vmax.f32 %v3233_v61, 0.0  ;;  %v6713_v2 = vpop.f32.mrf.mxu0  ;;  %v6998_v27 = vld [vmem:[#allocation43_spill] sm:$0xff]  ;;  %v6721_v4 = vpop.permute.xlu0 %2341 }
 0x25a   : > { %v4563_v29 = vpop.f32.mrf.mxu1  ;;  %v3127_v54 = vmul.f32 %v6669_v41, %v6998_v27  ;;  %v2711_v9 = vadd.f32 %v4458_v31, %v2390_v16  ;;  %v7003_v16 = vld [vmem:[#allocation19_spill] sm:$0xff] }
 0x25b   : > { %v3157_v35 = vadd.f32 %v3125_v0, %v2861_v30  ;;  %v4564_v5 = vadd.f32 %v4563_v29, %v4562_v17  ;;  %v3234_v50 = vadd.f32 %v6485_v43, %v3195_v28  ;;  %v2391_v0 = vmul.f32 %v6651_v49, %v6999_v32  ;;  %v6726_v61 = vpop.f32.mrf.mxu0  ;;  %v6730_v37 = vpop.permute.xlu1 %2346 }
 0x25c   : > { %v4565_v8 = vpop.f32.mrf.mxu1  ;;  %v3128_v29 = vmul.f32 %v3055_v57, %v7000_v33 }
 0x25d   : > { %v3196_v36 = vmul.f32 %v6469_v62, %v3157_v35  ;;  %v2864_v11 = vadd.f32 %v4564_v5, %v2703_v63  ;;  %v3266_v46 = vmax.f32 %v3234_v50, 0.0  ;;  %v2716_v5 = vadd.f32 %v4461_v44, %v2391_v0  ;;  %v6736_v57 = vpop.f32.mrf.mxu0  ;;  %v7005_v0 = vld [vmem:[#allocation20_spill] sm:$0xff] }
 0x25e   : > { %v4566_v22 = vpop.f32.mrf.mxu1  ;;  %v2394_v33 = vmul.f32 %v2337_v51, %v7005_v0 }
 0x25f   : > { %v3158_v21 = vadd.f32 %v3126_v24, %v2864_v11  ;;  %v4567_v56 = vadd.f32 %v4566_v22, %v4565_v8  ;;  %v3289_v55 = vpack.c.bf16 %v3266_v46, %v3265_v39  ;;  %v3235_v42 = vadd.f32 %v6485_v43, %v3196_v36  ;;  %v7001_v8 = vld [vmem:[#allocation18_spill] sm:$0xff]  ;;  %v3070_v39 = vpop.permute.xlu0 %3069  ;;  %v7002_v22 = vld [vmem:[#allocation49_spill] sm:$0xff] }
 0x260   : > { %v4568_v13 = vpop.f32.mrf.mxu1  ;;  %v2392_v36 = vmul.f32 %v6661_v15, %v7001_v8  ;;  %v3129_v31 = vmul.f32 %v6685_v7, %v7002_v22  ;;  %v3075_v7 = vpop.permute.xlu1 %3074 }
 0x261   : > { %v3197_v19 = vmul.f32 %v6469_v62, %v3158_v21  ;;  %v2869_v1 = vadd.f32 %v4567_v56, %v2708_v3  ;;  %4657 = vmatprep.mubr.bf16.mxu0 %v3289_v55  ;;  %v3267_v63 = vmax.f32 %v3235_v42, 0.0  ;;  %v4478_v42 = vpop.f32.mrf.mxu0 }
 0x262   : > { %v4569_v40 = vpop.f32.mrf.mxu1  ;;  %v2719_v56 = vadd.f32 %v4464_v38, %v2392_v36  ;;  %v7008_v36 = vld [vmem:[#allocation58_spill] sm:$0xff] }
 0x263   : > { %v3236_v17 = vadd.f32 %v6485_v43, %v3197_v19  ;;  %v3159_v28 = vadd.f32 %v3127_v54, %v2869_v1  ;;  %v4570_v30 = vadd.f32 %v4569_v40, %v4568_v13  ;;  %v2393_v13 = vmul.f32 %v2332_v59, %v7003_v16  ;;  %v7004_v19 = vld [vmem:[#allocation52_spill] sm:$0xff] }
 0x264   : > { %v4571_v41 = vpop.f32.mrf.mxu1  ;;  %v3130_v1 = vmul.f32 %v6699_v47, %v7004_v19 }
 0x265   : > { %v3268_v35 = vmax.f32 %v3236_v17, 0.0  ;;  %v3198_v20 = vmul.f32 %v6469_v62, %v3159_v28  ;;  %v2872_v18 = vadd.f32 %v4570_v30, %v2711_v9  ;;  %v2724_v58 = vadd.f32 %v4467_v34, %v2393_v13  ;;  %v3080_v17 = vpop.permute.xlu0 %3079 }
 0x266   : > { %v4572_v50 = vpop.f32.mrf.mxu1  ;;  %v4470_v28 = vadd.f32 %v6680_v10, %v6667_v25  ;;  %v3085_v25 = vpop.permute.xlu1 %3084  ;;  %v4476_v34 = vadd.f32 %v6726_v61, %v6713_v2  ;;  %v4479_v2 = vadd.f32 %v4478_v42, %v6736_v57 }
 0x267   : > { %v3160_v6 = vadd.f32 %v3128_v29, %v2872_v18  ;;  %v4573_v24 = vadd.f32 %v4572_v50, %v4571_v41  ;;  %v3290_v49 = vpack.c.bf16 %v3268_v35, %v3267_v63  ;;  %v3237_v21 = vadd.f32 %v6485_v43, %v3198_v20  ;;  %v4480_v29 = vpop.f32.mrf.mxu0  ;;  %v7006_v20 = vld [vmem:[#allocation55_spill] sm:$0xff] }
 0x268   : > { %v4574_v11 = vpop.f32.mrf.mxu1  ;;  %v3131_v18 = vmul.f32 %v3070_v39, %v7006_v20  ;;  %v2727_v10 = vadd.f32 %v4470_v28, %v2394_v33 }
 0x269   : > { %v3199_v46 = vmul.f32 %v6469_v62, %v3160_v6  ;;  %v2877_v3 = vadd.f32 %v4573_v24, %v2716_v5  ;;  %4658 = vmatmul.mubr.bf16.gmra.mxu0 %v3290_v49  ;;  %v3269_v40 = vmax.f32 %v3237_v21, 0.0  ;;  %v4473_v5 = vadd.f32 %v6704_v12, %v6691_v48  ;;  %v7007_v24 = vld [vmem:[#allocation21_spill] sm:$0xff]  ;;  %v4481_v8 = vpop.f32.mrf.mxu0  ;;  %v2352_v48 = vpop.permute.xlu0 %2351 }
 0x26a   : > { %v4575_v60 = vpop.f32.mrf.mxu1  ;;  %v2395_v49 = vmul.f32 %v6721_v4, %v7007_v24  ;;  %v2357_v13 = vpop.permute.xlu1 %2356  ;;  %v4482_v20 = vadd.f32 %v4481_v8, %v4480_v29  ;;  %v7014_v24 = vld [vmem:[#allocation67_spill] sm:$0xff] }
 0x26b   : > { %v3161_v55 = vadd.f32 %v3129_v31, %v2877_v3  ;;  %v4576_v15 = vadd.f32 %v4575_v60, %v4574_v11  ;;  %v3238_v53 = vadd.f32 %v6485_v43, %v3199_v46  ;;  %v3132_v11 = vmul.f32 %v3075_v7, %v7008_v36 }
 0x26c   : > { %v4577_v27 = vpop.f32.mrf.mxu1  ;;  %v2732_v12 = vadd.f32 %v4473_v5, %v2395_v49 }
 0x26d   : > { %v3200_v54 = vmul.f32 %v6469_v62, %v3161_v55  ;;  %v2880_v44 = vadd.f32 %v4576_v15, %v2719_v56  ;;  %v3270_v9 = vmax.f32 %v3238_v53, 0.0  ;;  %v7009_v15 = vld [vmem:[#allocation22_spill] sm:$0xff]  ;;  %v4483_v53 = vpop.f32.mrf.mxu0 }
 0x26e   : > { %v4578_v23 = vpop.f32.mrf.mxu1  ;;  %v2396_v4 = vmul.f32 %v6730_v37, %v7009_v15  ;;  %v2367_v33 = vpop.permute.xlu1 %2366 }
 0x26f   : > { %v3162_v30 = vadd.f32 %v3130_v1, %v2880_v44  ;;  %v4579_v32 = vadd.f32 %v4578_v23, %v4577_v27  ;;  %v3291_v59 = vpack.c.bf16 %v3270_v9, %v3269_v40  ;;  %v3239_v41 = vadd.f32 %v6485_v43, %v3200_v54  ;;  %v7010_v27 = vld [vmem:[#allocation62_spill] sm:$0xff]  ;;  %v2362_v44 = vpop.permute.xlu0 %2361  ;;  %v7011_v23 = vld [vmem:[#allocation23_spill] sm:$0xff] }
 0x270   : > { %v4580_v47 = vpop.f32.mrf.mxu1  ;;  %v3133_v7 = vmul.f32 %v3080_v17, %v7010_v27  ;;  %v2735_v40 = vadd.f32 %v4476_v34, %v2396_v4  ;;  %v2397_v28 = vmul.f32 %v2352_v48, %v7011_v23  ;;  %v7015_v48 = vld [vmem:[#allocation25_spill] sm:$0xff] }
 0x271   : > { %v3201_v63 = vmul.f32 %v6469_v62, %v3162_v30  ;;  %v2885_v35 = vadd.f32 %v4579_v32, %v2724_v58  ;;  %4661 = vmatprep.mubr.bf16.mxu0 %v3291_v59  ;;  %v3271_v3 = vmax.f32 %v3239_v41, 0.0  ;;  %v4484_v30 = vpop.f32.mrf.mxu0  ;;  %v7012_v32 = vld [vmem:[#allocation64_spill] sm:$0xff] }
 0x272   : > { %v4581_v50 = vpop.f32.mrf.mxu1  ;;  %v3134_v59 = vmul.f32 %v3085_v25, %v7012_v32  ;;  %v2740_v57 = vadd.f32 %v4479_v2, %v2397_v28  ;;  %v3095_v49 = vpop.permute.xlu1 %3094 }
 0x273   : > { %v3240_v38 = vadd.f32 %v6485_v43, %v3201_v63  ;;  %v3163_v6 = vadd.f32 %v3131_v18, %v2885_v35  ;;  %v4582_v51 = vadd.f32 %v4581_v50, %v4580_v47  ;;  %v3090_v35 = vpop.permute.xlu0 %3089 }
 0x274   : > { %v4583_v46 = vpop.f32.mrf.mxu1  ;;  %v3135_v25 = vmul.f32 %v3090_v35, %v7014_v24 }
 0x275   : > { %v3272_v39 = vmax.f32 %v3240_v38, 0.0  ;;  %v3202_v22 = vmul.f32 %v6469_v62, %v3163_v6  ;;  %v2888_v31 = vadd.f32 %v4582_v51, %v2727_v10  ;;  %v7013_v10 = vld [vmem:[#allocation24_spill] sm:$0xff]  ;;  %v4486_v6 = vpop.f32.mrf.mxu0 }
 0x276   : > { %v4584_v21 = vpop.f32.mrf.mxu1  ;;  %v2398_v38 = vmul.f32 %v2357_v13, %v7013_v10 }
 0x277   : > { %v3164_v60 = vadd.f32 %v3132_v11, %v2888_v31  ;;  %v4585_v56 = vadd.f32 %v4584_v21, %v4583_v46  ;;  %v3292_v55 = vpack.c.bf16 %v3272_v39, %v3271_v3  ;;  %v3241_v54 = vadd.f32 %v6485_v43, %v3202_v22  ;;  %v4487_v34 = vpop.f32.mrf.mxu0 }
 0x278   : > { %v4586_v16 = vpop.f32.mrf.mxu1  ;;  %v4485_v3 = vadd.f32 %v4484_v30, %v4483_v53  ;;  %v2743_v22 = vadd.f32 %v4482_v20, %v2398_v38  ;;  %v3136_v21 = vmul.f32 %v3095_v49, %v6442_v45  ;;  %v2176_v45 = vsel %vm2080_vm1, %v2142_v14, 0.0 }
 0x279   : > { %v3203_v19 = vmul.f32 %v6469_v62, %v3164_v60  ;;  %v2893_v1 = vadd.f32 %v4585_v56, %v2732_v12  ;;  %4662 = vmatmul.mubr.bf16.gmra.mxu0 %v3292_v55  ;;  %v3273_v41 = vmax.f32 %v3241_v54, 0.0  ;;  %v2399_v12 = vmul.f32 %v2362_v44, %v7015_v48  ;;  %v7016_v54 = vld [vmem:[#allocation26_spill] sm:$0xff] }
 0x27a   : > { %v4587_v61 = vpop.f32.mrf.mxu1  ;;  %v2400_v2 = vmul.f32 %v2367_v33, %v7016_v54 }
 0x27b   : > { %v3165_v9 = vadd.f32 %v3133_v7, %v2893_v1  ;;  %v4588_v58 = vadd.f32 %v4587_v61, %v4586_v16  ;;  %v3242_v37 = vadd.f32 %v6485_v43, %v3203_v19  ;;  %v3100_v16 = vpop.permute.xlu0 %3099  ;;  %v2748_v13 = vadd.f32 %v4485_v3, %v2399_v12  ;;  %v3105_v61 = vpop.permute.xlu1 %3104 }
 0x27c   : > { %v4589_v0 = vpop.f32.mrf.mxu1  ;;  %v4488_v19 = vadd.f32 %v4487_v34, %v4486_v6  ;;  %v3138_v26 = vmul.f32 %v3105_v61, %v2176_v45 }
 0x27d   : > { %v3204_v17 = vmul.f32 %v6469_v62, %v3165_v9  ;;  %v2896_v47 = vadd.f32 %v4588_v58, %v2735_v40  ;;  %v3274_v63 = vmax.f32 %v3242_v37, 0.0  ;;  %v3137_v40 = vmul.f32 %v3100_v16, %v6460_v52 }
 0x27e   : > { %v4590_v42 = vpop.f32.mrf.mxu1  ;;  %v2751_v28 = vadd.f32 %v4488_v19, %v2400_v2 }
 0x27f   : > { %v3166_v18 = vadd.f32 %v3134_v59, %v2896_v47  ;;  %v4591_v5 = vadd.f32 %v4590_v42, %v4589_v0  ;;  %v3293_v50 = vpack.c.bf16 %v3274_v63, %v3273_v41  ;;  %v3243_v36 = vadd.f32 %v6485_v43, %v3204_v17 }
 0x280   : > { %v4592_v51 = vpop.f32.mrf.mxu1 }
 0x281   : > { %v3205_v11 = vmul.f32 %v6469_v62, %v3166_v18  ;;  %v2901_v46 = vadd.f32 %v4591_v5, %v2740_v57  ;;  %4665 = vmatprep.mubr.bf16.mxu0 %v3293_v50  ;;  %v3275_v56 = vmax.f32 %v3243_v36, 0.0  ;;  %v6798_v18 = vld [vmem:[%s6877_s5] ss:$0 sm:$0xff] }
 0x282   : > { %v4593_v39 = vpop.f32.mrf.mxu1 }
 0x283   : > { %v3244_v29 = vadd.f32 %v6485_v43, %v3205_v11  ;;  %v3167_v8 = vadd.f32 %v3135_v25, %v2901_v46  ;;  %v4594_v31 = vadd.f32 %v4593_v39, %v4592_v51 }
 0x284   : > { %v4595_v60 = vpop.f32.mrf.mxu1 }
 0x285   : > { %v3276_v55 = vmax.f32 %v3244_v29, 0.0  ;;  %v3206_v15 = vmul.f32 %v6469_v62, %v3167_v8  ;;  %v2904_v4 = vadd.f32 %v4594_v31, %v2743_v22 }
 0x286   : > { %v4596_v53 = vpop.f32.mrf.mxu1 }
 0x287   : > { %v3168_v1 = vadd.f32 %v3136_v21, %v2904_v4  ;;  %v4597_v27 = vadd.f32 %v4596_v53, %v4595_v60  ;;  %v3294_v7 = vpack.c.bf16 %v3276_v55, %v3275_v56  ;;  %v3245_v37 = vadd.f32 %v6485_v43, %v3206_v15 }
 0x288   : > { %v4598_v44 = vpop.f32.mrf.mxu1 }
 0x289   : > { %v3207_v9 = vmul.f32 %v6469_v62, %v3168_v1  ;;  %v2909_v58 = vadd.f32 %v4597_v27, %v2748_v13  ;;  %4666 = vmatmul.mubr.bf16.gmra.mxu0 %v3294_v7  ;;  %v3277_v33 = vmax.f32 %v3245_v37, 0.0 }
 0x28a   : > { %v4599_v23 = vpop.f32.mrf.mxu1 }
 0x28b   : > { %v3169_v30 = vadd.f32 %v3137_v40, %v2909_v58  ;;  %v4600_v32 = vadd.f32 %v4599_v23, %v4598_v44  ;;  %v3246_v59 = vadd.f32 %v6485_v43, %v3207_v9 }
 0x28d   : > { %v3208_v14 = vmul.f32 %v6469_v62, %v3169_v30  ;;  %v2912_v0 = vadd.f32 %v4600_v32, %v2751_v28  ;;  %v3278_v17 = vmax.f32 %v3246_v59, 0.0 }
 0x28f   : > { %v3170_v52 = vadd.f32 %v3138_v26, %v2912_v0  ;;  %v3295_v47 = vpack.c.bf16 %v3278_v17, %v3277_v33  ;;  %v3247_v41 = vadd.f32 %v6485_v43, %v3208_v14 }
 0x291   : > { %v3209_v63 = vmul.f32 %v6469_v62, %v3170_v52  ;;  %4669 = vmatprep.mubr.bf16.mxu0 %v3295_v47  ;;  %v3279_v57 = vmax.f32 %v3247_v41, 0.0 }
 0x293   : > { %v3248_v35 = vadd.f32 %v6485_v43, %v3209_v63 }
 0x295   : > { %v3280_v42 = vmax.f32 %v3248_v35, 0.0 }
 0x297   : > { %v3296_v20 = vpack.c.bf16 %v3280_v42, %v3279_v57 }
 0x299   : > { %4670 = vmatmul.mubr.bf16.gmra.mxu0 %v3296_v20 }
 0x2e9   : > { %v4643_v62 = vpop.f32.mrf.mxu0 }
 0x2ea   : > { %v3411_v43 = vadd.f32 %v4643_v62, %v6798_v18 }
 0x2eb   : > { %v3402_v5 = vpop.f32.mrf.mxu0 }
 0x2ec   : > { %3531 = vst [vmem:[%s6803_s13 + $0x10] sm:$0xff] %v3411_v43  ;;  %v3403_v50 = vadd.f32 %v6798_v18, %v3402_v5 }
 0x2ed   : > { %v4644_v10 = vpop.f32.mrf.mxu0 }
 0x2ee   : > { %3529 = vst [vmem:[%s6803_s13] sm:$0xff] %v3403_v50  ;;  %v3414_v38 = vadd.f32 %v4644_v10, %v6798_v18 }
 0x2ef   : > { %v3405_v6 = vpop.f32.mrf.mxu0 }
 0x2f0   : > { %3532 = vst [vmem:[%s6803_s13 + $0x18] sm:$0xff] %v3414_v38  ;;  %v3406_v51 = vadd.f32 %v6798_v18, %v3405_v6 }
 0x2f2   : > { %3530 = vst [vmem:[%s6803_s13 + $0x8] sm:$0xff] %v3406_v51 }
 0x2f9   : > { %v4647_v24 = vpop.f32.mrf.mxu0 }
 0x2fa   : > { %v3427_v25 = vadd.f32 %v4647_v24, %v6798_v18 }
 0x2fb   : > { %v3418_v49 = vpop.f32.mrf.mxu0 }
 0x2fc   : > { %3535 = vst [vmem:[%s6803_s13 + $0x30] sm:$0xff] %v3427_v25  ;;  %v3419_v36 = vadd.f32 %v6798_v18, %v3418_v49 }
 0x2fd   : > { %v4648_v11 = vpop.f32.mrf.mxu0 }
 0x2fe   : > { %3533 = vst [vmem:[%s6803_s13 + $0x20] sm:$0xff] %v3419_v36  ;;  %v3430_v46 = vadd.f32 %v4648_v11, %v6798_v18 }
 0x2ff   : > { %v3421_v3 = vpop.f32.mrf.mxu0 }
 0x300   : > { %3536 = vst [vmem:[%s6803_s13 + $0x38] sm:$0xff] %v3430_v46  ;;  %v3422_v39 = vadd.f32 %v6798_v18, %v3421_v3 }
 0x302   : > { %3534 = vst [vmem:[%s6803_s13 + $0x28] sm:$0xff] %v3422_v39 }
 0x309   : > { %v4651_v22 = vpop.f32.mrf.mxu0 }
 0x30a   : > { %v3443_v29 = vadd.f32 %v4651_v22, %v6798_v18 }
 0x30b   : > { %v3434_v8 = vpop.f32.mrf.mxu0 }
 0x30c   : > { %3539 = vst [vmem:[%s6803_s13 + $0x50] sm:$0xff] %v3443_v29  ;;  %v3435_v31 = vadd.f32 %v6798_v18, %v3434_v8 }
 0x30d   : > { %v4652_v48 = vpop.f32.mrf.mxu0 }
 0x30e   : > { %3537 = vst [vmem:[%s6803_s13 + $0x40] sm:$0xff] %v3435_v31  ;;  %v3446_v12 = vadd.f32 %v4652_v48, %v6798_v18 }
 0x30f   : > { %v3437_v21 = vpop.f32.mrf.mxu0 }
 0x310   : > { %3540 = vst [vmem:[%s6803_s13 + $0x58] sm:$0xff] %v3446_v12  ;;  %v3438_v34 = vadd.f32 %v6798_v18, %v3437_v21 }
 0x312   : > { %3538 = vst [vmem:[%s6803_s13 + $0x48] sm:$0xff] %v3438_v34 }
 0x319   : > { %v4655_v60 = vpop.f32.mrf.mxu0 }
 0x31a   : > { %v3459_v56 = vadd.f32 %v4655_v60, %v6798_v18 }
 0x31b   : > { %v3450_v55 = vpop.f32.mrf.mxu0 }
 0x31c   : > { %3543 = vst [vmem:[%s6803_s13 + $0x70] sm:$0xff] %v3459_v56  ;;  %v3451_v15 = vadd.f32 %v6798_v18, %v3450_v55 }
 0x31d   : > { %v4656_v4 = vpop.f32.mrf.mxu0 }
 0x31e   : > { %3541 = vst [vmem:[%s6803_s13 + $0x60] sm:$0xff] %v3451_v15  ;;  %v3462_v16 = vadd.f32 %v4656_v4, %v6798_v18 }
 0x31f   : > { %v3453_v13 = vpop.f32.mrf.mxu0 }
 0x320   : > { %3544 = vst [vmem:[%s6803_s13 + $0x78] sm:$0xff] %v3462_v16  ;;  %v3454_v53 = vadd.f32 %v6798_v18, %v3453_v13 }
 0x322   : > { %3542 = vst [vmem:[%s6803_s13 + $0x68] sm:$0xff] %v3454_v53 }
 0x329   : > { %v4659_v19 = vpop.f32.mrf.mxu0 }
 0x32a   : > { %v3475_v1 = vadd.f32 %v4659_v19, %v6798_v18 }
 0x32b   : > { %v3466_v27 = vpop.f32.mrf.mxu0 }
 0x32c   : > { %3547 = vst [vmem:[%s6803_s13 + $0x90] sm:$0xff] %v3475_v1  ;;  %v3467_v7 = vadd.f32 %v6798_v18, %v3466_v27 }
 0x32d   : > { %v4660_v54 = vpop.f32.mrf.mxu0 }
 0x32e   : > { %3545 = vst [vmem:[%s6803_s13 + $0x80] sm:$0xff] %v3467_v7  ;;  %v3478_v2 = vadd.f32 %v4660_v54, %v6798_v18 }
 0x32f   : > { %v3469_v45 = vpop.f32.mrf.mxu0 }
 0x330   : > { %3548 = vst [vmem:[%s6803_s13 + $0x98] sm:$0xff] %v3478_v2  ;;  %v3470_v44 = vadd.f32 %v6798_v18, %v3469_v45 }
 0x332   : > { %3546 = vst [vmem:[%s6803_s13 + $0x88] sm:$0xff] %v3470_v44 }
 0x339   : > { %v4663_v61 = vpop.f32.mrf.mxu0 }
 0x33a   : > { %v3491_v40 = vadd.f32 %v4663_v61, %v6798_v18 }
 0x33b   : > { %v3482_v9 = vpop.f32.mrf.mxu0 }
 0x33c   : > { %3551 = vst [vmem:[%s6803_s13 + $0xb0] sm:$0xff] %v3491_v40  ;;  %v3483_v58 = vadd.f32 %v6798_v18, %v3482_v9 }
 0x33d   : > { %v4664_v37 = vpop.f32.mrf.mxu0 }
 0x33e   : > { %3549 = vst [vmem:[%s6803_s13 + $0xa0] sm:$0xff] %v3483_v58  ;;  %v3494_v23 = vadd.f32 %v4664_v37, %v6798_v18 }
 0x33f   : > { %v3485_v28 = vpop.f32.mrf.mxu0 }
 0x340   : > { %3552 = vst [vmem:[%s6803_s13 + $0xb8] sm:$0xff] %v3494_v23  ;;  %v3486_v30 = vadd.f32 %v6798_v18, %v3485_v28 }
 0x342   : > { %3550 = vst [vmem:[%s6803_s13 + $0xa8] sm:$0xff] %v3486_v30 }
 0x349   : > { %v4667_v32 = vpop.f32.mrf.mxu0 }
 0x34a   : > { %v3507_v59 = vadd.f32 %v4667_v32, %v6798_v18 }
 0x34b   : > { %v3498_v26 = vpop.f32.mrf.mxu0 }
 0x34c   : > { %3555 = vst [vmem:[%s6803_s13 + $0xd0] sm:$0xff] %v3507_v59  ;;  %v3499_v14 = vadd.f32 %v6798_v18, %v3498_v26 }
 0x34d   : > { %v4668_v0 = vpop.f32.mrf.mxu0 }
 0x34e   : > { %3553 = vst [vmem:[%s6803_s13 + $0xc0] sm:$0xff] %v3499_v14  ;;  %v3510_v33 = vadd.f32 %v4668_v0, %v6798_v18 }
 0x34f   : > { %v3501_v17 = vpop.f32.mrf.mxu0 }
 0x350   : > { %3556 = vst [vmem:[%s6803_s13 + $0xd8] sm:$0xff] %v3510_v33  ;;  %v3502_v52 = vadd.f32 %v6798_v18, %v3501_v17 }
 0x352   : > { %3554 = vst [vmem:[%s6803_s13 + $0xc8] sm:$0xff] %v3502_v52 }
 0x359   : > { %v4671_v47 = vpop.f32.mrf.mxu0 }
 0x35a   : > { %v3523_v41 = vadd.f32 %v4671_v47, %v6798_v18 }
 0x35b   : > { %v3514_v63 = vpop.f32.mrf.mxu0 }
 0x35c   : > { %3559 = vst [vmem:[%s6803_s13 + $0xf0] sm:$0xff] %v3523_v41  ;;  %v3515_v35 = vadd.f32 %v6798_v18, %v3514_v63 }
 0x35d   : > { %v4672_v57 = vpop.f32.mrf.mxu0 }
 0x35e   : > { %3557 = vst [vmem:[%s6803_s13 + $0xe0] sm:$0xff] %v3515_v35  ;;  %v3526_v42 = vadd.f32 %v4672_v57, %v6798_v18 }
 0x35f   : > { %v3517_v20 = vpop.f32.mrf.mxu0 }
 0x360   : > { %3560 = vst [vmem:[%s6803_s13 + $0xf8] sm:$0xff] %v3526_v42  ;;  %v3518_v62 = vadd.f32 %v6798_v18, %v3517_v20 }
 0x362   : > { %3558 = vst [vmem:[%s6803_s13 + $0xe8] sm:$0xff] %v3518_v62 }
 0x363 PF: > { %s18_s27 = sadd.s32 1, %s4970_s27  }
 0x364   : > { %p15_p4 = scmp.ge.s32.totalorder %s18_s27, 4  }
 0x366   :  { %17 = sbr.rel (!%p15_p4) target bundleno = 1 (0x1), region = 84 }

</bundles_post_ra>
